<compile_context>
chip_gen: v7x
topology: tpu7x:2x2x1
jax: 0.10.0
libtpu: 0.0.40
codegen_flags: <defaults>
</compile_context>

<pallas_src>
import jax
import jax.numpy as jnp
from jax.experimental import pallas as pl
from jax.experimental.pallas import tpu as pltpu

_EPS = 1e-5

# Fixed geometry of the partition=False network.
_H_IN, _W_IN = 30, 480            # sensor image
_C1, _C2 = 32, 64                 # conv channels
_K1 = 120                         # conv1 patch length  (1 * 3 * 40)
_OH2, _OW2 = 6, 12                # conv2 output spatial dims
_TAPS = 9                         # conv2 3x3 taps
_PHASES = 3                       # maxpool (1,3) phases
_RPT = _OH2 * _OW2                # rows per tap          = 72
_RPP = _TAPS * _RPT               # rows per pool phase   = 648
_RPB = _PHASES * _RPP             # rows per batch        = 1944
_FEAT = _C2 * _OH2 * _OW2         # flattened conv2 feats = 4608
_EMB = 600
_HID = 512
_TK = 512                         # K tile for streamed fc1 matmul (4608/512=9)


# ---------------------------------------------------------------------------
# Kernel 1: conv1 + BN + ReLU + MaxPool(1,3) + conv2 + BN + ReLU  (per batch)
# ---------------------------------------------------------------------------
def _conv_kernel(p_ref, w1_ref, s1_ref, b1_ref, w2_ref, s2_ref, b2_ref, o_ref):
    # p_ref: [1944, 120] bf16, rows ordered (phase r, tap (i,j), oh, ow)
    y = jnp.dot(p_ref[...], w1_ref[...], preferred_element_type=jnp.float32)
    y = jnp.maximum(y * s1_ref[...] + b1_ref[...], 0.0)          # conv1+BN+ReLU
    # MaxPool(1,3): max over the three phase slabs (contiguous, 8-aligned).
    pooled = jnp.maximum(jnp.maximum(y[0:_RPP], y[_RPP:2 * _RPP]),
                         y[2 * _RPP:3 * _RPP])                   # [648, 32] f32
    # conv2 as 9 accumulated tap matmuls on the MXU.
    acc = jnp.zeros((_RPT, _C2), jnp.float32)
    for t in range(_TAPS):
        lhs = pooled[t * _RPT:(t + 1) * _RPT, :].astype(jnp.bfloat16)
        acc = acc + jnp.dot(lhs, w2_ref[t], preferred_element_type=jnp.float32)
    acc = jnp.maximum(acc * s2_ref[...] + b2_ref[...], 0.0)      # BN + ReLU
    o_ref[...] = acc.astype(o_ref.dtype)                         # [72, 64] bf16


def _conv_stage(patches, prep, batch):
    return pl.pallas_call(
        _conv_kernel,
        out_shape=jax.ShapeDtypeStruct((batch * _RPT, _C2), jnp.bfloat16),
        grid=(batch,),
        in_specs=[
            pl.BlockSpec((_RPB, _K1), lambda b: (b, 0)),
            pl.BlockSpec((_K1, _C1), lambda b: (0, 0)),
            pl.BlockSpec((1, _C1), lambda b: (0, 0)),
            pl.BlockSpec((1, _C1), lambda b: (0, 0)),
            pl.BlockSpec((_TAPS, _C1, _C2), lambda b: (0, 0, 0)),
            pl.BlockSpec((1, _C2), lambda b: (0, 0)),
            pl.BlockSpec((1, _C2), lambda b: (0, 0)),
        ],
        out_specs=pl.BlockSpec((_RPT, _C2), lambda b: (b, 0)),
        compiler_params=pltpu.CompilerParams(
            dimension_semantics=("parallel",)),
    )(patches, prep["w1"], prep["s1"], prep["b1"],
      prep["w2"], prep["s2"], prep["b2"])


# ---------------------------------------------------------------------------
# Kernel 2: fc1(streamed K) + fc2(robot) + actor fc1/BN1d/ReLU + fc2/tanh
# ---------------------------------------------------------------------------
def _fc_kernel(act_ref, rob_ref, wf1_ref, bf1_ref, wf2_ref, bf2_ref,
               wa1s_ref, wa1r_ref, a1s_ref, a1b_ref,
               wa2_ref, ba2_ref, std_ref, mean_ref, out_ref, emb_acc):
    k = pl.program_id(0)

    @pl.when(k == 0)
    def _init():
        emb_acc[...] = jnp.zeros_like(emb_acc)

    # Streamed K-tile of the big embedding fc1 (bf16 MXU, f32 accumulate).
    emb_acc[...] += jnp.dot(act_ref[...], wf1_ref[...],
                            preferred_element_type=jnp.float32)

    @pl.when(k == pl.num_programs(0) - 1)
    def _finish():
        sens = jnp.maximum(emb_acc[...] + bf1_ref[...], 0.0)       # [B, 600]
        rob = jnp.maximum(
            jnp.dot(rob_ref[...], wf2_ref[...],
                    preferred_element_type=jnp.float32) + bf2_ref[...], 0.0)
        # actor fc1 on the (virtual) concat [sens, rob] -> two dots, no concat.
        h = jnp.dot(sens.astype(jnp.bfloat16), wa1s_ref[...],
                    preferred_element_type=jnp.float32)
        h = h + jnp.dot(rob.astype(jnp.bfloat16), wa1r_ref[...],
                        preferred_element_type=jnp.float32)
        h = jnp.maximum(h * a1s_ref[...] + a1b_ref[...], 0.0)      # BN1d + ReLU
        y = jnp.dot(h, wa2_ref[...],
                    preferred_element_type=jnp.float32) + ba2_ref[...]
        out_ref[...] = (std_ref[...] * jnp.tanh(y)
                        + mean_ref[...]).astype(out_ref.dtype)


def _fc_stage(act, robot, prep, batch):
    kt = _FEAT // _TK
    return pl.pallas_call(
        _fc_kernel,
        out_shape=jax.ShapeDtypeStruct((batch, 2), jnp.float32),
        grid=(kt,),
        in_specs=[
            pl.BlockSpec((batch, _TK), lambda k: (0, k)),
            pl.BlockSpec((batch, 6), lambda k: (0, 0)),
            pl.BlockSpec((_TK, _EMB), lambda k: (k, 0)),
            pl.BlockSpec((1, _EMB), lambda k: (0, 0)),
            pl.BlockSpec((6, _EMB), lambda k: (0, 0)),
            pl.BlockSpec((1, _EMB), lambda k: (0, 0)),
            pl.BlockSpec((_EMB, _HID), lambda k: (0, 0)),
            pl.BlockSpec((_EMB, _HID), lambda k: (0, 0)),
            pl.BlockSpec((1, _HID), lambda k: (0, 0)),
            pl.BlockSpec((1, _HID), lambda k: (0, 0)),
            pl.BlockSpec((_HID, 2), lambda k: (0, 0)),
            pl.BlockSpec((1, 2), lambda k: (0, 0)),
            pl.BlockSpec((1, 2), lambda k: (0, 0)),
            pl.BlockSpec((1, 2), lambda k: (0, 0)),
        ],
        out_specs=pl.BlockSpec((batch, 2), lambda k: (0, 0)),
        scratch_shapes=[pltpu.VMEM((batch, _EMB), jnp.float32)],
        compiler_params=pltpu.CompilerParams(
            dimension_semantics=("arbitrary",)),
    )(act, robot, prep["wf1"], prep["bf1"], prep["wf2"], prep["bf2"],
      prep["wa1s"], prep["wa1r"], prep["a1s"], prep["a1b"],
      prep["wa2"], prep["ba2"], prep["std"], prep["mean"])


# ---------------------------------------------------------------------------
# Wrapper-side patch gathering (cheap XLA slices on <1 MB of bf16 data).
# ---------------------------------------------------------------------------
def _conv_patches(sensor):
    """sensor [B, 30, 480] f32 -> conv1 patches [B*1944, 120] bf16.

    Row order: (b, phase r, conv2 tap (i,j), oh, ow).  Row content is the
    conv1 patch producing conv1-output (h1 = 2*oh + i, w1 = 9*ow + 3*j + r),
    i.e. exactly the value the maxpool phase r of conv2 tap (i,j) needs.
    """
    B = sensor.shape[0]
    x4 = sensor.astype(jnp.bfloat16).reshape(B, _H_IN, _W_IN // 4, 4)
    # win[b, h, w1, j] = sensor[b, h, 4*w1 + j]        (j = conv1 kernel col)
    win = jnp.stack([x4[:, :, q:q + 111, :] for q in range(10)], axis=3)
    win = win.reshape(B, _H_IN, 111, 40)
    # full[b, h1, w1, ki*40+kj] = sensor[b, 2*h1+ki, 4*w1+kj]
    full = jnp.stack([win[:, ki:ki + 27:2] for ki in range(3)], axis=3)
    full = full.reshape(B, 14, 111, _K1)
    blocks = []
    for r in range(_PHASES):
        for i in range(3):
            for j in range(3):
                s0 = 3 * j + r
                blocks.append(full[:, i:i + 11:2, s0:s0 + 100:9, :])  # [B,6,12,120]
    p = jnp.stack(blocks, axis=1)                     # [B, 27, 6, 12, 120]
    return p.reshape(B * _RPB, _K1)


# ---------------------------------------------------------------------------
# Forward pass
# ---------------------------------------------------------------------------
def actor_forward(prep, obs):
    B = obs.shape[0]
    sensor = obs[:, :-6].reshape(B, _H_IN, _W_IN)
    robot = obs[:, -6:]
    patches = _conv_patches(sensor)                   # [B*1944, 120] bf16
    conv_out = _conv_stage(patches, prep, B)          # [B*72, 64] bf16
    act = conv_out.reshape(B, _FEAT)                  # zero-copy (h,w,c) flatten
    return _fc_stage(act, robot, prep, B)             # [B, 2] f32


# ---------------------------------------------------------------------------
# One-time offline weight folding / permutation / casting
# ---------------------------------------------------------------------------
def prepare_params(p):
    f32, bf16 = jnp.float32, jnp.bfloat16

    def fold_bn(bn):
        s = bn["gamma"] / jnp.sqrt(bn["var"] + _EPS)
        return s, bn["beta"] - bn["mean"] * s

    s1, b1 = fold_bn(p["bn_c1"])
    s2, b2 = fold_bn(p["bn_c2"])
    sa, _ = fold_bn(p["abn1"])

    prep = {}
    prep["w1"] = p["conv1_w"].reshape(_C1, _K1).T.astype(bf16)          # [120,32]
    prep["s1"] = s1.reshape(1, _C1).astype(f32)
    prep["b1"] = b1.reshape(1, _C1).astype(f32)
    prep["w2"] = (p["conv2_w"].transpose(2, 3, 1, 0)
                  .reshape(_TAPS, _C1, _C2).astype(bf16))               # [9,32,64]
    prep["s2"] = s2.reshape(1, _C2).astype(f32)
    prep["b2"] = b2.reshape(1, _C2).astype(f32)
    # embedding fc1: re-order input features from torch (c,h,w) to (h,w,c),
    # store pre-transposed [K, N] in bf16.
    prep["wf1"] = (p["fc1e_w"].reshape(_EMB, _C2, _OH2, _OW2)
                   .transpose(2, 3, 1, 0).reshape(_FEAT, _EMB).astype(bf16))
    prep["bf1"] = p["fc1e_b"].reshape(1, _EMB).astype(f32)
    prep["wf2"] = p["fc2e_w"].T.astype(f32)                             # [6,600]
    prep["bf2"] = p["fc2e_b"].reshape(1, _EMB).astype(f32)
    # actor fc1 split into the sensor / robot halves of the concat input.
    prep["wa1s"] = p["afc1_w"][:, :_EMB].T.astype(bf16)                 # [600,512]
    prep["wa1r"] = p["afc1_w"][:, _EMB:].T.astype(bf16)                 # [600,512]
    prep["a1s"] = sa.reshape(1, _HID).astype(f32)
    prep["a1b"] = (((p["afc1_b"] - p["abn1"]["mean"]) * sa
                    + p["abn1"]["beta"]).reshape(1, _HID).astype(f32))
    prep["wa2"] = p["afc2_w"].T.astype(f32)                             # [512,2]
    prep["ba2"] = p["afc2_b"].reshape(1, 2).astype(f32)
    prep["std"] = p["act_std"].reshape(1, 2).astype(f32)
    prep["mean"] = p["act_mean"].reshape(1, 2).astype(f32)
    return prep


# ---------------------------------------------------------------------------
# Deterministic parameter initialization (torch-layout parameters)
# ---------------------------------------------------------------------------
def init_params(key):
    ks = jax.random.split(key, 24)

    def nrm(k, shape, scale=0.05):
        return (scale * jax.random.normal(k, shape)).astype(jnp.float32)

    def bn(k, c):
        k1, k2, k3, k4 = jax.random.split(k, 4)
        return dict(gamma=1.0 + nrm(k1, (c,)), beta=nrm(k2, (c,)),
                    mean=nrm(k3, (c,)), var=0.5 + jnp.abs(nrm(k4, (c,))))

    p = {}
    p["conv1_w"] = nrm(ks[0], (32, 1, 3, 40))
    p["bn_c1"] = bn(ks[1], 32)
    p["conv2_w"] = nrm(ks[2], (64, 32, 3, 3))
    p["bn_c2"] = bn(ks[3], 64)
    p["fc1e_w"] = nrm(ks[4], (600, 4608))
    p["fc1e_b"] = nrm(ks[5], (600,))
    p["fc2e_w"] = nrm(ks[6], (600, 6))
    p["fc2e_b"] = nrm(ks[7], (600,))
    p["afc1_w"] = nrm(ks[8], (512, 1200))
    p["afc1_b"] = nrm(ks[9], (512,))
    p["abn1"] = bn(ks[10], 512)
    p["afc2_w"] = nrm(ks[11], (2, 512))
    p["afc2_b"] = nrm(ks[12], (2,))
    p["act_mean"] = jnp.array([0.25, 0.0], jnp.float32)
    p["act_std"] = jnp.array([0.25, 1.0], jnp.float32)
    return p


if __name__ == "__main__":
    key = jax.random.PRNGKey(0)
    k_param, k_obs = jax.random.split(key)
    params = init_params(k_param)
    prep = prepare_params(params)        # one-time offline weight prep

    # obs = [batch, n_stack*sensor_dim + state_dim] = [2, 30*480 + 6]
    obs = jax.random.normal(k_obs, (2, 30 * 480 + 6), dtype=jnp.float32)

    fwd = jax.jit(actor_forward)
    out = jax.block_until_ready(fwd(prep, obs))
    assert out.shape == (2, 2), out.shape
    print("KERNEL_OK")
</pallas_src>

<mosaic_0001>
module attributes {stable_mosaic.version = 11 : i64} {
  func.func @_conv_kernel(%arg0: i32, %arg1: memref<1944x120xbf16, #tpu.memory_space<vmem>>, %arg2: memref<120x32xbf16, #tpu.memory_space<vmem>>, %arg3: memref<1x32xf32, #tpu.memory_space<vmem>>, %arg4: memref<1x32xf32, #tpu.memory_space<vmem>>, %arg5: memref<9x32x64xbf16, #tpu.memory_space<vmem>>, %arg6: memref<1x64xf32, #tpu.memory_space<vmem>>, %arg7: memref<1x64xf32, #tpu.memory_space<vmem>>, %arg8: memref<72x64xbf16, #tpu.memory_space<vmem>>) attributes {dimension_semantics = [#tpu.dimension_semantics<parallel>], iteration_bounds = array<i64: 2>, scalar_prefetch = 0 : i64, scratch_operands = 0 : i64, tpu.core_type = #tpu.core_type<tc>, window_params = [{transform_indices = @transform_0, window_bounds = array<i64: 1944, 120>}, {pipeline_mode = #tpu.pipeline_mode<synchronous>, transform_indices = @transform_1, window_bounds = array<i64: 120, 32>}, {pipeline_mode = #tpu.pipeline_mode<synchronous>, transform_indices = @transform_2, window_bounds = array<i64: 1, 32>}, {pipeline_mode = #tpu.pipeline_mode<synchronous>, transform_indices = @transform_3, window_bounds = array<i64: 1, 32>}, {pipeline_mode = #tpu.pipeline_mode<synchronous>, transform_indices = @transform_4, window_bounds = array<i64: 9, 32, 64>}, {pipeline_mode = #tpu.pipeline_mode<synchronous>, transform_indices = @transform_5, window_bounds = array<i64: 1, 64>}, {pipeline_mode = #tpu.pipeline_mode<synchronous>, transform_indices = @transform_6, window_bounds = array<i64: 1, 64>}, {transform_indices = @transform_7, window_bounds = array<i64: 72, 64>}]} {
    %c0 = arith.constant 0 : index
    %c0_0 = arith.constant 0 : index
    %0 = vector.load %arg1[%c0, %c0_0] : memref<1944x120xbf16, #tpu.memory_space<vmem>>, vector<1944x120xbf16>
    %c0_1 = arith.constant 0 : index
    %c0_2 = arith.constant 0 : index
    %1 = vector.load %arg2[%c0_1, %c0_2] : memref<120x32xbf16, #tpu.memory_space<vmem>>, vector<120x32xbf16>
    %cst = arith.constant dense<0.000000e+00> : vector<1944x32xf32>
    %2 = tpu.matmul %0, %1, %cst {dimension_numbers = #tpu.dot_dimension_numbers<[1], [0], [0], [1], [0, 0, 1, 1], [], []>} : vector<1944x120xbf16>, vector<120x32xbf16>, vector<1944x32xf32> -> vector<1944x32xf32>
    %c0_3 = arith.constant 0 : index
    %c0_4 = arith.constant 0 : index
    %3 = vector.load %arg3[%c0_3, %c0_4] : memref<1x32xf32, #tpu.memory_space<vmem>>, vector<1x32xf32>
    %4 = vector.broadcast %3 : vector<1x32xf32> to vector<1944x32xf32>
    %5 = arith.mulf %2, %4 : vector<1944x32xf32>
    %c0_5 = arith.constant 0 : index
    %c0_6 = arith.constant 0 : index
    %6 = vector.load %arg4[%c0_5, %c0_6] : memref<1x32xf32, #tpu.memory_space<vmem>>, vector<1x32xf32>
    %7 = vector.broadcast %6 : vector<1x32xf32> to vector<1944x32xf32>
    %8 = arith.addf %5, %7 : vector<1944x32xf32>
    %cst_7 = arith.constant 0.000000e+00 : f32
    %9 = vector.broadcast %cst_7 : f32 to vector<1944x32xf32>
    %10 = arith.maximumf %8, %9 : vector<1944x32xf32>
    %11 = vector.extract_strided_slice %10 {offsets = [0, 0], sizes = [648, 32], strides = [1, 1]} : vector<1944x32xf32> to vector<648x32xf32>
    %12 = vector.extract_strided_slice %10 {offsets = [648, 0], sizes = [648, 32], strides = [1, 1]} : vector<1944x32xf32> to vector<648x32xf32>
    %13 = arith.maximumf %11, %12 : vector<648x32xf32>
    %14 = vector.extract_strided_slice %10 {offsets = [1296, 0], sizes = [648, 32], strides = [1, 1]} : vector<1944x32xf32> to vector<648x32xf32>
    %15 = arith.maximumf %13, %14 : vector<648x32xf32>
    %cst_8 = arith.constant 0.000000e+00 : f32
    %16 = vector.broadcast %cst_8 : f32 to vector<72x64xf32>
    %17 = vector.extract_strided_slice %15 {offsets = [0, 0], sizes = [72, 32], strides = [1, 1]} : vector<648x32xf32> to vector<72x32xf32>
    %18 = arith.truncf %17 : vector<72x32xf32> to vector<72x32xbf16>
    %c0_9 = arith.constant 0 : index
    %c0_10 = arith.constant 0 : index
    %c0_11 = arith.constant 0 : index
    %19 = vector.load %arg5[%c0_9, %c0_10, %c0_11] : memref<9x32x64xbf16, #tpu.memory_space<vmem>>, vector<1x32x64xbf16>
    %20 = vector.shape_cast %19 : vector<1x32x64xbf16> to vector<32x64xbf16>
    %cst_12 = arith.constant dense<0.000000e+00> : vector<72x64xf32>
    %21 = tpu.matmul %18, %20, %cst_12 {dimension_numbers = #tpu.dot_dimension_numbers<[1], [0], [0], [1], [0, 0, 1, 1], [], []>} : vector<72x32xbf16>, vector<32x64xbf16>, vector<72x64xf32> -> vector<72x64xf32>
    %22 = arith.addf %16, %21 : vector<72x64xf32>
    %23 = vector.extract_strided_slice %15 {offsets = [72, 0], sizes = [72, 32], strides = [1, 1]} : vector<648x32xf32> to vector<72x32xf32>
    %24 = arith.truncf %23 : vector<72x32xf32> to vector<72x32xbf16>
    %c1 = arith.constant 1 : index
    %c0_13 = arith.constant 0 : index
    %c0_14 = arith.constant 0 : index
    %25 = vector.load %arg5[%c1, %c0_13, %c0_14] : memref<9x32x64xbf16, #tpu.memory_space<vmem>>, vector<1x32x64xbf16>
    %26 = vector.shape_cast %25 : vector<1x32x64xbf16> to vector<32x64xbf16>
    %cst_15 = arith.constant dense<0.000000e+00> : vector<72x64xf32>
    %27 = tpu.matmul %24, %26, %cst_15 {dimension_numbers = #tpu.dot_dimension_numbers<[1], [0], [0], [1], [0, 0, 1, 1], [], []>} : vector<72x32xbf16>, vector<32x64xbf16>, vector<72x64xf32> -> vector<72x64xf32>
    %28 = arith.addf %22, %27 : vector<72x64xf32>
    %29 = vector.extract_strided_slice %15 {offsets = [144, 0], sizes = [72, 32], strides = [1, 1]} : vector<648x32xf32> to vector<72x32xf32>
    %30 = arith.truncf %29 : vector<72x32xf32> to vector<72x32xbf16>
    %c2 = arith.constant 2 : index
    %c0_16 = arith.constant 0 : index
    %c0_17 = arith.constant 0 : index
    %31 = vector.load %arg5[%c2, %c0_16, %c0_17] : memref<9x32x64xbf16, #tpu.memory_space<vmem>>, vector<1x32x64xbf16>
    %32 = vector.shape_cast %31 : vector<1x32x64xbf16> to vector<32x64xbf16>
    %cst_18 = arith.constant dense<0.000000e+00> : vector<72x64xf32>
    %33 = tpu.matmul %30, %32, %cst_18 {dimension_numbers = #tpu.dot_dimension_numbers<[1], [0], [0], [1], [0, 0, 1, 1], [], []>} : vector<72x32xbf16>, vector<32x64xbf16>, vector<72x64xf32> -> vector<72x64xf32>
    %34 = arith.addf %28, %33 : vector<72x64xf32>
    %35 = vector.extract_strided_slice %15 {offsets = [216, 0], sizes = [72, 32], strides = [1, 1]} : vector<648x32xf32> to vector<72x32xf32>
    %36 = arith.truncf %35 : vector<72x32xf32> to vector<72x32xbf16>
    %c3 = arith.constant 3 : index
    %c0_19 = arith.constant 0 : index
    %c0_20 = arith.constant 0 : index
    %37 = vector.load %arg5[%c3, %c0_19, %c0_20] : memref<9x32x64xbf16, #tpu.memory_space<vmem>>, vector<1x32x64xbf16>
    %38 = vector.shape_cast %37 : vector<1x32x64xbf16> to vector<32x64xbf16>
    %cst_21 = arith.constant dense<0.000000e+00> : vector<72x64xf32>
    %39 = tpu.matmul %36, %38, %cst_21 {dimension_numbers = #tpu.dot_dimension_numbers<[1], [0], [0], [1], [0, 0, 1, 1], [], []>} : vector<72x32xbf16>, vector<32x64xbf16>, vector<72x64xf32> -> vector<72x64xf32>
    %40 = arith.addf %34, %39 : vector<72x64xf32>
    %41 = vector.extract_strided_slice %15 {offsets = [288, 0], sizes = [72, 32], strides = [1, 1]} : vector<648x32xf32> to vector<72x32xf32>
    %42 = arith.truncf %41 : vector<72x32xf32> to vector<72x32xbf16>
    %c4 = arith.constant 4 : index
    %c0_22 = arith.constant 0 : index
    %c0_23 = arith.constant 0 : index
    %43 = vector.load %arg5[%c4, %c0_22, %c0_23] : memref<9x32x64xbf16, #tpu.memory_space<vmem>>, vector<1x32x64xbf16>
    %44 = vector.shape_cast %43 : vector<1x32x64xbf16> to vector<32x64xbf16>
    %cst_24 = arith.constant dense<0.000000e+00> : vector<72x64xf32>
    %45 = tpu.matmul %42, %44, %cst_24 {dimension_numbers = #tpu.dot_dimension_numbers<[1], [0], [0], [1], [0, 0, 1, 1], [], []>} : vector<72x32xbf16>, vector<32x64xbf16>, vector<72x64xf32> -> vector<72x64xf32>
    %46 = arith.addf %40, %45 : vector<72x64xf32>
    %47 = vector.extract_strided_slice %15 {offsets = [360, 0], sizes = [72, 32], strides = [1, 1]} : vector<648x32xf32> to vector<72x32xf32>
    %48 = arith.truncf %47 : vector<72x32xf32> to vector<72x32xbf16>
    %c5 = arith.constant 5 : index
    %c0_25 = arith.constant 0 : index
    %c0_26 = arith.constant 0 : index
    %49 = vector.load %arg5[%c5, %c0_25, %c0_26] : memref<9x32x64xbf16, #tpu.memory_space<vmem>>, vector<1x32x64xbf16>
    %50 = vector.shape_cast %49 : vector<1x32x64xbf16> to vector<32x64xbf16>
    %cst_27 = arith.constant dense<0.000000e+00> : vector<72x64xf32>
    %51 = tpu.matmul %48, %50, %cst_27 {dimension_numbers = #tpu.dot_dimension_numbers<[1], [0], [0], [1], [0, 0, 1, 1], [], []>} : vector<72x32xbf16>, vector<32x64xbf16>, vector<72x64xf32> -> vector<72x64xf32>
    %52 = arith.addf %46, %51 : vector<72x64xf32>
    %53 = vector.extract_strided_slice %15 {offsets = [432, 0], sizes = [72, 32], strides = [1, 1]} : vector<648x32xf32> to vector<72x32xf32>
    %54 = arith.truncf %53 : vector<72x32xf32> to vector<72x32xbf16>
    %c6 = arith.constant 6 : index
    %c0_28 = arith.constant 0 : index
    %c0_29 = arith.constant 0 : index
    %55 = vector.load %arg5[%c6, %c0_28, %c0_29] : memref<9x32x64xbf16, #tpu.memory_space<vmem>>, vector<1x32x64xbf16>
    %56 = vector.shape_cast %55 : vector<1x32x64xbf16> to vector<32x64xbf16>
    %cst_30 = arith.constant dense<0.000000e+00> : vector<72x64xf32>
    %57 = tpu.matmul %54, %56, %cst_30 {dimension_numbers = #tpu.dot_dimension_numbers<[1], [0], [0], [1], [0, 0, 1, 1], [], []>} : vector<72x32xbf16>, vector<32x64xbf16>, vector<72x64xf32> -> vector<72x64xf32>
    %58 = arith.addf %52, %57 : vector<72x64xf32>
    %59 = vector.extract_strided_slice %15 {offsets = [504, 0], sizes = [72, 32], strides = [1, 1]} : vector<648x32xf32> to vector<72x32xf32>
    %60 = arith.truncf %59 : vector<72x32xf32> to vector<72x32xbf16>
    %c7 = arith.constant 7 : index
    %c0_31 = arith.constant 0 : index
    %c0_32 = arith.constant 0 : index
    %61 = vector.load %arg5[%c7, %c0_31, %c0_32] : memref<9x32x64xbf16, #tpu.memory_space<vmem>>, vector<1x32x64xbf16>
    %62 = vector.shape_cast %61 : vector<1x32x64xbf16> to vector<32x64xbf16>
    %cst_33 = arith.constant dense<0.000000e+00> : vector<72x64xf32>
    %63 = tpu.matmul %60, %62, %cst_33 {dimension_numbers = #tpu.dot_dimension_numbers<[1], [0], [0], [1], [0, 0, 1, 1], [], []>} : vector<72x32xbf16>, vector<32x64xbf16>, vector<72x64xf32> -> vector<72x64xf32>
    %64 = arith.addf %58, %63 : vector<72x64xf32>
    %65 = vector.extract_strided_slice %15 {offsets = [576, 0], sizes = [72, 32], strides = [1, 1]} : vector<648x32xf32> to vector<72x32xf32>
    %66 = arith.truncf %65 : vector<72x32xf32> to vector<72x32xbf16>
    %c8 = arith.constant 8 : index
    %c0_34 = arith.constant 0 : index
    %c0_35 = arith.constant 0 : index
    %67 = vector.load %arg5[%c8, %c0_34, %c0_35] : memref<9x32x64xbf16, #tpu.memory_space<vmem>>, vector<1x32x64xbf16>
    %68 = vector.shape_cast %67 : vector<1x32x64xbf16> to vector<32x64xbf16>
    %cst_36 = arith.constant dense<0.000000e+00> : vector<72x64xf32>
    %69 = tpu.matmul %66, %68, %cst_36 {dimension_numbers = #tpu.dot_dimension_numbers<[1], [0], [0], [1], [0, 0, 1, 1], [], []>} : vector<72x32xbf16>, vector<32x64xbf16>, vector<72x64xf32> -> vector<72x64xf32>
    %70 = arith.addf %64, %69 : vector<72x64xf32>
    %c0_37 = arith.constant 0 : index
    %c0_38 = arith.constant 0 : index
    %71 = vector.load %arg6[%c0_37, %c0_38] : memref<1x64xf32, #tpu.memory_space<vmem>>, vector<1x64xf32>
    %72 = vector.broadcast %71 : vector<1x64xf32> to vector<72x64xf32>
    %73 = arith.mulf %70, %72 : vector<72x64xf32>
    %c0_39 = arith.constant 0 : index
    %c0_40 = arith.constant 0 : index
    %74 = vector.load %arg7[%c0_39, %c0_40] : memref<1x64xf32, #tpu.memory_space<vmem>>, vector<1x64xf32>
    %75 = vector.broadcast %74 : vector<1x64xf32> to vector<72x64xf32>
    %76 = arith.addf %73, %75 : vector<72x64xf32>
    %cst_41 = arith.constant 0.000000e+00 : f32
    %77 = vector.broadcast %cst_41 : f32 to vector<72x64xf32>
    %78 = arith.maximumf %76, %77 : vector<72x64xf32>
    %79 = arith.truncf %78 : vector<72x64xf32> to vector<72x64xbf16>
    %c0_42 = arith.constant 0 : index
    %c0_43 = arith.constant 0 : index
    %80 = vector.load %arg8[%c0_42, %c0_43] : memref<72x64xbf16, #tpu.memory_space<vmem>>, vector<72x64xbf16>
    tpu.vector_store %arg8[%c0_42, %c0_43], %79 {strides = array<i32>} : memref<72x64xbf16, #tpu.memory_space<vmem>>, vector<72x64xbf16>,
    return
  }
  func.func @transform_0(%arg0: i32) -> (i32, i32) {
    %c0_i32 = arith.constant 0 : i32
    %c0_i32_0 = arith.constant 0 : i32
    return %arg0, %c0_i32 : i32, i32
  }
  func.func @transform_1(%arg0: i32) -> (i32, i32) {
    %c0_i32 = arith.constant 0 : i32
    %c0_i32_0 = arith.constant 0 : i32
    %c0_i32_1 = arith.constant 0 : i32
    return %c0_i32, %c0_i32_0 : i32, i32
  }
  func.func @transform_2(%arg0: i32) -> (i32, i32) {
    %c0_i32 = arith.constant 0 : i32
    %c0_i32_0 = arith.constant 0 : i32
    %c0_i32_1 = arith.constant 0 : i32
    return %c0_i32, %c0_i32_0 : i32, i32
  }
  func.func @transform_3(%arg0: i32) -> (i32, i32) {
    %c0_i32 = arith.constant 0 : i32
    %c0_i32_0 = arith.constant 0 : i32
    %c0_i32_1 = arith.constant 0 : i32
    return %c0_i32, %c0_i32_0 : i32, i32
  }
  func.func @transform_4(%arg0: i32) -> (i32, i32, i32) {
    %c0_i32 = arith.constant 0 : i32
    %c0_i32_0 = arith.constant 0 : i32
    %c0_i32_1 = arith.constant 0 : i32
    %c0_i32_2 = arith.constant 0 : i32
    return %c0_i32, %c0_i32_0, %c0_i32_1 : i32, i32, i32
  }
  func.func @transform_5(%arg0: i32) -> (i32, i32) {
    %c0_i32 = arith.constant 0 : i32
    %c0_i32_0 = arith.constant 0 : i32
    %c0_i32_1 = arith.constant 0 : i32
    return %c0_i32, %c0_i32_0 : i32, i32
  }
  func.func @transform_6(%arg0: i32) -> (i32, i32) {
    %c0_i32 = arith.constant 0 : i32
    %c0_i32_0 = arith.constant 0 : i32
    %c0_i32_1 = arith.constant 0 : i32
    return %c0_i32, %c0_i32_0 : i32, i32
  }
  func.func @transform_7(%arg0: i32) -> (i32, i32) {
    %c0_i32 = arith.constant 0 : i32
    %c0_i32_0 = arith.constant 0 : i32
    return %arg0, %c0_i32 : i32, i32
  }
}

module attributes {stable_mosaic.version = 11 : i64} {
  func.func @_fc_kernel(%arg0: i32, %arg1: memref<2x512xbf16, #tpu.memory_space<vmem>>, %arg2: memref<2x6xf32, #tpu.memory_space<vmem>>, %arg3: memref<512x600xbf16, #tpu.memory_space<vmem>>, %arg4: memref<1x600xf32, #tpu.memory_space<vmem>>, %arg5: memref<6x600xf32, #tpu.memory_space<vmem>>, %arg6: memref<1x600xf32, #tpu.memory_space<vmem>>, %arg7: memref<600x512xbf16, #tpu.memory_space<vmem>>, %arg8: memref<600x512xbf16, #tpu.memory_space<vmem>>, %arg9: memref<1x512xf32, #tpu.memory_space<vmem>>, %arg10: memref<1x512xf32, #tpu.memory_space<vmem>>, %arg11: memref<512x2xf32, #tpu.memory_space<vmem>>, %arg12: memref<1x2xf32, #tpu.memory_space<vmem>>, %arg13: memref<1x2xf32, #tpu.memory_space<vmem>>, %arg14: memref<1x2xf32, #tpu.memory_space<vmem>>, %arg15: memref<2x2xf32, #tpu.memory_space<vmem>>, %arg16: memref<2x600xf32, #tpu.memory_space<vmem>>) attributes {dimension_semantics = [#tpu.dimension_semantics<arbitrary>], iteration_bounds = array<i64: 9>, scalar_prefetch = 0 : i64, scratch_operands = 1 : i64, tpu.core_type = #tpu.core_type<tc>, window_params = [{transform_indices = @transform_0, window_bounds = array<i64: 2, 512>}, {pipeline_mode = #tpu.pipeline_mode<synchronous>, transform_indices = @transform_1, window_bounds = array<i64: 2, 6>}, {transform_indices = @transform_2, window_bounds = array<i64: 512, 600>}, {pipeline_mode = #tpu.pipeline_mode<synchronous>, transform_indices = @transform_3, window_bounds = array<i64: 1, 600>}, {pipeline_mode = #tpu.pipeline_mode<synchronous>, transform_indices = @transform_4, window_bounds = array<i64: 6, 600>}, {pipeline_mode = #tpu.pipeline_mode<synchronous>, transform_indices = @transform_5, window_bounds = array<i64: 1, 600>}, {pipeline_mode = #tpu.pipeline_mode<synchronous>, transform_indices = @transform_6, window_bounds = array<i64: 600, 512>}, {pipeline_mode = #tpu.pipeline_mode<synchronous>, transform_indices = @transform_7, window_bounds = array<i64: 600, 512>}, {pipeline_mode = #tpu.pipeline_mode<synchronous>, transform_indices = @transform_8, window_bounds = array<i64: 1, 512>}, {pipeline_mode = #tpu.pipeline_mode<synchronous>, transform_indices = @transform_9, window_bounds = array<i64: 1, 512>}, {pipeline_mode = #tpu.pipeline_mode<synchronous>, transform_indices = @transform_10, window_bounds = array<i64: 512, 2>}, {pipeline_mode = #tpu.pipeline_mode<synchronous>, transform_indices = @transform_11, window_bounds = array<i64: 1, 2>}, {pipeline_mode = #tpu.pipeline_mode<synchronous>, transform_indices = @transform_12, window_bounds = array<i64: 1, 2>}, {pipeline_mode = #tpu.pipeline_mode<synchronous>, transform_indices = @transform_13, window_bounds = array<i64: 1, 2>}, {pipeline_mode = #tpu.pipeline_mode<synchronous>, transform_indices = @transform_14, window_bounds = array<i64: 2, 2>}]} {
    %c0_i32 = arith.constant 0 : i32
    %0 = arith.cmpi eq, %arg0, %c0_i32 : i32
    %1 = arith.extui %0 : i1 to i32
    %c0_i32_0 = arith.constant 0 : i32
    %2 = arith.cmpi ne, %1, %c0_i32_0 : i32
    scf.if %2 {
      %cst_9 = arith.constant 0.000000e+00 : f32
      %12 = vector.broadcast %cst_9 : f32 to vector<2x600xf32>
      %c0_10 = arith.constant 0 : index
      %c0_11 = arith.constant 0 : index
      %13 = vector.load %arg16[%c0_10, %c0_11] : memref<2x600xf32, #tpu.memory_space<vmem>>, vector<2x600xf32>
      tpu.vector_store %arg16[%c0_10, %c0_11], %12 {strides = array<i32>} : memref<2x600xf32, #tpu.memory_space<vmem>>, vector<2x600xf32>,
    } else {
    }
    %c0 = arith.constant 0 : index
    %c0_1 = arith.constant 0 : index
    %3 = vector.load %arg16[%c0, %c0_1] : memref<2x600xf32, #tpu.memory_space<vmem>>, vector<2x600xf32>
    %c0_2 = arith.constant 0 : index
    %c0_3 = arith.constant 0 : index
    %4 = vector.load %arg1[%c0_2, %c0_3] : memref<2x512xbf16, #tpu.memory_space<vmem>>, vector<2x512xbf16>
    %c0_4 = arith.constant 0 : index
    %c0_5 = arith.constant 0 : index
    %5 = vector.load %arg3[%c0_4, %c0_5] : memref<512x600xbf16, #tpu.memory_space<vmem>>, vector<512x600xbf16>
    %cst = arith.constant dense<0.000000e+00> : vector<2x600xf32>
    %6 = tpu.matmul %4, %5, %cst {dimension_numbers = #tpu.dot_dimension_numbers<[1], [0], [0], [1], [0, 0, 1, 1], [], []>} : vector<2x512xbf16>, vector<512x600xbf16>, vector<2x600xf32> -> vector<2x600xf32>
    %7 = arith.addf %3, %6 : vector<2x600xf32>
    %c0_6 = arith.constant 0 : index
    %c0_7 = arith.constant 0 : index
    %8 = vector.load %arg16[%c0_6, %c0_7] : memref<2x600xf32, #tpu.memory_space<vmem>>, vector<2x600xf32>
    tpu.vector_store %arg16[%c0_6, %c0_7], %7 {strides = array<i32>} : memref<2x600xf32, #tpu.memory_space<vmem>>, vector<2x600xf32>,
    %c8_i32 = arith.constant 8 : i32
    %9 = arith.cmpi eq, %arg0, %c8_i32 : i32
    %10 = arith.extui %9 : i1 to i32
    %c0_i32_8 = arith.constant 0 : i32
    %11 = arith.cmpi ne, %10, %c0_i32_8 : i32
    scf.if %11 {
      %c0_9 = arith.constant 0 : index
      %c0_10 = arith.constant 0 : index
      %12 = vector.load %arg16[%c0_9, %c0_10] : memref<2x600xf32, #tpu.memory_space<vmem>>, vector<2x600xf32>
      %c0_11 = arith.constant 0 : index
      %c0_12 = arith.constant 0 : index
      %13 = vector.load %arg4[%c0_11, %c0_12] : memref<1x600xf32, #tpu.memory_space<vmem>>, vector<1x600xf32>
      %14 = vector.broadcast %13 : vector<1x600xf32> to vector<2x600xf32>
      %15 = arith.addf %12, %14 : vector<2x600xf32>
      %cst_13 = arith.constant 0.000000e+00 : f32
      %16 = vector.broadcast %cst_13 : f32 to vector<2x600xf32>
      %17 = arith.maximumf %15, %16 : vector<2x600xf32>
      %c0_14 = arith.constant 0 : index
      %c0_15 = arith.constant 0 : index
      %18 = vector.load %arg2[%c0_14, %c0_15] : memref<2x6xf32, #tpu.memory_space<vmem>>, vector<2x6xf32>
      %c0_16 = arith.constant 0 : index
      %c0_17 = arith.constant 0 : index
      %19 = vector.load %arg5[%c0_16, %c0_17] : memref<6x600xf32, #tpu.memory_space<vmem>>, vector<6x600xf32>
      %cst_18 = arith.constant dense<0.000000e+00> : vector<2x600xf32>
      %20 = tpu.matmul %18, %19, %cst_18 {dimension_numbers = #tpu.dot_dimension_numbers<[1], [0], [0], [1], [0, 0, 1, 1], [], []>} : vector<2x6xf32>, vector<6x600xf32>, vector<2x600xf32> -> vector<2x600xf32>
      %c0_19 = arith.constant 0 : index
      %c0_20 = arith.constant 0 : index
      %21 = vector.load %arg6[%c0_19, %c0_20] : memref<1x600xf32, #tpu.memory_space<vmem>>, vector<1x600xf32>
      %22 = vector.broadcast %21 : vector<1x600xf32> to vector<2x600xf32>
      %23 = arith.addf %20, %22 : vector<2x600xf32>
      %cst_21 = arith.constant 0.000000e+00 : f32
      %24 = vector.broadcast %cst_21 : f32 to vector<2x600xf32>
      %25 = arith.maximumf %23, %24 : vector<2x600xf32>
      %26 = arith.truncf %17 : vector<2x600xf32> to vector<2x600xbf16>
      %c0_22 = arith.constant 0 : index
      %c0_23 = arith.constant 0 : index
      %27 = vector.load %arg7[%c0_22, %c0_23] : memref<600x512xbf16, #tpu.memory_space<vmem>>, vector<600x512xbf16>
      %cst_24 = arith.constant dense<0.000000e+00> : vector<2x512xf32>
      %28 = tpu.matmul %26, %27, %cst_24 {dimension_numbers = #tpu.dot_dimension_numbers<[1], [0], [0], [1], [0, 0, 1, 1], [], []>} : vector<2x600xbf16>, vector<600x512xbf16>, vector<2x512xf32> -> vector<2x512xf32>
      %29 = arith.truncf %25 : vector<2x600xf32> to vector<2x600xbf16>
      %c0_25 = arith.constant 0 : index
      %c0_26 = arith.constant 0 : index
      %30 = vector.load %arg8[%c0_25, %c0_26] : memref<600x512xbf16, #tpu.memory_space<vmem>>, vector<600x512xbf16>
      %cst_27 = arith.constant dense<0.000000e+00> : vector<2x512xf32>
      %31 = tpu.matmul %29, %30, %cst_27 {dimension_numbers = #tpu.dot_dimension_numbers<[1], [0], [0], [1], [0, 0, 1, 1], [], []>} : vector<2x600xbf16>, vector<600x512xbf16>, vector<2x512xf32> -> vector<2x512xf32>
      %32 = arith.addf %28, %31 : vector<2x512xf32>
      %c0_28 = arith.constant 0 : index
      %c0_29 = arith.constant 0 : index
      %33 = vector.load %arg9[%c0_28, %c0_29] : memref<1x512xf32, #tpu.memory_space<vmem>>, vector<1x512xf32>
      %34 = vector.broadcast %33 : vector<1x512xf32> to vector<2x512xf32>
      %35 = arith.mulf %32, %34 : vector<2x512xf32>
      %c0_30 = arith.constant 0 : index
      %c0_31 = arith.constant 0 : index
      %36 = vector.load %arg10[%c0_30, %c0_31] : memref<1x512xf32, #tpu.memory_space<vmem>>, vector<1x512xf32>
      %37 = vector.broadcast %36 : vector<1x512xf32> to vector<2x512xf32>
      %38 = arith.addf %35, %37 : vector<2x512xf32>
      %cst_32 = arith.constant 0.000000e+00 : f32
      %39 = vector.broadcast %cst_32 : f32 to vector<2x512xf32>
      %40 = arith.maximumf %38, %39 : vector<2x512xf32>
      %c0_33 = arith.constant 0 : index
      %c0_34 = arith.constant 0 : index
      %41 = vector.load %arg11[%c0_33, %c0_34] : memref<512x2xf32, #tpu.memory_space<vmem>>, vector<512x2xf32>
      %cst_35 = arith.constant dense<0.000000e+00> : vector<2x2xf32>
      %42 = tpu.matmul %40, %41, %cst_35 {dimension_numbers = #tpu.dot_dimension_numbers<[1], [0], [0], [1], [0, 0, 1, 1], [], []>} : vector<2x512xf32>, vector<512x2xf32>, vector<2x2xf32> -> vector<2x2xf32>
      %c0_36 = arith.constant 0 : index
      %c0_37 = arith.constant 0 : index
      %43 = vector.load %arg12[%c0_36, %c0_37] : memref<1x2xf32, #tpu.memory_space<vmem>>, vector<1x2xf32>
      %44 = vector.broadcast %43 : vector<1x2xf32> to vector<2x2xf32>
      %45 = arith.addf %42, %44 : vector<2x2xf32>
      %c0_38 = arith.constant 0 : index
      %c0_39 = arith.constant 0 : index
      %46 = vector.load %arg13[%c0_38, %c0_39] : memref<1x2xf32, #tpu.memory_space<vmem>>, vector<1x2xf32>
      %47 = math.tanh %45 : vector<2x2xf32>
      %48 = vector.broadcast %46 : vector<1x2xf32> to vector<2x2xf32>
      %49 = arith.mulf %48, %47 : vector<2x2xf32>
      %c0_40 = arith.constant 0 : index
      %c0_41 = arith.constant 0 : index
      %50 = vector.load %arg14[%c0_40, %c0_41] : memref<1x2xf32, #tpu.memory_space<vmem>>, vector<1x2xf32>
      %51 = vector.broadcast %50 : vector<1x2xf32> to vector<2x2xf32>
      %52 = arith.addf %49, %51 : vector<2x2xf32>
      %c0_42 = arith.constant 0 : index
      %c0_43 = arith.constant 0 : index
      %53 = vector.load %arg15[%c0_42, %c0_43] : memref<2x2xf32, #tpu.memory_space<vmem>>, vector<2x2xf32>
      tpu.vector_store %arg15[%c0_42, %c0_43], %52 {strides = array<i32>} : memref<2x2xf32, #tpu.memory_space<vmem>>, vector<2x2xf32>,
    } else {
    }
    return
  }
  func.func @transform_0(%arg0: i32) -> (i32, i32) {
    %c0_i32 = arith.constant 0 : i32
    %c0_i32_0 = arith.constant 0 : i32
    return %c0_i32, %arg0 : i32, i32
  }
  func.func @transform_1(%arg0: i32) -> (i32, i32) {
    %c0_i32 = arith.constant 0 : i32
    %c0_i32_0 = arith.constant 0 : i32
    %c0_i32_1 = arith.constant 0 : i32
    return %c0_i32, %c0_i32_0 : i32, i32
  }
  func.func @transform_2(%arg0: i32) -> (i32, i32) {
    %c0_i32 = arith.constant 0 : i32
    %c0_i32_0 = arith.constant 0 : i32
    return %arg0, %c0_i32 : i32, i32
  }
  func.func @transform_3(%arg0: i32) -> (i32, i32) {
    %c0_i32 = arith.constant 0 : i32
    %c0_i32_0 = arith.constant 0 : i32
    %c0_i32_1 = arith.constant 0 : i32
    return %c0_i32, %c0_i32_0 : i32, i32
  }
  func.func @transform_4(%arg0: i32) -> (i32, i32) {
    %c0_i32 = arith.constant 0 : i32
    %c0_i32_0 = arith.constant 0 : i32
    %c0_i32_1 = arith.constant 0 : i32
    return %c0_i32, %c0_i32_0 : i32, i32
  }
  func.func @transform_5(%arg0: i32) -> (i32, i32) {
    %c0_i32 = arith.constant 0 : i32
    %c0_i32_0 = arith.constant 0 : i32
    %c0_i32_1 = arith.constant 0 : i32
    return %c0_i32, %c0_i32_0 : i32, i32
  }
  func.func @transform_6(%arg0: i32) -> (i32, i32) {
    %c0_i32 = arith.constant 0 : i32
    %c0_i32_0 = arith.constant 0 : i32
    %c0_i32_1 = arith.constant 0 : i32
    return %c0_i32, %c0_i32_0 : i32, i32
  }
  func.func @transform_7(%arg0: i32) -> (i32, i32) {
    %c0_i32 = arith.constant 0 : i32
    %c0_i32_0 = arith.constant 0 : i32
    %c0_i32_1 = arith.constant 0 : i32
    return %c0_i32, %c0_i32_0 : i32, i32
  }
  func.func @transform_8(%arg0: i32) -> (i32, i32) {
    %c0_i32 = arith.constant 0 : i32
    %c0_i32_0 = arith.constant 0 : i32
    %c0_i32_1 = arith.constant 0 : i32
    return %c0_i32, %c0_i32_0 : i32, i32
  }
  func.func @transform_9(%arg0: i32) -> (i32, i32) {
    %c0_i32 = arith.constant 0 : i32
    %c0_i32_0 = arith.constant 0 : i32
    %c0_i32_1 = arith.constant 0 : i32
    return %c0_i32, %c0_i32_0 : i32, i32
  }
  func.func @transform_10(%arg0: i32) -> (i32, i32) {
    %c0_i32 = arith.constant 0 : i32
    %c0_i32_0 = arith.constant 0 : i32
    %c0_i32_1 = arith.constant 0 : i32
    return %c0_i32, %c0_i32_0 : i32, i32
  }
  func.func @transform_11(%arg0: i32) -> (i32, i32) {
    %c0_i32 = arith.constant 0 : i32
    %c0_i32_0 = arith.constant 0 : i32
    %c0_i32_1 = arith.constant 0 : i32
    return %c0_i32, %c0_i32_0 : i32, i32
  }
  func.func @transform_12(%arg0: i32) -> (i32, i32) {
    %c0_i32 = arith.constant 0 : i32
    %c0_i32_0 = arith.constant 0 : i32
    %c0_i32_1 = arith.constant 0 : i32
    return %c0_i32, %c0_i32_0 : i32, i32
  }
  func.func @transform_13(%arg0: i32) -> (i32, i32) {
    %c0_i32 = arith.constant 0 : i32
    %c0_i32_0 = arith.constant 0 : i32
    %c0_i32_1 = arith.constant 0 : i32
    return %c0_i32, %c0_i32_0 : i32, i32
  }
  func.func @transform_14(%arg0: i32) -> (i32, i32) {
    %c0_i32 = arith.constant 0 : i32
    %c0_i32_0 = arith.constant 0 : i32
    %c0_i32_1 = arith.constant 0 : i32
    return %c0_i32, %c0_i32_0 : i32, i32
  }
}

</mosaic_0001>

<bundles_post_ra>
// kernel: actor_forward.2
= control target key start
LH: loop header
LB: loop body
LE: loop exit
PB: predicated region body
PF: predicated region fallthrough
CT: control target
= control target key end

     0   :  { %s6103_s24 = smov 0   ;;  %s8416_s0 = inlined_call_operand.vmem [shape: bf16[3888,120], index: 0, kind: input, shape index: {}]   ;;  %s8417_s1 = inlined_call_operand.vmem [shape: bf16[120,32], index: 1, kind: input, shape index: {}]   ;;  %s8418_s2 = inlined_call_operand.vmem [shape: f32[1,32], index: 2, kind: input, shape index: {}]   ;;  %s8419_s3 = inlined_call_operand.vmem [shape: f32[1,32], index: 3, kind: input, shape index: {}]   ;;  %s8420_s4 = inlined_call_operand.vmem [shape: bf16[9,32,64], index: 4, kind: input, shape index: {}]   ;;  %s8421_s5 = inlined_call_operand.vmem [shape: f32[1,64], index: 5, kind: input, shape index: {}]   ;;  %s8422_s6 = inlined_call_operand.vmem [shape: f32[1,64], index: 6, kind: input, shape index: {}]   ;;  %s8423_s7 = inlined_call_operand.vmem [shape: bf16[144,64], index: 7, kind: output, shape index: {}]  }
   0x1 LB: > { %s4666_s25 = sadd.s32 4294967295, %s6059_s24   ;;  %p4670_p0 = scmp.ge.s32.totalorder %s6059_s24, 1  ;;  %s6059_s24 = sphi %s6103_s24, %s17_s24  }
   0x2   : > { %p238_p1 = scmp.lt.s32.totalorder %s6059_s24, 3 }
   0x4   : > { %p239_p2 = pnand %p4670_p0, %p238_p1 }
   0x6   : > { %242 = sbr.rel (%p239_p2) target bundleno = 1186 (0x4a2), region = 48 }
   0xd   : > { %v5901_v0 = vld [vmem:[%s8417_s1] sm:$0xff]   ;;  %v5902_v1 = vld [vmem:[%s8417_s1 + $0x8] sm:$0xff]   ;;  %s270_s30 = smul.u32 243, %s4666_s25  ;;  %v5903_v2 = vld [vmem:[%s8417_s1 + $0x10] sm:$0xff]   ;;  %vm1194_vm0 = vcmask 982016   ;;  %vm1561_vm1 = vcmask 1043456  }
   0xe   : > { %5237 = vmatprep.subr.bf16.mxu0 %v5901_v0  ;;  %5713 = vmatprep.subr.bf16.mxu1 %v5901_v0  ;;  %v5904_v3 = vld [vmem:[%s8417_s1 + $0x18] sm:$0xff]   ;;  %v5905_v5 = vld [vmem:[%s8417_s1 + $0x20] sm:$0xff]   ;;  %v5906_v6 = vld [vmem:[%s8417_s1 + $0x28] sm:$0xff]   ;;  %vm6062_vm2 = vmmov 0   ;;  %vm3509_vm3 = vcmask 261120   ;;  %s276_s9 = smul.u32 9, %s4666_s25 }
   0xf   : > { %5238 = vmatpush3.bf16.msra.mxu0 %v5901_v0  ;;  %p271_p3 = scmp.lt.s32.totalorder %s270_s30, 485  ;;  %5721 = vmatpush3.bf16.msra.mxu1 %v5901_v0  ;;  %v5907_v7 = vld [vmem:[%s8417_s1 + $0x30] sm:$0xff]   ;;  %v5908_v8 = vld [vmem:[%s8417_s1 + $0x38] ss:$0 sps:$4 sm:$0xff]   ;;  %vm4600_vm4 = vcmask 519168  }
  0x10   : > { %5239 = vmatprep.subr.bf16.mxu0 %v5902_v1  ;;  %5714 = vmatprep.subr.bf16.mxu1 %v5902_v1  ;;  %v1563_v9 = vsel %vm1561_vm1, %v5908_v8, 0  ;;  %p277_p4 = scmp.lt.s32.totalorder %s276_s9, 17 }
  0x11   : > { %s8806_s30 = smov (!%p271_p3, %s270_s30), 485 }
  0x12   : > { %s4671_s12 = sshll.u32 %s8806_s30, 2  ;;  %s8808_s9 = smov (!%p277_p4, %s276_s9), 17 }
  0x13   : > { %5240 = vmatpush3.bf16.msra.mxu0 %v5902_v1  ;;  %5722 = vmatpush3.bf16.msra.mxu1 %v5902_v1  ;;  %s6128_s15 = scalar_lea.vmem %s8416_s0, %s4671_s12  ;;  %s4672_s14 = sshll.u32 %s8808_s9, 2 }
  0x14   : > { %5241 = vmatprep.subr.bf16.mxu0 %v5903_v2  ;;  %5715 = vmatprep.subr.bf16.mxu1 %v5903_v2  ;;  %v5909_v4 = vld [vmem:[%s6128_s15] sm:$0xff]   ;;  %v5910_v10 = vld [vmem:[%s6128_s15 + $0x8] sm:$0xff]   ;;  %v5911_v11 = vld [vmem:[%s6128_s15 + $0x10] sm:$0xff]   ;;  %s8386_s16 = scalar_lea.vmem %s8423_s7, %s4672_s14 }
  0x15   : > { %5253 = vmatprep.mubr.msk.bf16.mxu0 %vm1194_vm0, %v5909_v4  ;;  %v5912_v12 = vld [vmem:[%s6128_s15 + $0x18] sm:$0xff]   ;;  %v5913_v13 = vld [vmem:[%s6128_s15 + $0x20] sm:$0xff]   ;;  %v5914_v14 = vld [vmem:[%s6128_s15 + $0x28] sm:$0xff]  }
  0x16   : > { %v5915_v15 = vld [vmem:[%s6128_s15 + $0x30] sm:$0xff]   ;;  %v5916_v16 = vld [vmem:[%s6128_s15 + $0x38] sm:$0xff]   ;;  %v5917_v17 = vld [vmem:[%s6128_s15 + $0x40] sm:$0xff]  }
  0x17   : > { %5242 = vmatpush3.bf16.msra.mxu0 %v5903_v2  ;;  %5723 = vmatpush3.bf16.msra.mxu1 %v5903_v2  ;;  %v5918_v18 = vld [vmem:[%s6128_s15 + $0x48] sm:$0xff]   ;;  %v5919_v19 = vld [vmem:[%s6128_s15 + $0x50] sm:$0xff]   ;;  %v5920_v20 = vld [vmem:[%s6128_s15 + $0x58] sm:$0xff]  }
  0x18   : > { %5243 = vmatprep.subr.bf16.mxu0 %v5904_v3  ;;  %5716 = vmatprep.subr.bf16.mxu1 %v5904_v3  ;;  %v5921_v21 = vld [vmem:[%s6128_s15 + $0x60] sm:$0xff]   ;;  %v5922_v22 = vld [vmem:[%s6128_s15 + $0x68] sm:$0xff]   ;;  %v5923_v23 = vld [vmem:[%s6128_s15 + $0x70] sm:$0xff]  }
  0x19   : > { %v5924_v24 = vld [vmem:[%s6128_s15 + $0x78] sm:$0xff]   ;;  %v5925_v25 = vld [vmem:[%s6128_s15 + $0x80] sm:$0xff]   ;;  %v5926_v26 = vld [vmem:[%s6128_s15 + $0x88] sm:$0xff]  }
  0x1a   : > { %v5927_v27 = vld [vmem:[%s6128_s15 + $0x90] sm:$0xff]   ;;  %v5928_v28 = vld [vmem:[%s6128_s15 + $0x98] sm:$0xff]   ;;  %v5929_v29 = vld [vmem:[%s6128_s15 + $0xa0] sm:$0xff]  }
  0x1b   : > { %5244 = vmatpush3.bf16.msra.mxu0 %v5904_v3  ;;  %5724 = vmatpush3.bf16.msra.mxu1 %v5904_v3  ;;  %v5930_v30 = vld [vmem:[%s6128_s15 + $0xa8] sm:$0xff]   ;;  %v5931_v31 = vld [vmem:[%s6128_s15 + $0xb0] sm:$0xff]   ;;  %v5932_v32 = vld [vmem:[%s6128_s15 + $0xb8] sm:$0xff]  }
  0x1c   : > { %5245 = vmatprep.subr.bf16.mxu0 %v5905_v5  ;;  %5717 = vmatprep.subr.bf16.mxu1 %v5905_v5  ;;  %v5933_v33 = vld [vmem:[%s6128_s15 + $0xc0] sm:$0xff]   ;;  %v5934_v34 = vld [vmem:[%s6128_s15 + $0xc8] sm:$0xff]   ;;  %v5935_v35 = vld [vmem:[%s6128_s15 + $0xd0] sm:$0xff]  }
  0x1d   : > { %v5936_v36 = vld [vmem:[%s6128_s15 + $0xd8] sm:$0xff]   ;;  %v5937_v37 = vld [vmem:[%s6128_s15 + $0xe0] sm:$0xff]   ;;  %v5938_v38 = vld [vmem:[%s6128_s15 + $0xe8] sm:$0xff]  }
  0x1e   : > { %v5939_v39 = vld [vmem:[%s6128_s15 + $0xf0] sm:$0xff]   ;;  %v5940_v40 = vld [vmem:[%s6128_s15 + $0xf8] sm:$0xff]   ;;  %v5941_v41 = vld [vmem:[%s6128_s15 + $0x100] sm:$0xff]  }
  0x1f   : > { %5246 = vmatpush3.bf16.msra.mxu0 %v5905_v5  ;;  %5725 = vmatpush3.bf16.msra.mxu1 %v5905_v5  ;;  %v5942_v42 = vld [vmem:[%s6128_s15 + $0x108] sm:$0xff]   ;;  %v5943_v43 = vld [vmem:[%s6128_s15 + $0x110] sm:$0xff]   ;;  %v5976_v45 = vld [vmem:[%s6128_s15 + $0x358] sm:$0xff]  }
  0x20   : > { %5247 = vmatprep.subr.bf16.mxu0 %v5906_v6  ;;  %5718 = vmatprep.subr.bf16.mxu1 %v5906_v6  ;;  %v5975_v44 = vld [vmem:[%s6128_s15 + $0x350] sm:$0xff]   ;;  %v5944_v46 = vld [vmem:[%s6128_s15 + $0x118] sm:$0xff]   ;;  %v5945_v47 = vld [vmem:[%s6128_s15 + $0x120] sm:$0xff]  }
  0x21   : > { %5465 = vmatprep.mubr.msk.bf16.mxu1 %vm1194_vm0, %v5975_v44  ;;  %v5979_v48 = vld [vmem:[%s6128_s15 + $0x360] sm:$0xff]   ;;  %v5980_v49 = vld [vmem:[%s6128_s15 + $0x368] sm:$0xff]   ;;  %v5947_v51 = vld [vmem:[%s6128_s15 + $0x130] sm:$0xff]  }
  0x22   : > { %v5946_v50 = vld [vmem:[%s6128_s15 + $0x128] sm:$0xff]   ;;  %v5983_v52 = vld [vmem:[%s6128_s15 + $0x370] sm:$0xff]   ;;  %v5984_v53 = vld [vmem:[%s6128_s15 + $0x378] sm:$0xff]  }
  0x23   : > { %5248 = vmatpush3.bf16.msra.mxu0 %v5906_v6  ;;  %5726 = vmatpush3.bf16.msra.mxu1 %v5906_v6  ;;  %v5948_v54 = vld [vmem:[%s6128_s15 + $0x138] sm:$0xff]   ;;  %v5949_v55 = vld [vmem:[%s6128_s15 + $0x140] sm:$0xff]   ;;  %v5988_v57 = vld [vmem:[%s6128_s15 + $0x388] sm:$0xff]  }
  0x24   : > { %5249 = vmatprep.subr.bf16.mxu0 %v5907_v7  ;;  %5719 = vmatprep.subr.bf16.mxu1 %v5907_v7  ;;  %v5987_v56 = vld [vmem:[%s6128_s15 + $0x380] sm:$0xff]   ;;  %v5950_v58 = vld [vmem:[%s6128_s15 + $0x148] sm:$0xff]   ;;  %v5951_v59 = vld [vmem:[%s6128_s15 + $0x150] sm:$0xff]  }
  0x25   : > { %v5991_v60 = vld [vmem:[%s6128_s15 + $0x390] sm:$0xff]   ;;  %v5992_v61 = vld [vmem:[%s6128_s15 + $0x398] sm:$0xff]   ;;  %v5953_v63 = vld [vmem:[%s6128_s15 + $0x160] sm:$0xff]  }
  0x26   : > { %v5952_v62 = vld [vmem:[%s6128_s15 + $0x158] sm:$0xff]   ;;  %v5995_v0 = vld [vmem:[%s6128_s15 + $0x3a0] sm:$0xff]   ;;  %v5996_v1 = vld [vmem:[%s6128_s15 + $0x3a8] sm:$0xff]  }
  0x27   : > { %5250 = vmatpush3.bf16.msra.mxu0 %v5907_v7  ;;  %5727 = vmatpush3.bf16.msra.mxu1 %v5907_v7  ;;  %v5954_v2 = vld [vmem:[%s6128_s15 + $0x168] sm:$0xff]   ;;  %v5955_v3 = vld [vmem:[%s6128_s15 + $0x170] sm:$0xff]   ;;  %v6000_v5 = vld [vmem:[%s6128_s15 + $0x3b8] sm:$0xff]  }
  0x28   : > { %5889 = vmatprep.subr.msk.bf16.mxu0 %vm1561_vm1, %v5908_v8  ;;  %5890 = vmatprep.subr.msk.bf16.mxu1 %vm1561_vm1, %v5908_v8  ;;  %v5999_v4 = vld [vmem:[%s6128_s15 + $0x3b0] sm:$0xff]   ;;  %v5956_v6 = vld [vmem:[%s6128_s15 + $0x178] sm:$0xff]   ;;  %v5957_v7 = vld [vmem:[%s6128_s15 + $0x180] sm:$0xff]  }
  0x29   : > { %v6003_v8 = vld [vmem:[%s6128_s15 + $0x3c0] sm:$0xff]  }
  0x2a   : > { %v5973_v44 = vld [vmem:[%s6128_s15 + $0x200] sm:$0xff]  }
  0x2b   : > { %5252 = vmatpush3.bf16.msra.mxu0 %v1563_v9  ;;  %5728 = vmatpush3.bf16.msra.mxu1 %v1563_v9  ;;  %v6004_v9 = vld [vmem:[%s6128_s15 + $0x3c8] ss:$0 sps:$4 sm:$0xff]  }
  0x2e   : > { %5254 = vmatmul.mubr.msk.bf16.vlgmr.msra.gmra.mrb[0].mxu0 %vm1194_vm0, %v5910_v10  ;;  %5466 = vmatmul.mubr.msk.bf16.vlgmr.msra.gmra.mrb[0].mxu1 %vm1194_vm0, %v5976_v45  ;;  %v5958_v10 = vld [vmem:[%s6128_s15 + $0x188] sm:$0xff]  }
  0x2f   : > { %5257 = vmatprep.mubr.msk.bf16.mxu0 %vm1194_vm0, %v5911_v11  ;;  %5469 = vmatprep.mubr.msk.bf16.mxu1 %vm1194_vm0, %v5979_v48  ;;  %v5959_v11 = vld [vmem:[%s6128_s15 + $0x190] sm:$0xff]   ;;  %v5974_v48 = vld [vmem:[%s6128_s15 + $0x208] sm:$0xff]  }
  0x36   : > { %5258 = vmatmul.mubr.msk.bf16.gmra.mrb[4].mxu0 %vm1194_vm0, %v5912_v12  ;;  %5470 = vmatmul.mubr.msk.bf16.gmra.mrb[4].mxu1 %vm1194_vm0, %v5980_v49  ;;  %v5960_v12 = vld [vmem:[%s6128_s15 + $0x198] sm:$0xff]  }
  0x37   : > { %5261 = vmatprep.mubr.msk.bf16.mxu0 %vm1194_vm0, %v5913_v13  ;;  %5473 = vmatprep.mubr.msk.bf16.mxu1 %vm1194_vm0, %v5983_v52  ;;  %v5961_v13 = vld [vmem:[%s6128_s15 + $0x1a0] sm:$0xff]  }
  0x3e   : > { %5262 = vmatmul.mubr.msk.bf16.gmra.mrb[8].mxu0 %vm1194_vm0, %v5914_v14  ;;  %5474 = vmatmul.mubr.msk.bf16.gmra.mrb[8].mxu1 %vm1194_vm0, %v5984_v53  ;;  %v5962_v14 = vld [vmem:[%s6128_s15 + $0x1a8] sm:$0xff]  }
  0x3f   : > { %5265 = vmatprep.mubr.msk.bf16.mxu0 %vm1194_vm0, %v5915_v15  ;;  %5477 = vmatprep.mubr.msk.bf16.mxu1 %vm1194_vm0, %v5987_v56  ;;  %v5963_v15 = vld [vmem:[%s6128_s15 + $0x1b0] sm:$0xff]   ;;  %v5981_v56 = vld [vmem:[%s6128_s15 + $0x220] sm:$0xff]  }
  0x46   : > { %5266 = vmatmul.mubr.msk.bf16.gmra.mrb[12].mxu0 %vm1194_vm0, %v5916_v16  ;;  %5478 = vmatmul.mubr.msk.bf16.gmra.mrb[12].mxu1 %vm1194_vm0, %v5988_v57 }
  0x47   : > { %5269 = vmatprep.mubr.msk.bf16.mxu0 %vm1194_vm0, %v5917_v17  ;;  %5481 = vmatprep.mubr.msk.bf16.mxu1 %vm1194_vm0, %v5991_v60  ;;  %v5982_v60 = vld [vmem:[%s6128_s15 + $0x228] sm:$0xff]  }
  0x4e   : > { %5270 = vmatmul.mubr.msk.bf16.gmra.mrb[16].mxu0 %vm1194_vm0, %v5918_v18  ;;  %5482 = vmatmul.mubr.msk.bf16.gmra.mrb[16].mxu1 %vm1194_vm0, %v5992_v61  ;;  %v5964_v18 = vld [vmem:[%s6128_s15 + $0x1b8] sm:$0xff]  }
  0x4f   : > { %5273 = vmatprep.mubr.msk.bf16.mxu0 %vm1194_vm0, %v5919_v19  ;;  %5485 = vmatprep.mubr.msk.bf16.mxu1 %vm1194_vm0, %v5995_v0 }
  0x56   : > { %5274 = vmatmul.mubr.msk.bf16.gmra.mrb[20].mxu0 %vm1194_vm0, %v5920_v20  ;;  %5486 = vmatmul.mubr.msk.bf16.gmra.mrb[20].mxu1 %vm1194_vm0, %v5996_v1  ;;  %v5965_v20 = vld [vmem:[%s6128_s15 + $0x1c0] sm:$0xff]  }
  0x57   : > { %5277 = vmatprep.mubr.msk.bf16.mxu0 %vm1194_vm0, %v5921_v21  ;;  %5489 = vmatprep.mubr.msk.bf16.mxu1 %vm1194_vm0, %v5999_v4  ;;  %v5989_v4 = vld [vmem:[%s6128_s15 + $0x240] sm:$0xff]  }
  0x5e   : > { %5278 = vmatmul.mubr.msk.bf16.gmra.mrb[24].mxu0 %vm1194_vm0, %v5922_v22  ;;  %5490 = vmatmul.mubr.msk.bf16.gmra.mrb[24].mxu1 %vm1194_vm0, %v6000_v5 }
  0x5f   : > { %5281 = vmatprep.mubr.msk.bf16.mxu0 %vm1194_vm0, %v5923_v23  ;;  %5493 = vmatprep.mubr.msk.bf16.mxu1 %vm1194_vm0, %v6003_v8  ;;  %v5990_v8 = vld [vmem:[%s6128_s15 + $0x248] sm:$0xff]  }
  0x66   : > { %5282 = vmatmul.mubr.msk.bf16.gmra.mrb[28].mxu0 %vm1194_vm0, %v5924_v24  ;;  %5494 = vmatmul.mubr.msk.bf16.gmra.mrb[28].mxu1 %vm1194_vm0, %v6004_v9  ;;  %v5966_v24 = vld [vmem:[%s6128_s15 + $0x1c8] sm:$0xff]  }
  0x67   : > { %5285 = vmatprep.mubr.msk.bf16.mxu0 %vm1194_vm0, %v5925_v25 }
  0x6e   : > { %5286 = vmatmul.mubr.msk.bf16.gmra.mrb[32].mxu0 %vm1194_vm0, %v5926_v26  ;;  %v5967_v26 = vld [vmem:[%s6128_s15 + $0x1d0] sm:$0xff]  }
  0x6f   : > { %5289 = vmatprep.mubr.msk.bf16.mxu0 %vm1194_vm0, %v5927_v27 }
  0x76   : > { %5290 = vmatmul.mubr.msk.bf16.gmra.mrb[36].mxu0 %vm1194_vm0, %v5928_v28 }
  0x77   : > { %5293 = vmatprep.mubr.msk.bf16.mxu0 %vm1194_vm0, %v5929_v29 }
  0x7e   : > { %5294 = vmatmul.mubr.msk.bf16.gmra.mrb[40].mxu0 %vm1194_vm0, %v5930_v30  ;;  %v5968_v30 = vld [vmem:[%s6128_s15 + $0x1d8] sm:$0xff]  }
  0x7f   : > { %5297 = vmatprep.mubr.msk.bf16.mxu0 %vm1194_vm0, %v5931_v31 }
  0x86   : > { %5298 = vmatmul.mubr.msk.bf16.gmra.mrb[44].mxu0 %vm1194_vm0, %v5932_v32  ;;  %v5969_v32 = vld [vmem:[%s6128_s15 + $0x1e0] sm:$0xff]  }
  0x87   : > { %5301 = vmatprep.mubr.msk.bf16.mxu0 %vm1194_vm0, %v5933_v33 }
  0x8e   : > { %5302 = vmatmul.mubr.msk.bf16.gmra.mrb[48].mxu0 %vm1194_vm0, %v5934_v34 }
  0x8f   : > { %5305 = vmatprep.mubr.msk.bf16.mxu0 %vm1194_vm0, %v5935_v35 }
  0x96   : > { %5306 = vmatmul.mubr.msk.bf16.gmra.mrb[52].mxu0 %vm1194_vm0, %v5936_v36  ;;  %v5970_v36 = vld [vmem:[%s6128_s15 + $0x1e8] sm:$0xff]  }
  0x97   : > { %5309 = vmatprep.mubr.msk.bf16.mxu0 %vm1194_vm0, %v5937_v37 }
  0x9e   : > { %5310 = vmatmul.mubr.msk.bf16.gmra.mrb[56].mxu0 %vm1194_vm0, %v5938_v38  ;;  %v5971_v38 = vld [vmem:[%s6128_s15 + $0x1f0] sm:$0xff]  }
  0x9f   : > { %5313 = vmatprep.mubr.msk.bf16.mxu0 %vm1194_vm0, %v5939_v39 }
  0xa6   : > { %5314 = vmatmul.mubr.msk.bf16.gmra.mrb[60].mxu0 %vm1194_vm0, %v5940_v40 }
  0xa7   : > { %5317 = vmatprep.mubr.msk.bf16.mxu0 %vm1194_vm0, %v5941_v41 }
  0xae   : > { %5318 = vmatmul.mubr.msk.bf16.gmra.mrb[64].mxu0 %vm1194_vm0, %v5942_v42  ;;  %v5972_v42 = vld [vmem:[%s6128_s15 + $0x1f8] sm:$0xff]  }
  0xaf   : > { %5321 = vmatprep.mubr.msk.bf16.mxu0 %vm1194_vm0, %v5943_v43 }
  0xb6   : > { %5322 = vmatmul.mubr.msk.bf16.gmra.mrb[68].mxu0 %vm1194_vm0, %v5944_v46 }
  0xb7   : > { %5325 = vmatprep.mubr.msk.bf16.mxu0 %vm1194_vm0, %v5945_v47 }
  0xbe   : > { %5326 = vmatmul.mubr.msk.bf16.gmra.mrb[72].mxu0 %vm1194_vm0, %v5946_v50  ;;  %v5977_v50 = vld [vmem:[%s6128_s15 + $0x210] sm:$0xff]  }
  0xbf   : > { %5329 = vmatprep.mubr.msk.bf16.mxu0 %vm1194_vm0, %v5947_v51 }
  0xc6   : > { %5330 = vmatmul.mubr.msk.bf16.gmra.mrb[76].mxu0 %vm1194_vm0, %v5948_v54  ;;  %v5978_v54 = vld [vmem:[%s6128_s15 + $0x218] sm:$0xff]  }
  0xc7   : > { %5333 = vmatprep.mubr.msk.bf16.mxu0 %vm1194_vm0, %v5949_v55 }
  0xce   : > { %5334 = vmatmul.mubr.msk.bf16.gmra.mrb[80].mxu0 %vm1194_vm0, %v5950_v58 }
  0xcf   : > { %5337 = vmatprep.mubr.msk.bf16.mxu0 %vm1194_vm0, %v5951_v59 }
  0xd6   : > { %5338 = vmatmul.mubr.msk.bf16.gmra.mrb[84].mxu0 %vm1194_vm0, %v5952_v62  ;;  %v5985_v62 = vld [vmem:[%s6128_s15 + $0x230] sm:$0xff]  }
  0xd7   : > { %5341 = vmatprep.mubr.msk.bf16.mxu0 %vm1194_vm0, %v5953_v63 }
  0xde   : > { %5342 = vmatmul.mubr.msk.bf16.gmra.mrb[88].mxu0 %vm1194_vm0, %v5954_v2  ;;  %v5986_v2 = vld [vmem:[%s6128_s15 + $0x238] sm:$0xff]  }
  0xdf   : > { %5345 = vmatprep.mubr.msk.bf16.mxu0 %vm1194_vm0, %v5955_v3 }
  0xe6   : > { %5346 = vmatmul.mubr.msk.bf16.gmra.mrb[92].mxu0 %vm1194_vm0, %v5956_v6 }
  0xe7   : > { %5349 = vmatprep.mubr.msk.bf16.mxu0 %vm1194_vm0, %v5957_v7 }
  0xee   : > { %5350 = vmatmul.mubr.msk.bf16.gmra.mrb[96].mxu0 %vm1194_vm0, %v5958_v10  ;;  %v5993_v10 = vld [vmem:[%s6128_s15 + $0x250] sm:$0xff]  }
  0xef   : > { %5353 = vmatprep.mubr.msk.bf16.mxu0 %vm1194_vm0, %v5959_v11 }
  0xf6   : > { %5354 = vmatmul.mubr.msk.bf16.gmra.mrb[100].mxu0 %vm1194_vm0, %v5960_v12 }
  0xf7   : > { %5357 = vmatprep.mubr.msk.bf16.mxu0 %vm1194_vm0, %v5961_v13 }
  0xfe   : > { %5358 = vmatmul.mubr.msk.bf16.gmra.mrb[104].mxu0 %vm1194_vm0, %v5962_v14  ;;  %v5994_v14 = vld [vmem:[%s6128_s15 + $0x258] sm:$0xff]  }
  0xff   : > { %5361 = vmatprep.mubr.msk.bf16.mxu0 %vm1194_vm0, %v5963_v15 }
 0x101   : > { %v6284_v16 = vpop.f32.mrb[0].mxu0 }
 0x102   : > { %v6286_v17 = vpop.f32.mrb[1].mxu0 }
 0x103   : > { %v6289_v19 = vpop.f32.mrb[2].mxu0 }
 0x104   : > { %v6292_v21 = vpop.f32.mrb[3].mxu0 }
 0x106   : > { %5362 = vmatmul.mubr.msk.bf16.gmra.mrb[108].mxu0 %vm1194_vm0, %v5964_v18  ;;  %v5997_v18 = vld [vmem:[%s6128_s15 + $0x260] sm:$0xff]  }
 0x107   : > { %5365 = vmatprep.mubr.msk.bf16.mxu0 %vm1194_vm0, %v5965_v20 }
 0x109   : > { %v6296_v22 = vpop.f32.mrb[4].mxu0 }
 0x10a   : > { %v6298_v23 = vpop.f32.mrb[5].mxu0 }
 0x10b   : > { %v6301_v25 = vpop.f32.mrb[6].mxu0 }
 0x10c   : > { %v6304_v27 = vpop.f32.mrb[7].mxu0 }
 0x10e   : > { %5366 = vmatmul.mubr.msk.bf16.gmra.mrb[112].mxu0 %vm1194_vm0, %v5966_v24 }
 0x10f   : > { %5369 = vmatprep.mubr.msk.bf16.mxu0 %vm1194_vm0, %v5967_v26 }
 0x111   : > { %v6308_v28 = vpop.f32.mrb[8].mxu0 }
 0x112   : > { %v6310_v29 = vpop.f32.mrb[9].mxu0 }
 0x113   : > { %v6313_v31 = vpop.f32.mrb[10].mxu0 }
 0x114   : > { %v6316_v33 = vpop.f32.mrb[11].mxu0 }
 0x116   : > { %5370 = vmatmul.mubr.msk.bf16.gmra.mrb[116].mxu0 %vm1194_vm0, %v5968_v30  ;;  %v5998_v30 = vld [vmem:[%s6128_s15 + $0x268] sm:$0xff]  }
 0x117   : > { %5373 = vmatprep.mubr.msk.bf16.mxu0 %vm1194_vm0, %v5969_v32 }
 0x119   : > { %v6320_v34 = vpop.f32.mrb[12].mxu0 }
 0x11a   : > { %v6322_v35 = vpop.f32.mrb[13].mxu0 }
 0x11b   : > { %v6325_v37 = vpop.f32.mrb[14].mxu0 }
 0x11c   : > { %v6328_v39 = vpop.f32.mrb[15].mxu0 }
 0x11e   : > { %5374 = vmatmul.mubr.msk.bf16.gmra.mrb[120].mxu0 %vm1194_vm0, %v5970_v36  ;;  %v6001_v36 = vld [vmem:[%s6128_s15 + $0x270] sm:$0xff]  }
 0x11f   : > { %5377 = vmatprep.mubr.msk.bf16.mxu0 %vm1194_vm0, %v5971_v38 }
 0x121   : > { %v6332_v40 = vpop.f32.mrb[16].mxu0 }
 0x122   : > { %v6334_v41 = vpop.f32.mrb[17].mxu0 }
 0x123   : > { %v6337_v43 = vpop.f32.mrb[18].mxu0 }
 0x124   : > { %v6340_v45 = vpop.f32.mrb[19].mxu0 }
 0x126   : > { %5378 = vmatmul.mubr.msk.bf16.gmra.mrb[124].mxu0 %vm1194_vm0, %v5972_v42 }
 0x127   : > { %5381 = vmatprep.mubr.msk.bf16.mxu0 %vm1194_vm0, %v5973_v44 }
 0x129   : > { %v6344_v46 = vpop.f32.mrb[20].mxu0 }
 0x12a   : > { %v6346_v47 = vpop.f32.mrb[21].mxu0 }
 0x12b   : > { %v6349_v49 = vpop.f32.mrb[22].mxu0 }
 0x12c   : > { %v6352_v51 = vpop.f32.mrb[23].mxu0 }
 0x12e   : > { %5382 = vmatmul.mubr.msk.bf16.gmra.mrb[128].mxu0 %vm1194_vm0, %v5974_v48  ;;  %v6002_v48 = vld [vmem:[%s6128_s15 + $0x278] sm:$0xff]  }
 0x12f   : > { %5385 = vmatprep.mubr.msk.bf16.mxu0 %vm1194_vm0, %v5977_v50 }
 0x131   : > { %v6356_v52 = vpop.f32.mrb[24].mxu0 }
 0x132   : > { %v6358_v53 = vpop.f32.mrb[25].mxu0 }
 0x133   : > { %v6361_v55 = vpop.f32.mrb[26].mxu0 }
 0x134   : > { %v6364_v57 = vpop.f32.mrb[27].mxu0 }
 0x136   : > { %5386 = vmatmul.mubr.msk.bf16.gmra.mrb[132].mxu0 %vm1194_vm0, %v5978_v54  ;;  %v6005_v54 = vld [vmem:[%s6128_s15 + $0x280] sm:$0xff]  }
 0x137   : > { %5389 = vmatprep.mubr.msk.bf16.mxu0 %vm1194_vm0, %v5981_v56 }
 0x139   : > { %v6368_v58 = vpop.f32.mrb[28].mxu0 }
 0x13a   : > { %v6370_v59 = vpop.f32.mrb[29].mxu0 }
 0x13b   : > { %v6373_v61 = vpop.f32.mrb[30].mxu0 }
 0x13c   : > { %v6376_v63 = vpop.f32.mrb[31].mxu0 }
 0x13e   : > { %5390 = vmatmul.mubr.msk.bf16.gmra.mrb[136].mxu0 %vm1194_vm0, %v5982_v60 }
 0x13f   : > { %5393 = vmatprep.mubr.msk.bf16.mxu0 %vm1194_vm0, %v5985_v62 }
 0x141   : > { %v6380_v0 = vpop.f32.mrb[32].mxu0 }
 0x142   : > { %v6382_v1 = vpop.f32.mrb[33].mxu0 }
 0x143   : > { %v6385_v3 = vpop.f32.mrb[34].mxu0 }
 0x144   : > { %v6388_v5 = vpop.f32.mrb[35].mxu0 }
 0x146   : > { %5394 = vmatmul.mubr.msk.bf16.gmra.mrb[140].mxu0 %vm1194_vm0, %v5986_v2  ;;  %v6006_v2 = vld [vmem:[%s6128_s15 + $0x288] sm:$0xff]  }
 0x147   : > { %5397 = vmatprep.mubr.msk.bf16.mxu0 %vm1194_vm0, %v5989_v4 }
 0x149   : > { %v6392_v6 = vpop.f32.mrb[36].mxu0 }
 0x14a   : > { %v6394_v7 = vpop.f32.mrb[37].mxu0 }
 0x14b   : > { %v6397_v9 = vpop.f32.mrb[38].mxu0 }
 0x14c   : > { %v6400_v11 = vpop.f32.mrb[39].mxu0 }
 0x14e   : > { %5398 = vmatmul.mubr.msk.bf16.gmra.mrb[144].mxu0 %vm1194_vm0, %v5990_v8  ;;  %v6007_v8 = vld [vmem:[%s6128_s15 + $0x290] sm:$0xff]  }
 0x14f   : > { %5401 = vmatprep.mubr.msk.bf16.mxu0 %vm1194_vm0, %v5993_v10 }
 0x151   : > { %v6404_v12 = vpop.f32.mrb[40].mxu0 }
 0x152   : > { %v6406_v13 = vpop.f32.mrb[41].mxu0 }
 0x153   : > { %v6409_v15 = vpop.f32.mrb[42].mxu0 }
 0x154   : > { %v6412_v20 = vpop.f32.mrb[43].mxu0 }
 0x156   : > { %5402 = vmatmul.mubr.msk.bf16.gmra.mrb[148].mxu0 %vm1194_vm0, %v5994_v14 }
 0x157   : > { %5405 = vmatprep.mubr.msk.bf16.mxu0 %vm1194_vm0, %v5997_v18 }
 0x159   : > { %v6416_v24 = vpop.f32.mrb[44].mxu0 }
 0x15a   : > { %v6418_v26 = vpop.f32.mrb[45].mxu0 }
 0x15b   : > { %v6421_v32 = vpop.f32.mrb[46].mxu0 }
 0x15c   : > { %v6424_v38 = vpop.f32.mrb[47].mxu0 }
 0x15e   : > { %5406 = vmatmul.mubr.msk.bf16.gmra.mrb[152].mxu0 %vm1194_vm0, %v5998_v30  ;;  %v6008_v30 = vld [vmem:[%s6128_s15 + $0x298] sm:$0xff]  }
 0x15f   : > { %5409 = vmatprep.mubr.msk.bf16.mxu0 %vm1194_vm0, %v6001_v36 }
 0x161   : > { %v6428_v42 = vpop.f32.mrb[48].mxu0 }
 0x162   : > { %8442 = vst [vmem:[#allocation2_spill] sm:$0xff] %v6428_v42  ;;  %v6430_v44 = vpop.f32.mrb[49].mxu0 }
 0x163   : > { %8443 = vst [vmem:[#allocation3_spill] sm:$0xff] %v6430_v44  ;;  %v6433_v50 = vpop.f32.mrb[50].mxu0 }
 0x164   : > { %8444 = vst [vmem:[#allocation4_spill] sm:$0xff] %v6433_v50  ;;  %v6436_v56 = vpop.f32.mrb[51].mxu0 }
 0x165   : > { %8445 = vst [vmem:[#allocation5_spill] sm:$0xff] %v6436_v56  ;;  %v6020_v56 = vld [vmem:[%s6128_s15 + $0x2f8] sm:$0xff]  }
 0x166   : > { %5410 = vmatmul.mubr.msk.bf16.gmra.mrb[156].mxu0 %vm1194_vm0, %v6002_v48  ;;  %v6009_v48 = vld [vmem:[%s6128_s15 + $0x2a0] sm:$0xff]  }
 0x167   : > { %5413 = vmatprep.mubr.msk.bf16.mxu0 %vm1194_vm0, %v6005_v54 }
 0x169   : > { %v6440_v60 = vpop.f32.mrb[52].mxu0 }
 0x16a   : > { %8446 = vst [vmem:[#allocation6_spill] sm:$0xff] %v6440_v60  ;;  %v6442_v62 = vpop.f32.mrb[53].mxu0 }
 0x16b   : > { %8447 = vst [vmem:[#allocation7_spill] sm:$0xff] %v6442_v62  ;;  %v6445_v4 = vpop.f32.mrb[54].mxu0 }
 0x16c   : > { %8448 = vst [vmem:[#allocation8_spill] sm:$0xff] %v6445_v4  ;;  %v6448_v10 = vpop.f32.mrb[55].mxu0 }
 0x16d   : > { %8449 = vst [vmem:[#allocation9_spill] sm:$0xff] %v6448_v10 }
 0x16e   : > { %5414 = vmatmul.mubr.msk.bf16.gmra.mrb[160].mxu0 %vm1194_vm0, %v6006_v2 }
 0x16f   : > { %5417 = vmatprep.mubr.msk.bf16.mxu0 %vm1194_vm0, %v6007_v8  ;;  %v6010_v8 = vld [vmem:[%s6128_s15 + $0x2a8] sm:$0xff]  }
 0x171   : > { %v6452_v14 = vpop.f32.mrb[56].mxu0 }
 0x172   : > { %8450 = vst [vmem:[#allocation10_spill] sm:$0xff] %v6452_v14  ;;  %v6454_v18 = vpop.f32.mrb[57].mxu0 }
 0x173   : > { %8451 = vst [vmem:[#allocation11_spill] sm:$0xff] %v6454_v18  ;;  %v6457_v36 = vpop.f32.mrb[58].mxu0  ;;  %v6011_v18 = vld [vmem:[%s6128_s15 + $0x2b0] sm:$0xff]  }
 0x174   : > { %8452 = vst [vmem:[#allocation12_spill] sm:$0xff] %v6457_v36  ;;  %v6460_v54 = vpop.f32.mrb[59].mxu0 }
 0x175   : > { %8453 = vst [vmem:[#allocation13_spill] sm:$0xff] %v6460_v54 }
 0x176   : > { %5418 = vmatmul.mubr.msk.bf16.gmra.mrb[164].mxu0 %vm1194_vm0, %v6008_v30 }
 0x177   : > { %5421 = vmatprep.mubr.msk.bf16.mxu0 %vm1194_vm0, %v6009_v48  ;;  %v6012_v48 = vld [vmem:[%s6128_s15 + $0x2b8] sm:$0xff]  }
 0x179   : > { %v6464_v10 = vpop.f32.mrb[60].mxu0 }
 0x17a   : > { %8454 = vst [vmem:[#allocation14_spill] sm:$0xff] %v6464_v10  ;;  %v6466_v2 = vpop.f32.mrb[61].mxu0 }
 0x17b   : > { %8455 = vst [vmem:[#allocation15_spill] sm:$0xff] %v6466_v2  ;;  %v6469_v14 = vpop.f32.mrb[62].mxu0  ;;  %v6013_v2 = vld [vmem:[%s6128_s15 + $0x2c0] sm:$0xff]  }
 0x17c   : > { %8456 = vst [vmem:[#allocation16_spill] sm:$0xff] %v6469_v14  ;;  %v6472_v4 = vpop.f32.mrb[63].mxu0  ;;  %v6486_v14 = vpop.f32.mrb[0].mxu1 }
 0x17d   : > { %8457 = vst [vmem:[#allocation17_spill] sm:$0xff] %v6472_v4  ;;  %8462 = vst [vmem:[#allocation22_spill] sm:$0xff] %v6486_v14  ;;  %v6488_v62 = vpop.f32.mrb[1].mxu1 }
 0x17e   : > { %5422 = vmatmul.mubr.msk.bf16.gmra.mrb[168].mxu0 %vm1194_vm0, %v6010_v8  ;;  %8463 = vst [vmem:[#allocation23_spill] sm:$0xff] %v6488_v62 }
 0x17f   : > { %5425 = vmatprep.mubr.msk.bf16.mxu0 %vm1194_vm0, %v6011_v18 }
 0x181   : > { %v6476_v54 = vpop.f32.mrb[64].mxu0 }
 0x182   : > { %8458 = vst [vmem:[#allocation18_spill] sm:$0xff] %v6476_v54  ;;  %v6478_v30 = vpop.f32.mrb[65].mxu0  ;;  %v6497_v54 = vpop.f32.mrb[2].mxu1 }
 0x183   : > { %8459 = vst [vmem:[#allocation19_spill] sm:$0xff] %v6478_v30  ;;  %v6481_v10 = vpop.f32.mrb[66].mxu0  ;;  %v6014_v30 = vld [vmem:[%s6128_s15 + $0x2c8] sm:$0xff]   ;;  %8466 = vst [vmem:[#allocation26_spill] sm:$0xff] %v6497_v54  ;;  %v6502_v4 = vpop.f32.mrb[3].mxu1 }
 0x184   : > { %8460 = vst [vmem:[#allocation20_spill] sm:$0xff] %v6481_v10  ;;  %v6484_v36 = vpop.f32.mrb[67].mxu0  ;;  %8468 = vst [vmem:[#allocation28_spill] sm:$0xff] %v6502_v4  ;;  %v6506_v62 = vpop.f32.mrb[4].mxu1  ;;  %v6517_v54 = vld [vmem:[%s8418_s2] ss:$0 sm:$0xff] }
 0x185   : > { %8461 = vst [vmem:[#allocation21_spill] sm:$0xff] %v6484_v36  ;;  %v6015_v36 = vld [vmem:[%s6128_s15 + $0x2d0] sm:$0xff]   ;;  %8470 = vst [vmem:[#allocation30_spill] sm:$0xff] %v6506_v62  ;;  %v6016_v4 = vld [vmem:[%s6128_s15 + $0x2d8] sm:$0xff]  }
 0x186   : > { %5426 = vmatmul.mubr.msk.bf16.gmra.mrb[172].mxu0 %vm1194_vm0, %v6012_v48  ;;  %v6508_v48 = vpop.f32.mrb[5].mxu1  ;;  %v6017_v62 = vld [vmem:[%s6128_s15 + $0x2e0] sm:$0xff]  }
 0x187   : > { %5429 = vmatprep.mubr.msk.bf16.mxu0 %vm1194_vm0, %v6013_v2  ;;  %8471 = vst [vmem:[#allocation31_spill] sm:$0xff] %v6508_v48 }
 0x189   : > { %v6492_v18 = vpop.f32.mrb[68].mxu0 }
 0x18a   : > { %8464 = vst [vmem:[#allocation24_spill] sm:$0xff] %v6492_v18  ;;  %v6494_v8 = vpop.f32.mrb[69].mxu0 }
 0x18b   : > { %8465 = vst [vmem:[#allocation25_spill] sm:$0xff] %v6494_v8  ;;  %v6499_v10 = vpop.f32.mrb[70].mxu0  ;;  %v6522_v8 = vpop.f32.mrb[6].mxu1 }
 0x18c   : > { %8467 = vst [vmem:[#allocation27_spill] sm:$0xff] %v6499_v10  ;;  %v6504_v14 = vpop.f32.mrb[71].mxu0  ;;  %8474 = vst [vmem:[#allocation34_spill] sm:$0xff] %v6522_v8  ;;  %v6527_v48 = vpop.f32.mrb[7].mxu1  ;;  %v2580_v8 = vmul.f32 %v6517_v54, %v6286_v17  ;;  %v2587_v17 = vmul.f32 %v6301_v25, %v6517_v54 }
 0x18d   : > { %8469 = vst [vmem:[#allocation29_spill] sm:$0xff] %v6504_v14  ;;  %8476 = vst [vmem:[#allocation36_spill] sm:$0xff] %v6527_v48  ;;  %v2583_v48 = vmul.f32 %v6289_v19, %v6517_v54  ;;  %v2585_v19 = vmul.f32 %v6517_v54, %v6304_v27  ;;  %v2591_v27 = vmul.f32 %v6313_v31, %v6517_v54 }
 0x18e   : > { %5430 = vmatmul.mubr.msk.bf16.gmra.mrb[176].mxu0 %vm1194_vm0, %v6014_v30 }
 0x18f   : > { %5433 = vmatprep.mubr.msk.bf16.mxu0 %vm1194_vm0, %v6015_v36  ;;  %v6531_v36 = vpop.f32.mrb[8].mxu1 }
 0x190   : > { %8478 = vst [vmem:[#allocation38_spill] sm:$0xff] %v6531_v36  ;;  %v6535_v18 = vpop.f32.mrb[9].mxu1  ;;  %v2584_v36 = vmul.f32 %v6517_v54, %v6298_v23 }
 0x191   : > { %v6512_v2 = vpop.f32.mrb[72].mxu0  ;;  %8479 = vst [vmem:[#allocation39_spill] sm:$0xff] %v6535_v18 }
 0x192   : > { %8472 = vst [vmem:[#allocation32_spill] sm:$0xff] %v6512_v2  ;;  %v6519_v10 = vpop.f32.mrb[73].mxu0  ;;  %v2582_v2 = vmul.f32 %v6284_v16, %v6517_v54  ;;  %v2586_v16 = vmul.f32 %v6296_v22, %v6517_v54  ;;  %v2588_v22 = vmul.f32 %v6517_v54, %v6310_v29 }
 0x193   : > { %8473 = vst [vmem:[#allocation33_spill] sm:$0xff] %v6519_v10  ;;  %v6524_v14 = vpop.f32.mrb[74].mxu0  ;;  %v6540_v10 = vld [vmem:[%s8419_s3] ss:$0 sm:$0xff] }
 0x194   : > { %8475 = vst [vmem:[#allocation35_spill] sm:$0xff] %v6524_v14  ;;  %v6529_v30 = vpop.f32.mrb[75].mxu0  ;;  %v6568_v23 = vadd.f32 %v6540_v10, %v2580_v8  ;;  %v6571_v25 = vadd.f32 %v6540_v10, %v2583_v48  ;;  %v6581_v14 = vpop.f32.mrb[10].mxu1  ;;  %v6584_v29 = vadd.f32 %v6540_v10, %v2586_v16  ;;  %v2589_v8 = vmul.f32 %v6517_v54, %v6316_v33  ;;  %v6019_v48 = vld [vmem:[%s6128_s15 + $0x2f0] sm:$0xff]  }
 0x195   : > { %8477 = vst [vmem:[#allocation37_spill] sm:$0xff] %v6529_v30  ;;  %v2581_v30 = vmul.f32 %v6517_v54, %v6292_v21  ;;  %v6559_v21 = vadd.f32 %v6540_v10, %v2582_v2  ;;  %8482 = vst [vmem:[#allocation42_spill] sm:$0xff] %v6581_v14  ;;  %v6591_v60 = vpop.f32.mrb[11].mxu1  ;;  %v6597_v31 = vadd.f32 %v6540_v10, %v2587_v17 }
 0x196   : > { %5434 = vmatmul.mubr.msk.bf16.gmra.mrb[180].mxu0 %vm1194_vm0, %v6016_v4  ;;  %v2590_v4 = vmul.f32 %v6308_v28, %v6517_v54  ;;  %v6018_v28 = vld [vmem:[%s6128_s15 + $0x2e8] sm:$0xff]   ;;  %8484 = vst [vmem:[#allocation44_spill] sm:$0xff] %v6591_v60  ;;  %v2594_v16 = vmul.f32 %v6320_v34, %v6517_v54  ;;  %v6606_v33 = vpop.f32.mrb[12].mxu1 }
 0x197   : > { %5437 = vmatprep.mubr.msk.bf16.mxu0 %vm1194_vm0, %v6017_v62  ;;  %v6574_v18 = vadd.f32 %v6540_v10, %v2581_v30  ;;  %v6594_v30 = vadd.f32 %v6540_v10, %v2584_v36  ;;  %8486 = vst [vmem:[#allocation46_spill] sm:$0xff] %v6606_v33  ;;  %v6613_v36 = vadd.f32 %v6540_v10, %v2588_v22  ;;  %v6615_v17 = vpop.f32.mrb[13].mxu1 }
 0x198   : > { %v6610_v60 = vadd.f32 %v6540_v10, %v2590_v4  ;;  %8487 = vst [vmem:[#allocation47_spill] sm:$0xff] %v6615_v17  ;;  %v6626_v4 = vadd.f32 %v6540_v10, %v2589_v8  ;;  %v2592_v22 = vmul.f32 %v6517_v54, %v6322_v35  ;;  %v2593_v35 = vmul.f32 %v6517_v54, %v6328_v39  ;;  %v6654_v33 = vpop.f32.mrb[14].mxu1 }
 0x199   : > { %v6565_v62 = vpop.f32.mrb[76].mxu0  ;;  %v3074_v34 = vmax.f32 %v6574_v18, 0.0  ;;  %8489 = vst [vmem:[#allocation49_spill] sm:$0xff] %v6654_v33  ;;  %v6666_v50 = vpop.f32.mrb[15].mxu1 }
 0x19a   : > { %8480 = vst [vmem:[#allocation40_spill] sm:$0xff] %v6565_v62  ;;  %v6578_v2 = vpop.f32.mrb[77].mxu0  ;;  %8490 = vst [vmem:[#allocation50_spill] sm:$0xff] %v6666_v50  ;;  %v6673_v44 = vpop.f32.mrb[16].mxu1  ;;  %v2600_v50 = vmul.f32 %v6517_v54, %v6346_v47 }
 0x19b   : > { %8481 = vst [vmem:[#allocation41_spill] sm:$0xff] %v6578_v2  ;;  %v6588_v62 = vpop.f32.mrb[78].mxu0  ;;  %v6600_v2 = vadd.f32 %v6540_v10, %v2585_v19  ;;  %v2595_v19 = vmul.f32 %v6325_v37, %v6517_v54  ;;  %v2598_v37 = vmul.f32 %v6332_v40, %v6517_v54  ;;  %v6658_v40 = vadd.f32 %v6540_v10, %v2592_v22  ;;  %v6684_v42 = vpop.f32.mrb[17].mxu1 }
 0x19c   : > { %8483 = vst [vmem:[#allocation43_spill] sm:$0xff] %v6588_v62  ;;  %v6604_v14 = vpop.f32.mrb[79].mxu0  ;;  %v6637_v62 = vadd.f32 %v6540_v10, %v2594_v16  ;;  %v2599_v16 = vmul.f32 %v6337_v43, %v6517_v54  ;;  %v6021_v43 = vld [vmem:[%s6128_s15 + $0x300] sm:$0xff]   ;;  %8491 = vst [vmem:[#allocation51_spill] sm:$0xff] %v6673_v44 }
 0x19d   : > { %8485 = vst [vmem:[#allocation45_spill] sm:$0xff] %v6604_v14  ;;  %v6621_v14 = vadd.f32 %v6540_v10, %v2591_v27  ;;  %v2596_v27 = vmul.f32 %v6517_v54, %v6334_v41  ;;  %v6661_v18 = vadd.f32 %v6540_v10, %v2595_v19  ;;  %v2597_v41 = vmul.f32 %v6517_v54, %v6340_v45 }
 0x19e   : > { %5438 = vmatmul.mubr.msk.bf16.gmra.mrb[184].mxu0 %vm1194_vm0, %v6018_v28  ;;  %v6676_v19 = vadd.f32 %v6540_v10, %v2593_v35  ;;  %v6679_v45 = vadd.f32 %v6540_v10, %v2598_v37  ;;  %8492 = vst [vmem:[#allocation52_spill] sm:$0xff] %v6684_v42  ;;  %v8494_v42 = vmax.f32 %v6559_v21, 0.0 }
 0x19f   : > { %5441 = vmatprep.mubr.msk.bf16.mxu0 %vm1194_vm0, %v6019_v48  ;;  %v6697_v47 = vadd.f32 %v6540_v10, %v2597_v41  ;;  %v6711_v41 = vadd.f32 %v6540_v10, %v2600_v50  ;;  %v2601_v50 = vmul.f32 %v6517_v54, %v6352_v51 }
 0x1a1   : > { %v5335_v48 = vpop.f32.mrb[80].mxu0 }
 0x1a2   : > { %v2662_v8 = vmul.f32 %v5335_v48, %v6517_v54  ;;  %v6651_v28 = vpop.f32.mrb[81].mxu0 }
 0x1a3   : > { %8488 = vst [vmem:[#allocation48_spill] sm:$0xff] %v6651_v28  ;;  %v5336_v17 = vpop.f32.mrb[82].mxu0  ;;  %v2602_v28 = vmul.f32 %v6344_v46, %v6517_v54  ;;  %v6687_v46 = vadd.f32 %v6540_v10, %v2596_v27 }
 0x1a4   : > { %v2912_v39 = vadd.f32 %v6540_v10, %v2662_v8  ;;  %v2663_v22 = vmul.f32 %v5336_v17, %v6517_v54  ;;  %v1922_v33 = vpop.f32.mrb[83].mxu0  ;;  %v6690_v17 = vadd.f32 %v6540_v10, %v2599_v16  ;;  %v2603_v16 = vmul.f32 %v6349_v49, %v6517_v54 }
 0x1a5   : > { %v2661_v48 = vmul.f32 %v6517_v54, %v1922_v33  ;;  %v6702_v27 = vadd.f32 %v6540_v10, %v2602_v28 }
 0x1a6   : > { %v3155_v8 = vmax.f32 %v2912_v39, 0.0  ;;  %v2913_v35 = vadd.f32 %v6540_v10, %v2663_v22  ;;  %5442 = vmatmul.mubr.msk.bf16.gmra.mrb[188].mxu0 %vm1194_vm0, %v6020_v56  ;;  %v6721_v22 = vpop.f32.mrb[18].mxu1 }
 0x1a7   : > { %v2911_v33 = vadd.f32 %v6540_v10, %v2661_v48  ;;  %5445 = vmatprep.mubr.msk.bf16.mxu0 %vm1194_vm0, %v6021_v43  ;;  %8496 = vst [vmem:[#allocation55_spill] sm:$0xff] %v6721_v22 }
 0x1a8   : > { %v6706_v39 = vmax.f32 %v3074_v34, %v3155_v8  ;;  %v3156_v56 = vmax.f32 %v2913_v35, 0.0  ;;  %v6022_v35 = vld [vmem:[%s6128_s15 + $0x308] sm:$0xff]  }
 0x1a9   : > { %v3154_v48 = vmax.f32 %v2911_v33, 0.0  ;;  %v5339_v37 = vpop.f32.mrb[84].mxu0  ;;  %v8497_v33 = vmax.f32 %v6568_v23, 0.0 }
 0x1aa   : > { %8493 = vst [vmem:[#allocation53_spill] sm:$0xff] %v6706_v39  ;;  %v6717_v49 = vmax.f32 %v8494_v42, %v3156_v56  ;;  %v2666_v34 = vmul.f32 %v5339_v37, %v6517_v54  ;;  %v1935_v8 = vpop.f32.mrb[85].mxu0  ;;  %v6023_v42 = vld [vmem:[%s6128_s15 + $0x310] sm:$0xff]   ;;  %v6732_v56 = vpop.f32.mrb[19].mxu1 }
 0x1ab   : > { %v6728_v43 = vmax.f32 %v8497_v33, %v3154_v48  ;;  %v2664_v28 = vmul.f32 %v6517_v54, %v1935_v8  ;;  %v5340_v21 = vpop.f32.mrb[86].mxu0  ;;  %v6740_v22 = vpop.f32.mrb[20].mxu1  ;;  %v2606_v48 = vmul.f32 %v6356_v52, %v6517_v54  ;;  %v2605_v52 = vmul.f32 %v6517_v54, %v6364_v57 }
 0x1ac   : > { %8495 = vst [vmem:[#allocation54_spill] sm:$0xff] %v6717_v49  ;;  %v6736_v49 = vadd.f32 %v6540_v10, %v2603_v16  ;;  %v2916_v44 = vadd.f32 %v6540_v10, %v2666_v34  ;;  %v2667_v39 = vmul.f32 %v5340_v21, %v6517_v54  ;;  %v1938_v51 = vpop.f32.mrb[87].mxu0  ;;  %8499 = vst [vmem:[#allocation57_spill] sm:$0xff] %v6740_v22  ;;  %v6747_v37 = vpop.f32.mrb[21].mxu1 }
 0x1ad   : > { %8498 = vst [vmem:[#allocation56_spill] sm:$0xff] %v6728_v43  ;;  %v2914_v8 = vadd.f32 %v6540_v10, %v2664_v28  ;;  %v2665_v33 = vmul.f32 %v6517_v54, %v1938_v51  ;;  %v2604_v16 = vmul.f32 %v6517_v54, %v6358_v53  ;;  %v2607_v34 = vmul.f32 %v6361_v55, %v6517_v54  ;;  %v6031_v53 = vld [vmem:[%s8420_s4 + $0x10] sm:$0xff]  }
 0x1ae   : > { %v3159_v21 = vmax.f32 %v2916_v44, 0.0  ;;  %v2917_v43 = vadd.f32 %v6540_v10, %v2667_v39  ;;  %5446 = vmatmul.mubr.msk.bf16.gmra.mrb[192].mxu0 %vm1194_vm0, %v6022_v35  ;;  %v6764_v55 = vadd.f32 %v6540_v10, %v2601_v50  ;;  %v8500_v44 = vmax.f32 %v6600_v2, 0.0 }
 0x1af   : > { %v3157_v23 = vmax.f32 %v2914_v8, 0.0  ;;  %v2915_v28 = vadd.f32 %v6540_v10, %v2665_v33  ;;  %5449 = vmatprep.mubr.msk.bf16.mxu0 %vm1194_vm0, %v6023_v42  ;;  %v8424_v35 = vmov 0.0   ;;  %v6772_v42 = vadd.f32 %v6540_v10, %v2606_v48 }
 0x1b0   : > { %v6768_v39 = vmax.f32 %v8500_v44, %v3159_v21  ;;  %v3160_v57 = vmax.f32 %v2917_v43, 0.0  ;;  %5497 = vmatprep.subr.bf16.mxu1 %v8424_v35  ;;  %v2610_v8 = vmul.f32 %v6368_v58, %v6517_v54  ;;  %v8502_v33 = vmax.f32 %v6571_v25, 0.0  ;;  %v6024_v25 = vld [vmem:[%s6128_s15 + $0x318] sm:$0xff]  }
 0x1b1   : > { %v3158_v50 = vmax.f32 %v2915_v28, 0.0  ;;  %v5343_v2 = vpop.f32.mrb[88].mxu0  ;;  %5498 = vmatpush3.bf16.msra.mxu1 %v6031_v53  ;;  %v6781_v21 = vadd.f32 %v6540_v10, %v2604_v16  ;;  %v6784_v43 = vadd.f32 %v6540_v10, %v2607_v34  ;;  %v8504_v48 = vmax.f32 %v6584_v29, 0.0 }
 0x1b2   : > { %8501 = vst [vmem:[#allocation58_spill] sm:$0xff] %v6768_v39  ;;  %v6778_v51 = vmax.f32 %v8502_v33, %v3157_v23  ;;  %v2670_v58 = vmul.f32 %v5343_v2, %v6517_v54  ;;  %v1951_v35 = vpop.f32.mrb[89].mxu0  ;;  %v6792_v23 = vpop.f32.mrb[22].mxu1  ;;  %v8506_v28 = vmov 0.0   ;;  %v6796_v53 = vadd.f32 %v6540_v10, %v2605_v52  ;;  %v6025_v2 = vld [vmem:[%s6128_s15 + $0x320] sm:$0xff]  }
 0x1b3   : > { %v6788_v44 = vmax.f32 %v8504_v48, %v3160_v57  ;;  %5499 = vmatprep.subr.bf16.mxu1 %v8506_v28  ;;  %v2608_v16 = vmul.f32 %v6517_v54, %v6370_v59  ;;  %v8507_v34 = vmax.f32 %v6594_v30, 0.0  ;;  %v2668_v29 = vmul.f32 %v6517_v54, %v1951_v35  ;;  %v5344_v57 = vpop.f32.mrb[90].mxu0  ;;  %v6806_v48 = vpop.f32.mrb[23].mxu1  ;;  %5501 = vmatprep.mubr.msk.bf16.mxu1 %vm6062_vm2, %v8506_v28 }
 0x1b4   : > { %8503 = vst [vmem:[#allocation59_spill] sm:$0xff] %v6778_v51  ;;  %v2611_v51 = vmul.f32 %v6373_v61, %v6517_v54  ;;  %v2920_v52 = vadd.f32 %v6540_v10, %v2670_v58  ;;  %v2671_v39 = vmul.f32 %v5344_v57, %v6517_v54  ;;  %v1954_v59 = vpop.f32.mrb[91].mxu0  ;;  %v6813_v22 = vpop.f32.mrb[24].mxu1  ;;  %v6817_v35 = vadd.f32 %v6540_v10, %v2610_v8 }
 0x1b5   : > { %8505 = vst [vmem:[#allocation60_spill] sm:$0xff] %v6788_v44  ;;  %v6802_v33 = vmax.f32 %v8507_v34, %v3158_v50  ;;  %8509 = vst [vmem:[#allocation62_spill] sm:$0xff] %v6813_v22  ;;  %v2918_v50 = vadd.f32 %v6540_v10, %v2668_v29  ;;  %v2669_v34 = vmul.f32 %v6517_v54, %v1954_v59  ;;  %v6821_v44 = vpop.f32.mrb[25].mxu1 }
 0x1b6   : > { %v2921_v57 = vadd.f32 %v6540_v10, %v2671_v39  ;;  %5450 = vmatmul.mubr.msk.bf16.gmra.mrb[196].mxu0 %vm1194_vm0, %v6024_v25  ;;  %v6829_v8 = vadd.f32 %v6540_v10, %v2608_v16  ;;  %v6834_v59 = vadd.f32 %v6540_v10, %v2611_v51  ;;  %v8510_v39 = vmax.f32 %v6626_v4, 0.0  ;;  %v6026_v16 = vld [vmem:[%s6128_s15 + $0x328] sm:$0xff]  }
 0x1b7   : > { %8508 = vst [vmem:[#allocation61_spill] sm:$0xff] %v6802_v33  ;;  %v3163_v33 = vmax.f32 %v2920_v52, 0.0  ;;  %v3161_v22 = vmax.f32 %v2918_v50, 0.0  ;;  %v2919_v29 = vadd.f32 %v6540_v10, %v2669_v34  ;;  %5453 = vmatprep.mubr.msk.bf16.mxu0 %vm1194_vm0, %v6025_v2  ;;  %v2609_v52 = vmul.f32 %v6517_v54, %v6376_v63 }
 0x1b8   : > { %v3164_v58 = vmax.f32 %v2921_v57, 0.0  ;;  %v2614_v50 = vmul.f32 %v6380_v0, %v6517_v54  ;;  %v8512_v34 = vmax.f32 %v6597_v31, 0.0  ;;  %v2612_v63 = vmul.f32 %v6517_v54, %v6382_v1  ;;  %v6859_v31 = vpop.f32.mrb[26].mxu1 }
 0x1b9   : > { %v6840_v25 = vmax.f32 %v8510_v39, %v3163_v33  ;;  %v3162_v51 = vmax.f32 %v2919_v29, 0.0  ;;  %v5347_v61 = vpop.f32.mrb[92].mxu0  ;;  %v2615_v4 = vmul.f32 %v6385_v3, %v6517_v54  ;;  %v8514_v33 = vmax.f32 %v6610_v60, 0.0 }
 0x1ba   : > { %v6847_v2 = vmax.f32 %v8512_v34, %v3161_v22  ;;  %v2674_v39 = vmul.f32 %v5347_v61, %v6517_v54  ;;  %v1967_v0 = vpop.f32.mrb[93].mxu0  ;;  %v2613_v29 = vmul.f32 %v6517_v54, %v6388_v5  ;;  %v8516_v1 = vmax.f32 %v6613_v36, 0.0 }
 0x1bb   : > { %8511 = vst [vmem:[#allocation63_spill] sm:$0xff] %v6840_v25  ;;  %v6855_v57 = vmax.f32 %v8514_v33, %v3164_v58  ;;  %v2672_v3 = vmul.f32 %v6517_v54, %v1967_v0  ;;  %v5348_v60 = vpop.f32.mrb[94].mxu0  ;;  %v6027_v58 = vld [vmem:[%s6128_s15 + $0x330] sm:$0xff]   ;;  %v6870_v33 = vpop.f32.mrb[27].mxu1  ;;  %v6874_v30 = vadd.f32 %v6540_v10, %v2609_v52  ;;  %v6881_v36 = vadd.f32 %v6540_v10, %v2614_v50 }
 0x1bc   : > { %8513 = vst [vmem:[#allocation64_spill] sm:$0xff] %v6847_v2  ;;  %v6866_v34 = vmax.f32 %v8516_v1, %v3162_v51  ;;  %v2924_v22 = vadd.f32 %v6540_v10, %v2674_v39  ;;  %v1970_v5 = vpop.f32.mrb[95].mxu0  ;;  %v6878_v2 = vpop.f32.mrb[28].mxu1  ;;  %v2618_v51 = vmul.f32 %v6392_v6, %v6517_v54  ;;  %v6890_v52 = vadd.f32 %v6540_v10, %v2612_v63  ;;  %v6029_v63 = vld [vmem:[%s6128_s15 + $0x340] sm:$0xff]  }
 0x1bd   : > { %8515 = vst [vmem:[#allocation65_spill] sm:$0xff] %v6855_v57  ;;  %v2675_v57 = vmul.f32 %v5348_v60, %v6517_v54  ;;  %8518 = vst [vmem:[#allocation67_spill] sm:$0xff] %v6878_v2  ;;  %v2922_v0 = vadd.f32 %v6540_v10, %v2672_v3  ;;  %v2673_v1 = vmul.f32 %v6517_v54, %v1970_v5  ;;  %v6887_v61 = vpop.f32.mrb[29].mxu1 }
 0x1be   : > { %8517 = vst [vmem:[#allocation66_spill] sm:$0xff] %v6866_v34  ;;  %v6893_v39 = vadd.f32 %v6540_v10, %v2615_v4  ;;  %v3167_v60 = vmax.f32 %v2924_v22, 0.0  ;;  %5454 = vmatmul.mubr.msk.bf16.gmra.mrb[200].mxu0 %vm1194_vm0, %v6026_v16  ;;  %v5496_v50 = vpop.f32.mrb[30].mxu1  ;;  %v6898_v6 = vadd.f32 %v6540_v10, %v2613_v29  ;;  %v2616_v3 = vmul.f32 %v6517_v54, %v6394_v7  ;;  %v6028_v29 = vld [vmem:[%s6128_s15 + $0x338] sm:$0xff]  }
 0x1bf   : > { %v2925_v25 = vadd.f32 %v6540_v10, %v2675_v57  ;;  %v3165_v5 = vmax.f32 %v2922_v0, 0.0  ;;  %v2923_v34 = vadd.f32 %v6540_v10, %v2673_v1  ;;  %5457 = vmatprep.mubr.msk.bf16.mxu0 %vm1194_vm0, %v6027_v58  ;;  %v2619_v4 = vmul.f32 %v6397_v9, %v6517_v54 }
 0x1c0   : > { %v8519_v16 = vmax.f32 %v6676_v19, 0.0  ;;  %v6913_v7 = vadd.f32 %v6540_v10, %v2618_v51  ;;  %v8521_v0 = vmax.f32 %v6621_v14, 0.0  ;;  %v8523_v19 = vmax.f32 %v6637_v62, 0.0  ;;  %v6944_v51 = vpop.f32.mrb[31].mxu1 }
 0x1c1   : > { %v3168_v22 = vmax.f32 %v2925_v25, 0.0  ;;  %v3166_v58 = vmax.f32 %v2923_v34, 0.0  ;;  %v5351_v50 = vpop.f32.mrb[96].mxu0  ;;  %v6929_v14 = vadd.f32 %v6540_v10, %v2616_v3  ;;  %v8525_v34 = vmax.f32 %v6658_v40, 0.0  ;;  %8527 = vst [vmem:[#allocation72_spill] sm:$0xff] %v6944_v51 }
 0x1c2   : > { %v6909_v57 = vmax.f32 %v8519_v16, %v3167_v60  ;;  %v6917_v1 = vmax.f32 %v8521_v0, %v3165_v5  ;;  %v2678_v25 = vmul.f32 %v5351_v50, %v6517_v54  ;;  %v1983_v16 = vpop.f32.mrb[97].mxu0  ;;  %v6938_v62 = vadd.f32 %v6540_v10, %v2619_v4 }
 0x1c3   : > { %v6923_v60 = vmax.f32 %v8523_v19, %v3168_v22  ;;  %v6933_v5 = vmax.f32 %v8525_v34, %v3166_v58  ;;  %v2676_v0 = vmul.f32 %v6517_v54, %v1983_v16  ;;  %v5352_v9 = vpop.f32.mrb[98].mxu0  ;;  %v2617_v22 = vmul.f32 %v6517_v54, %v6400_v11 }
 0x1c4   : > { %8520 = vst [vmem:[#allocation68_spill] sm:$0xff] %v6909_v57  ;;  %8522 = vst [vmem:[#allocation69_spill] sm:$0xff] %v6917_v1  ;;  %v2928_v50 = vadd.f32 %v6540_v10, %v2678_v25  ;;  %v2679_v19 = vmul.f32 %v5352_v9, %v6517_v54  ;;  %v1986_v3 = vpop.f32.mrb[99].mxu0  ;;  %v2622_v58 = vmul.f32 %v6404_v12, %v6517_v54  ;;  %v8594_v57 = vld [vmem:[#allocation25_spill] sm:$0xff] }
 0x1c5   : > { %8524 = vst [vmem:[#allocation70_spill] sm:$0xff] %v6923_v60  ;;  %8526 = vst [vmem:[#allocation71_spill] sm:$0xff] %v6933_v5  ;;  %v2926_v16 = vadd.f32 %v6540_v10, %v2676_v0  ;;  %v2677_v4 = vmul.f32 %v6517_v54, %v1986_v3  ;;  %v2620_v34 = vmul.f32 %v6517_v54, %v6406_v13 }
 0x1c6   : > { %v2623_v11 = vmul.f32 %v6409_v15, %v6517_v54  ;;  %v3171_v25 = vmax.f32 %v2928_v50, 0.0  ;;  %v2929_v9 = vadd.f32 %v6540_v10, %v2679_v19  ;;  %5458 = vmatmul.mubr.msk.bf16.gmra.mrb[204].mxu0 %vm1194_vm0, %v6028_v29  ;;  %v2621_v12 = vmul.f32 %v6517_v54, %v6412_v20 }
 0x1c7   : > { %v3169_v60 = vmax.f32 %v2926_v16, 0.0  ;;  %v2927_v0 = vadd.f32 %v6540_v10, %v2677_v4  ;;  %5461 = vmatprep.mubr.msk.bf16.mxu0 %vm1194_vm0, %v6029_v63  ;;  %v6964_v15 = vadd.f32 %v6540_v10, %v2617_v22  ;;  %v8528_v50 = vmax.f32 %v6697_v47, 0.0 }
 0x1c8   : > { %v3172_v29 = vmax.f32 %v2929_v9, 0.0  ;;  %v6971_v3 = vadd.f32 %v6540_v10, %v2622_v58  ;;  %v2626_v20 = vmul.f32 %v6416_v24, %v6517_v54  ;;  %v8530_v16 = vmax.f32 %v6661_v18, 0.0  ;;  %v6030_v24 = vld [vmem:[%s6128_s15 + $0x348] sm:$0xff]  }
 0x1c9   : > { %v6968_v19 = vmax.f32 %v8528_v50, %v3171_v25  ;;  %v3170_v63 = vmax.f32 %v2927_v0, 0.0  ;;  %v5355_v13 = vpop.f32.mrb[100].mxu0  ;;  %v6980_v22 = vadd.f32 %v6540_v10, %v2620_v34  ;;  %v6983_v47 = vadd.f32 %v6540_v10, %v2623_v11 }
 0x1ca   : > { %v6977_v4 = vmax.f32 %v8530_v16, %v3169_v60  ;;  %v8532_v25 = vmax.f32 %v6679_v45, 0.0  ;;  %v2682_v58 = vmul.f32 %v5355_v13, %v6517_v54  ;;  %v1999_v50 = vpop.f32.mrb[101].mxu0  ;;  %v6992_v18 = vadd.f32 %v6540_v10, %v2621_v12 }
 0x1cb   : > { %8529 = vst [vmem:[#allocation73_spill] sm:$0xff] %v6968_v19  ;;  %v2624_v60 = vmul.f32 %v6517_v54, %v6418_v26  ;;  %v8534_v34 = vmax.f32 %v6687_v46, 0.0  ;;  %v2680_v11 = vmul.f32 %v6517_v54, %v1999_v50  ;;  %v5356_v16 = vpop.f32.mrb[102].mxu0  ;;  %v2627_v13 = vmul.f32 %v6421_v32, %v6517_v54  ;;  %v6032_v50 = vld [vmem:[%s8420_s4 + $0x18] sm:$0xff]  }
 0x1cc   : > { %8531 = vst [vmem:[#allocation74_spill] sm:$0xff] %v6977_v4  ;;  %v6987_v9 = vmax.f32 %v8532_v25, %v3172_v29  ;;  %v2932_v29 = vadd.f32 %v6540_v10, %v2682_v58  ;;  %v2683_v12 = vmul.f32 %v5356_v16, %v6517_v54  ;;  %v2002_v25 = vpop.f32.mrb[103].mxu0  ;;  %v7008_v26 = vadd.f32 %v6540_v10, %v2626_v20 }
 0x1cd   : > { %v6998_v0 = vmax.f32 %v8534_v34, %v3170_v63  ;;  %v2930_v46 = vadd.f32 %v6540_v10, %v2680_v11  ;;  %v2681_v63 = vmul.f32 %v6517_v54, %v2002_v25  ;;  %v7021_v40 = vadd.f32 %v6540_v10, %v2624_v60  ;;  %5500 = vmatpush3.bf16.msra.mxu1 %v6032_v50 }
 0x1ce   : > { %8533 = vst [vmem:[#allocation75_spill] sm:$0xff] %v6987_v9  ;;  %v3175_v34 = vmax.f32 %v2932_v29, 0.0  ;;  %v2933_v16 = vadd.f32 %v6540_v10, %v2683_v12  ;;  %5462 = vmatmul.mubr.msk.bf16.gmra.mrb[208].mxu0 %vm1194_vm0, %v6030_v24  ;;  %v7025_v45 = vadd.f32 %v6540_v10, %v2627_v13  ;;  %v2625_v58 = vmul.f32 %v6517_v54, %v6424_v38  ;;  %v8541_v9 = vld [vmem:[#allocation3_spill] sm:$0xff] }
 0x1cf   : > { %8535 = vst [vmem:[#allocation76_spill] sm:$0xff] %v6998_v0  ;;  %v3173_v11 = vmax.f32 %v2930_v46, 0.0  ;;  %v2931_v25 = vadd.f32 %v6540_v10, %v2681_v63  ;;  %v8536_v29 = vmax.f32 %v6764_v55, 0.0  ;;  %5521 = vmatprep.subr.bf16.mxu1 %v8506_v28  ;;  %v8538_v46 = vld [vmem:[#allocation2_spill] sm:$0xff]  ;;  %v8539_v63 = vmax.f32 %v6690_v17, 0.0  ;;  %v8542_v55 = vld [vmem:[#allocation4_spill] sm:$0xff] }
 0x1d0   : > { %v3176_v24 = vmax.f32 %v2933_v16, 0.0  ;;  %v2630_v32 = vmul.f32 %v8538_v46, %v6517_v54  ;;  %v2628_v38 = vmul.f32 %v6517_v54, %v8541_v9  ;;  %v8543_v16 = vmax.f32 %v6702_v27, 0.0  ;;  %v8545_v17 = vld [vmem:[#allocation5_spill] sm:$0xff] }
 0x1d1   : > { %v7031_v12 = vmax.f32 %v8536_v29, %v3175_v34  ;;  %v7039_v50 = vmax.f32 %v8539_v63, %v3173_v11  ;;  %v3174_v13 = vmax.f32 %v2931_v25, 0.0  ;;  %v5359_v20 = vpop.f32.mrb[104].mxu0  ;;  %v2631_v34 = vmul.f32 %v8542_v55, %v6517_v54 }
 0x1d2   : > { %v7047_v29 = vmax.f32 %v8543_v16, %v3176_v24  ;;  %v2686_v60 = vmul.f32 %v5359_v20, %v6517_v54  ;;  %v2629_v11 = vmul.f32 %v6517_v54, %v8545_v17  ;;  %v8546_v25 = vmax.f32 %v6711_v41, 0.0  ;;  %v8548_v41 = vld [vmem:[#allocation6_spill] sm:$0xff] }
 0x1d3   : > { %8537 = vst [vmem:[#allocation77_spill] sm:$0xff] %v7031_v12  ;;  %8540 = vst [vmem:[#allocation2_spill] sm:$0xff] %v7039_v50  ;;  %v2015_v12 = vpop.f32.mrb[105].mxu0  ;;  %v7060_v27 = vadd.f32 %v6540_v10, %v2625_v58  ;;  %v7065_v46 = vadd.f32 %v6540_v10, %v2630_v32  ;;  %v7075_v58 = vadd.f32 %v6540_v10, %v2631_v34  ;;  %v8549_v32 = vld [vmem:[#allocation7_spill] sm:$0xff]  ;;  %v8551_v34 = vmax.f32 %v6796_v53, 0.0 }
 0x1d4   : > { %8544 = vst [vmem:[#allocation3_spill] sm:$0xff] %v7047_v29  ;;  %v7055_v63 = vmax.f32 %v8546_v25, %v3174_v13  ;;  %v2684_v9 = vmul.f32 %v6517_v54, %v2015_v12  ;;  %v5360_v50 = vpop.f32.mrb[106].mxu0  ;;  %v2936_v20 = vadd.f32 %v6540_v10, %v2686_v60  ;;  %v2634_v13 = vmul.f32 %v8548_v41, %v6517_v54 }
 0x1d5   : > { %v2687_v24 = vmul.f32 %v5360_v50, %v6517_v54  ;;  %v2018_v16 = vpop.f32.mrb[107].mxu0  ;;  %v7072_v25 = vadd.f32 %v6540_v10, %v2628_v38  ;;  %v7079_v55 = vadd.f32 %v6540_v10, %v2629_v11  ;;  %v2632_v29 = vmul.f32 %v6517_v54, %v8549_v32  ;;  %v8550_v38 = vld [vmem:[#allocation8_spill] sm:$0xff] }
 0x1d6   : > { %8547 = vst [vmem:[#allocation4_spill] sm:$0xff] %v7055_v63  ;;  %v2934_v17 = vadd.f32 %v6540_v10, %v2684_v9  ;;  %v2685_v12 = vmul.f32 %v6517_v54, %v2018_v16  ;;  %v3179_v60 = vmax.f32 %v2936_v20, 0.0  ;;  %v2635_v63 = vmul.f32 %v8550_v38, %v6517_v54 }
 0x1d7   : > { %v2937_v50 = vadd.f32 %v6540_v10, %v2687_v24  ;;  %v7093_v11 = vadd.f32 %v6540_v10, %v2634_v13  ;;  %v8553_v32 = vmax.f32 %v6736_v49, 0.0  ;;  %v8555_v53 = vmax.f32 %v6772_v42, 0.0  ;;  %v8559_v42 = vld [vmem:[#allocation9_spill] sm:$0xff]  ;;  %v8561_v13 = vld [vmem:[#allocation11_spill] sm:$0xff] }
 0x1d8   : > { %v3177_v41 = vmax.f32 %v2934_v17, 0.0  ;;  %v2935_v9 = vadd.f32 %v6540_v10, %v2685_v12  ;;  %v7089_v4 = vmax.f32 %v8551_v34, %v3179_v60  ;;  %v7108_v24 = vadd.f32 %v6540_v10, %v2632_v29 }
 0x1d9   : > { %v3180_v20 = vmax.f32 %v2937_v50, 0.0  ;;  %v5363_v19 = vpop.f32.mrb[108].mxu0  ;;  %v8557_v49 = vmax.f32 %v6781_v21, 0.0  ;;  %v7116_v38 = vadd.f32 %v6540_v10, %v2635_v63  ;;  %v8560_v21 = vld [vmem:[#allocation10_spill] sm:$0xff]  ;;  %v2636_v63 = vmul.f32 %v6517_v54, %v8561_v13 }
 0x1da   : > { %8552 = vst [vmem:[#allocation5_spill] sm:$0xff] %v7089_v4  ;;  %v7097_v17 = vmax.f32 %v8553_v32, %v3177_v41  ;;  %v3178_v12 = vmax.f32 %v2935_v9, 0.0  ;;  %v2690_v50 = vmul.f32 %v5363_v19, %v6517_v54  ;;  %v2031_v34 = vpop.f32.mrb[109].mxu0  ;;  %v8563_v4 = vld [vmem:[#allocation13_spill] sm:$0xff]  ;;  %v8564_v13 = vmax.f32 %v6874_v30, 0.0 }
 0x1db   : > { %v7103_v60 = vmax.f32 %v8555_v53, %v3180_v20  ;;  %v2688_v9 = vmul.f32 %v6517_v54, %v2031_v34  ;;  %v5364_v32 = vpop.f32.mrb[110].mxu0  ;;  %v2633_v20 = vmul.f32 %v6517_v54, %v8559_v42  ;;  %v2637_v29 = vmul.f32 %v6517_v54, %v8563_v4 }
 0x1dc   : > { %8554 = vst [vmem:[#allocation6_spill] sm:$0xff] %v7097_v17  ;;  %v7112_v41 = vmax.f32 %v8557_v49, %v3178_v12  ;;  %v2940_v19 = vadd.f32 %v6540_v10, %v2690_v50  ;;  %v2691_v53 = vmul.f32 %v5364_v32, %v6517_v54  ;;  %v2034_v16 = vpop.f32.mrb[111].mxu0  ;;  %v2638_v12 = vmul.f32 %v8560_v21, %v6517_v54 }
 0x1dd   : > { %8556 = vst [vmem:[#allocation7_spill] sm:$0xff] %v7103_v60  ;;  %v2938_v49 = vadd.f32 %v6540_v10, %v2688_v9  ;;  %v2689_v34 = vmul.f32 %v6517_v54, %v2034_v16  ;;  %v8562_v60 = vld [vmem:[#allocation12_spill] sm:$0xff]  ;;  %v7138_v16 = vadd.f32 %v6540_v10, %v2633_v20  ;;  %v8567_v4 = vmax.f32 %v6784_v43, 0.0 }
 0x1de   : > { %8558 = vst [vmem:[#allocation8_spill] sm:$0xff] %v7112_v41  ;;  %v2639_v42 = vmul.f32 %v8562_v60, %v6517_v54  ;;  %v3183_v17 = vmax.f32 %v2940_v19, 0.0  ;;  %v2941_v50 = vadd.f32 %v6540_v10, %v2691_v53  ;;  %v7145_v19 = vadd.f32 %v6540_v10, %v2638_v12  ;;  %v8566_v53 = vld [vmem:[#allocation14_spill] sm:$0xff] }
 0x1df   : > { %v3181_v41 = vmax.f32 %v2938_v49, 0.0  ;;  %v2939_v21 = vadd.f32 %v6540_v10, %v2689_v34  ;;  %v2642_v32 = vmul.f32 %v8566_v53, %v6517_v54  ;;  %v7154_v20 = vadd.f32 %v6540_v10, %v2636_v63 }
 0x1e0   : > { %v7142_v0 = vmax.f32 %v8564_v13, %v3183_v17  ;;  %v3184_v60 = vmax.f32 %v2941_v50, 0.0  ;;  %v7157_v30 = vadd.f32 %v6540_v10, %v2639_v42  ;;  %v8569_v17 = vmax.f32 %v6817_v35, 0.0 }
 0x1e1   : > { %v7151_v49 = vmax.f32 %v8567_v4, %v3181_v41  ;;  %v3182_v34 = vmax.f32 %v2939_v21, 0.0  ;;  %v5367_v9 = vpop.f32.mrb[112].mxu0  ;;  %v7165_v53 = vadd.f32 %v6540_v10, %v2637_v29  ;;  %v8571_v43 = vmax.f32 %v6829_v8, 0.0  ;;  %v8573_v4 = vld [vmem:[#allocation15_spill] sm:$0xff] }
 0x1e2   : > { %8565 = vst [vmem:[#allocation9_spill] sm:$0xff] %v7142_v0  ;;  %v7161_v50 = vmax.f32 %v8569_v17, %v3184_v60  ;;  %v2694_v12 = vmul.f32 %v5367_v9, %v6517_v54  ;;  %v2047_v13 = vpop.f32.mrb[113].mxu0  ;;  %v2640_v35 = vmul.f32 %v6517_v54, %v8573_v4  ;;  %v7181_v29 = vadd.f32 %v6540_v10, %v2642_v32 }
 0x1e3   : > { %8568 = vst [vmem:[#allocation10_spill] sm:$0xff] %v7151_v49  ;;  %v7169_v41 = vmax.f32 %v8571_v43, %v3182_v34  ;;  %v2692_v63 = vmul.f32 %v6517_v54, %v2047_v13  ;;  %v5368_v21 = vpop.f32.mrb[114].mxu0  ;;  %v8576_v43 = vmax.f32 %v6898_v6, 0.0 }
 0x1e4   : > { %8570 = vst [vmem:[#allocation11_spill] sm:$0xff] %v7161_v50  ;;  %v2944_v60 = vadd.f32 %v6540_v10, %v2694_v12  ;;  %v2695_v9 = vmul.f32 %v5368_v21, %v6517_v54  ;;  %v2050_v17 = vpop.f32.mrb[115].mxu0  ;;  %v8574_v12 = vld [vmem:[#allocation16_spill] sm:$0xff]  ;;  %v7193_v0 = vadd.f32 %v6540_v10, %v2640_v35 }
 0x1e5   : > { %8572 = vst [vmem:[#allocation12_spill] sm:$0xff] %v7169_v41  ;;  %v2942_v34 = vadd.f32 %v6540_v10, %v2692_v63  ;;  %v2693_v13 = vmul.f32 %v6517_v54, %v2050_v17  ;;  %v2643_v4 = vmul.f32 %v8574_v12, %v6517_v54  ;;  %v8575_v63 = vld [vmem:[#allocation17_spill] sm:$0xff]  ;;  %v8578_v12 = vld [vmem:[#allocation18_spill] sm:$0xff] }
 0x1e6   : > { %v3187_v21 = vmax.f32 %v2944_v60, 0.0  ;;  %v2945_v42 = vadd.f32 %v6540_v10, %v2695_v9  ;;  %v2641_v17 = vmul.f32 %v6517_v54, %v8575_v63  ;;  %v2646_v50 = vmul.f32 %v8578_v12, %v6517_v54  ;;  %v8581_v63 = vld [vmem:[#allocation19_spill] sm:$0xff]  ;;  %v8584_v12 = vld [vmem:[#allocation20_spill] sm:$0xff] }
 0x1e7   : > { %v3185_v8 = vmax.f32 %v2942_v34, 0.0  ;;  %v2943_v32 = vadd.f32 %v6540_v10, %v2693_v13  ;;  %v8579_v34 = vmax.f32 %v6834_v59, 0.0  ;;  %v7209_v28 = vadd.f32 %v6540_v10, %v2643_v4 }
 0x1e8   : > { %v7199_v41 = vmax.f32 %v8576_v43, %v3187_v21  ;;  %v3188_v60 = vmax.f32 %v2945_v42, 0.0  ;;  %v2644_v6 = vmul.f32 %v6517_v54, %v8581_v63  ;;  %v8582_v43 = vmax.f32 %v6881_v36, 0.0 }
 0x1e9   : > { %v7206_v49 = vmax.f32 %v8579_v34, %v3185_v8  ;;  %v3186_v13 = vmax.f32 %v2943_v32, 0.0  ;;  %v5371_v35 = vpop.f32.mrb[116].mxu0  ;;  %v2647_v59 = vmul.f32 %v8584_v12, %v6517_v54  ;;  %v8585_v8 = vld [vmem:[#allocation21_spill] sm:$0xff]  ;;  %v8586_v34 = vmax.f32 %v6890_v52, 0.0 }
 0x1ea   : > { %8577 = vst [vmem:[#allocation13_spill] sm:$0xff] %v7199_v41  ;;  %v7215_v42 = vmax.f32 %v8582_v43, %v3188_v60  ;;  %v2698_v21 = vmul.f32 %v5371_v35, %v6517_v54  ;;  %v2063_v9 = vpop.f32.mrb[117].mxu0  ;;  %v2645_v32 = vmul.f32 %v6517_v54, %v8585_v8  ;;  %v7229_v60 = vadd.f32 %v6540_v10, %v2641_v17  ;;  %v8588_v8 = vld [vmem:[#allocation23_spill] sm:$0xff] }
 0x1eb   : > { %8580 = vst [vmem:[#allocation14_spill] sm:$0xff] %v7206_v49  ;;  %v7224_v4 = vmax.f32 %v8586_v34, %v3186_v13  ;;  %v2696_v49 = vmul.f32 %v6517_v54, %v2063_v9  ;;  %v5372_v63 = vpop.f32.mrb[118].mxu0  ;;  %v2792_v9 = vmul.f32 %v6517_v54, %v8588_v8  ;;  %v7242_v17 = vadd.f32 %v6540_v10, %v2644_v6  ;;  %v8589_v8 = vld [vmem:[#allocation24_spill] sm:$0xff] }
 0x1ec   : > { %8583 = vst [vmem:[#allocation15_spill] sm:$0xff] %v7215_v42  ;;  %v2948_v35 = vadd.f32 %v6540_v10, %v2698_v21  ;;  %v2699_v43 = vmul.f32 %v5372_v63, %v6517_v54  ;;  %v2066_v12 = vpop.f32.mrb[119].mxu0  ;;  %v7234_v42 = vadd.f32 %v6540_v10, %v2646_v50  ;;  %v7246_v63 = vadd.f32 %v6540_v10, %v2647_v59 }
 0x1ed   : > { %8587 = vst [vmem:[#allocation16_spill] sm:$0xff] %v7224_v4  ;;  %v2946_v52 = vadd.f32 %v6540_v10, %v2696_v49  ;;  %v2697_v13 = vmul.f32 %v6517_v54, %v2066_v12  ;;  %v7249_v50 = vadd.f32 %v6540_v10, %v2645_v32  ;;  %v2650_v34 = vmul.f32 %v8589_v8, %v6517_v54 }
 0x1ee   : > { %v3191_v36 = vmax.f32 %v2948_v35, 0.0  ;;  %v2949_v21 = vadd.f32 %v6540_v10, %v2699_v43  ;;  %v8590_v6 = vmax.f32 %v6964_v15, 0.0  ;;  %v8592_v59 = vmax.f32 %v6893_v39, 0.0  ;;  %v8600_v43 = vld [vmem:[#allocation27_spill] sm:$0xff] }
 0x1ef   : > { %v3189_v49 = vmax.f32 %v2946_v52, 0.0  ;;  %v2947_v12 = vadd.f32 %v6540_v10, %v2697_v13  ;;  %v7265_v13 = vadd.f32 %v6540_v10, %v2792_v9  ;;  %v2648_v8 = vmul.f32 %v6517_v54, %v8594_v57 }
 0x1f0   : > { %v7257_v4 = vmax.f32 %v8590_v6, %v3191_v36  ;;  %v3192_v35 = vmax.f32 %v2949_v21, 0.0  ;;  %v8595_v15 = vmax.f32 %v6913_v7, 0.0  ;;  %v7283_v57 = vadd.f32 %v6540_v10, %v2650_v34 }
 0x1f1   : > { %v7262_v1 = vmax.f32 %v8592_v59, %v3189_v49  ;;  %v3190_v32 = vmax.f32 %v2947_v12, 0.0  ;;  %v5375_v52 = vpop.f32.mrb[120].mxu0  ;;  %v8597_v12 = vmax.f32 %v6929_v14, 0.0  ;;  %v2651_v49 = vmul.f32 %v8600_v43, %v6517_v54 }
 0x1f2   : > { %8591 = vst [vmem:[#allocation17_spill] sm:$0xff] %v7257_v4  ;;  %v7272_v36 = vmax.f32 %v8595_v15, %v3192_v35  ;;  %v2702_v21 = vmul.f32 %v5375_v52, %v6517_v54  ;;  %v2079_v6 = vpop.f32.mrb[121].mxu0  ;;  %v8599_v15 = vld [vmem:[#allocation22_spill] sm:$0xff]  ;;  %v7295_v34 = vadd.f32 %v6540_v10, %v2648_v8  ;;  %v8604_v8 = vmax.f32 %v6992_v18, 0.0 }
 0x1f3   : > { %8593 = vst [vmem:[#allocation18_spill] sm:$0xff] %v7262_v1  ;;  %v7279_v9 = vmax.f32 %v8597_v12, %v3190_v32  ;;  %v2700_v59 = vmul.f32 %v6517_v54, %v2079_v6  ;;  %v5376_v41 = vpop.f32.mrb[122].mxu0  ;;  %v2794_v39 = vmul.f32 %v8599_v15, %v6517_v54  ;;  %v8602_v1 = vld [vmem:[#allocation29_spill] sm:$0xff] }
 0x1f4   : > { %8596 = vst [vmem:[#allocation19_spill] sm:$0xff] %v7272_v36  ;;  %v2952_v7 = vadd.f32 %v6540_v10, %v2702_v21  ;;  %v2703_v35 = vmul.f32 %v5376_v41, %v6517_v54  ;;  %v2082_v52 = vpop.f32.mrb[123].mxu0  ;;  %v8601_v41 = vld [vmem:[#allocation26_spill] sm:$0xff]  ;;  %v2649_v15 = vmul.f32 %v6517_v54, %v8602_v1  ;;  %v8606_v1 = vmax.f32 %v6938_v62, 0.0 }
 0x1f5   : > { %8598 = vst [vmem:[#allocation20_spill] sm:$0xff] %v7279_v9  ;;  %v2950_v14 = vadd.f32 %v6540_v10, %v2700_v59  ;;  %v2701_v32 = vmul.f32 %v6517_v54, %v2082_v52  ;;  %v2795_v36 = vmul.f32 %v8601_v41, %v6517_v54  ;;  %v8603_v59 = vld [vmem:[#allocation28_spill] sm:$0xff]  ;;  %v7314_v41 = vadd.f32 %v6540_v10, %v2651_v49 }
 0x1f6   : > { %v3195_v12 = vmax.f32 %v2952_v7, 0.0  ;;  %v2953_v21 = vadd.f32 %v6540_v10, %v2703_v35  ;;  %v2793_v52 = vmul.f32 %v6517_v54, %v8603_v59  ;;  %v7311_v35 = vadd.f32 %v6540_v10, %v2794_v39  ;;  %v8608_v59 = vld [vmem:[#allocation31_spill] sm:$0xff]  ;;  %v7330_v39 = vld [vmem:[%s8418_s2] ss:$0 sm:$0xff] }
 0x1f7   : > { %v3193_v4 = vmax.f32 %v2950_v14, 0.0  ;;  %v2951_v43 = vadd.f32 %v6540_v10, %v2701_v32  ;;  %v2796_v6 = vmul.f32 %v6517_v54, %v8608_v59  ;;  %v7334_v49 = vadd.f32 %v6540_v10, %v2795_v36  ;;  %v8613_v59 = vld [vmem:[#allocation32_spill] sm:$0xff] }
 0x1f8   : > { %v7308_v9 = vmax.f32 %v8604_v8, %v3195_v12  ;;  %v3196_v7 = vmax.f32 %v2953_v21, 0.0  ;;  %v8609_v12 = vmax.f32 %v6971_v3, 0.0  ;;  %v8611_v54 = vmax.f32 %v6980_v22, 0.0 }
 0x1f9   : > { %v7318_v14 = vmax.f32 %v8606_v1, %v3193_v4  ;;  %v3194_v32 = vmax.f32 %v2951_v43, 0.0  ;;  %v5379_v5 = vpop.f32.mrb[124].mxu0  ;;  %v7337_v43 = vadd.f32 %v6540_v10, %v2649_v15  ;;  %v7345_v1 = vadd.f32 %v6540_v10, %v2793_v52 }
 0x1fa   : > { %8605 = vst [vmem:[#allocation21_spill] sm:$0xff] %v7308_v9  ;;  %v7325_v21 = vmax.f32 %v8609_v12, %v3196_v7  ;;  %v2706_v62 = vmul.f32 %v7330_v39, %v5379_v5  ;;  %v2095_v4 = vpop.f32.mrb[125].mxu0  ;;  %v2654_v5 = vmul.f32 %v7330_v39, %v8613_v59  ;;  %v8618_v22 = vmax.f32 %v6983_v47, 0.0 }
 0x1fb   : > { %8607 = vst [vmem:[#allocation23_spill] sm:$0xff] %v7318_v14  ;;  %v7341_v8 = vmax.f32 %v8611_v54, %v3194_v32  ;;  %v2704_v3 = vmul.f32 %v7330_v39, %v2095_v4  ;;  %v5380_v7 = vpop.f32.mrb[126].mxu0  ;;  %v7356_v32 = vld [vmem:[%s8419_s3] ss:$0 sm:$0xff] }
 0x1fc   : > { %8610 = vst [vmem:[#allocation24_spill] sm:$0xff] %v7325_v21  ;;  %v2956_v12 = vadd.f32 %v6540_v10, %v2706_v62  ;;  %v2707_v36 = vmul.f32 %v7330_v39, %v5380_v7  ;;  %v2098_v18 = vpop.f32.mrb[127].mxu0  ;;  %v7361_v54 = vadd.f32 %v7356_v32, %v2796_v6  ;;  %v8614_v10 = vld [vmem:[#allocation33_spill] sm:$0xff]  ;;  %v8615_v6 = vld [vmem:[#allocation35_spill] sm:$0xff] }
 0x1fd   : > { %8612 = vst [vmem:[#allocation25_spill] sm:$0xff] %v7341_v8  ;;  %v2954_v52 = vadd.f32 %v7356_v32, %v2704_v3  ;;  %v2705_v4 = vmul.f32 %v7330_v39, %v2098_v18  ;;  %v2652_v62 = vmul.f32 %v7330_v39, %v8614_v10  ;;  %v7371_v18 = vadd.f32 %v7356_v32, %v2654_v5  ;;  %v8620_v3 = vld [vmem:[#allocation34_spill] sm:$0xff] }
 0x1fe   : > { %v3199_v7 = vmax.f32 %v2956_v12, 0.0  ;;  %v2957_v59 = vadd.f32 %v7356_v32, %v2707_v36  ;;  %v2655_v9 = vmul.f32 %v7330_v39, %v8615_v6  ;;  %v8616_v10 = vmax.f32 %v7060_v27, 0.0  ;;  %v8621_v6 = vld [vmem:[#allocation37_spill] sm:$0xff] }
 0x1ff   : > { %v3197_v21 = vmax.f32 %v2954_v52, 0.0  ;;  %v2955_v14 = vadd.f32 %v7356_v32, %v2705_v4  ;;  %v2799_v5 = vmul.f32 %v7330_v39, %v8620_v3  ;;  %v7387_v2 = vadd.f32 %v7356_v32, %v2652_v62  ;;  %v8626_v4 = vld [vmem:[#allocation30_spill] sm:$0xff] }
 0x200   : > { %v7377_v12 = vmax.f32 %v8616_v10, %v3199_v7  ;;  %v3200_v36 = vmax.f32 %v2957_v59, 0.0  ;;  %v2653_v27 = vmul.f32 %v7330_v39, %v8621_v6  ;;  %v8622_v7 = vmax.f32 %v7008_v26, 0.0 }
 0x201   : > { %v7381_v8 = vmax.f32 %v8618_v22, %v3197_v21  ;;  %v3198_v52 = vmax.f32 %v2955_v14, 0.0  ;;  %v5383_v15 = vpop.f32.mrb[128].mxu0  ;;  %v8624_v14 = vmax.f32 %v7021_v40, 0.0  ;;  %v2798_v62 = vmul.f32 %v7330_v39, %v8626_v4  ;;  %v8629_v4 = vld [vmem:[#allocation39_spill] sm:$0xff] }
 0x202   : > { %8617 = vst [vmem:[#allocation22_spill] sm:$0xff] %v7377_v12  ;;  %v7393_v59 = vmax.f32 %v8622_v7, %v3200_v36  ;;  %v2710_v47 = vmul.f32 %v7330_v39, %v5383_v15  ;;  %v2111_v21 = vpop.f32.mrb[129].mxu0  ;;  %v7407_v36 = vadd.f32 %v7356_v32, %v2655_v9  ;;  %v7420_v9 = vadd.f32 %v7356_v32, %v2653_v27 }
 0x203   : > { %8619 = vst [vmem:[#allocation27_spill] sm:$0xff] %v7381_v8  ;;  %v7398_v22 = vmax.f32 %v8624_v14, %v3198_v52  ;;  %v2708_v10 = vmul.f32 %v7330_v39, %v2111_v21  ;;  %v5384_v3 = vpop.f32.mrb[130].mxu0  ;;  %v8627_v8 = vld [vmem:[#allocation36_spill] sm:$0xff]  ;;  %v7414_v14 = vadd.f32 %v7356_v32, %v2799_v5  ;;  %v8631_v27 = vmax.f32 %v7079_v55, 0.0 }
 0x204   : > { %8623 = vst [vmem:[#allocation26_spill] sm:$0xff] %v7393_v59  ;;  %v2797_v6 = vmul.f32 %v7330_v39, %v8627_v8  ;;  %8628 = vst [vmem:[#allocation28_spill] sm:$0xff] %v7407_v36  ;;  %v2960_v15 = vadd.f32 %v7356_v32, %v2710_v47  ;;  %v2711_v40 = vmul.f32 %v7330_v39, %v5384_v3  ;;  %v2114_v52 = vpop.f32.mrb[131].mxu0  ;;  %v8635_v36 = vld [vmem:[#allocation41_spill] sm:$0xff]  ;;  %v8636_v55 = vmax.f32 %v7065_v46, 0.0 }
 0x205   : > { %8625 = vst [vmem:[#allocation29_spill] sm:$0xff] %v7398_v22  ;;  %v2958_v7 = vadd.f32 %v7356_v32, %v2708_v10  ;;  %v2709_v21 = vmul.f32 %v7330_v39, %v2114_v52  ;;  %v2800_v8 = vmul.f32 %v7330_v39, %v8629_v4  ;;  %v7425_v10 = vadd.f32 %v7356_v32, %v2798_v62  ;;  %v8630_v4 = vld [vmem:[#allocation40_spill] sm:$0xff] }
 0x206   : > { %v3203_v59 = vmax.f32 %v2960_v15, 0.0  ;;  %v2961_v47 = vadd.f32 %v7356_v32, %v2711_v40  ;;  %v7428_v5 = vadd.f32 %v7356_v32, %v2797_v6  ;;  %v2658_v26 = vmul.f32 %v7330_v39, %v8630_v4 }
 0x207   : > { %v3201_v3 = vmax.f32 %v2958_v7, 0.0  ;;  %v2959_v12 = vadd.f32 %v7356_v32, %v2709_v21  ;;  %v8633_v40 = vmax.f32 %v7025_v45, 0.0  ;;  %v7443_v6 = vadd.f32 %v7356_v32, %v2800_v8  ;;  %v8642_v8 = vld [vmem:[#allocation42_spill] sm:$0xff] }
 0x208   : > { %v7435_v22 = vmax.f32 %v8631_v27, %v3203_v59  ;;  %v3204_v15 = vmax.f32 %v2961_v47, 0.0  ;;  %v2656_v4 = vmul.f32 %v7330_v39, %v8635_v36  ;;  %v7459_v51 = vadd.f32 %v7356_v32, %v2658_v26 }
 0x209   : > { %v7439_v7 = vmax.f32 %v8633_v40, %v3201_v3  ;;  %v3202_v21 = vmax.f32 %v2959_v12, 0.0  ;;  %v5387_v62 = vpop.f32.mrb[132].mxu0  ;;  %v8637_v3 = vmax.f32 %v7072_v25, 0.0  ;;  %v8639_v46 = vmax.f32 %v7265_v13, 0.0 }
 0x20a   : > { %8632 = vst [vmem:[#allocation31_spill] sm:$0xff] %v7435_v22  ;;  %v3366_v59 = vmax.f32 %v8636_v55, %v3204_v15  ;;  %v2714_v47 = vmul.f32 %v7330_v39, %v5387_v62  ;;  %v2127_v45 = vpop.f32.mrb[133].mxu0  ;;  %v8641_v62 = vld [vmem:[#allocation43_spill] sm:$0xff]  ;;  %v2803_v26 = vmul.f32 %v7330_v39, %v8642_v8  ;;  %v7474_v52 = vadd.f32 %v7356_v32, %v2656_v4 }
 0x20b   : > { %8634 = vst [vmem:[#allocation32_spill] sm:$0xff] %v7439_v7  ;;  %v7453_v12 = vmax.f32 %v8637_v3, %v3202_v21  ;;  %v2712_v27 = vmul.f32 %v7330_v39, %v2127_v45  ;;  %v5388_v40 = vpop.f32.mrb[134].mxu0  ;;  %v2659_v55 = vmul.f32 %v7330_v39, %v8641_v62  ;;  %v8646_v8 = vmax.f32 %v7138_v16, 0.0 }
 0x20c   : > { %v7463_v36 = vmax.f32 %v3366_v59, %v8639_v46  ;;  %v2964_v15 = vadd.f32 %v7356_v32, %v2714_v47  ;;  %v2715_v25 = vmul.f32 %v7330_v39, %v5388_v40  ;;  %v2130_v21 = vpop.f32.mrb[135].mxu0  ;;  %8643 = vst [vmem:[#allocation34_spill] sm:$0xff] %v7474_v52  ;;  %v3293_v47 = vmax.f32 %v7443_v6, 0.0  ;;  %v8644_v40 = vld [vmem:[#allocation45_spill] sm:$0xff] }
 0x20d   : > { %8638 = vst [vmem:[#allocation33_spill] sm:$0xff] %v7453_v12  ;;  %v2962_v45 = vadd.f32 %v7356_v32, %v2712_v27  ;;  %v2713_v3 = vmul.f32 %v7330_v39, %v2130_v21  ;;  %v2657_v46 = vmul.f32 %v7330_v39, %v8644_v40  ;;  %v8645_v27 = vld [vmem:[#allocation38_spill] sm:$0xff]  ;;  %v7489_v6 = vadd.f32 %v7356_v32, %v2659_v55  ;;  %v8651_v55 = vld [vmem:[#allocation47_spill] sm:$0xff] }
 0x20e   : > { %8640 = vst [vmem:[#allocation35_spill] sm:$0xff] %v7463_v36  ;;  %v3207_v13 = vmax.f32 %v2964_v15, 0.0  ;;  %v2965_v59 = vadd.f32 %v7356_v32, %v2715_v25  ;;  %v2802_v21 = vmul.f32 %v7330_v39, %v8645_v27  ;;  %v8647_v15 = vld [vmem:[#allocation44_spill] sm:$0xff]  ;;  %v8648_v40 = vmax.f32 %v7075_v58, 0.0 }
 0x20f   : > { %v3205_v36 = vmax.f32 %v2962_v45, 0.0  ;;  %v2963_v62 = vadd.f32 %v7356_v32, %v2713_v3  ;;  %v2801_v25 = vmul.f32 %v7330_v39, %v8647_v15  ;;  %v7494_v52 = vadd.f32 %v7356_v32, %v2803_v26 }
 0x210   : > { %v3369_v4 = vmax.f32 %v8646_v8, %v3207_v13  ;;  %v3208_v22 = vmax.f32 %v2965_v59, 0.0  ;;  %v8649_v27 = vmax.f32 %v7334_v49, 0.0  ;;  %v8650_v16 = vmax.f32 %v7093_v11, 0.0 }
 0x211   : > { %v3367_v45 = vmax.f32 %v8648_v40, %v3205_v36  ;;  %v3206_v12 = vmax.f32 %v2963_v62, 0.0  ;;  %v5391_v3 = vpop.f32.mrb[136].mxu0  ;;  %v2804_v15 = vmul.f32 %v7330_v39, %v8651_v55  ;;  %v7506_v58 = vadd.f32 %v7356_v32, %v2657_v46 }
 0x212   : > { %v7498_v7 = vmax.f32 %v3369_v4, %v8649_v27  ;;  %v3370_v13 = vmax.f32 %v8650_v16, %v3208_v22  ;;  %v2718_v59 = vmul.f32 %v7330_v39, %v5391_v3  ;;  %v2143_v8 = vpop.f32.mrb[137].mxu0  ;;  %v8652_v36 = vmax.f32 %v7345_v1, 0.0 }
 0x213   : > { %v8653_v49 = vmax.f32 %v7108_v24, 0.0  ;;  %v2716_v4 = vmul.f32 %v7330_v39, %v2143_v8  ;;  %v5392_v11 = vpop.f32.mrb[138].mxu0  ;;  %v8654_v22 = vmax.f32 %v7361_v54, 0.0  ;;  %v7522_v16 = vadd.f32 %v7356_v32, %v2802_v21 }
 0x214   : > { %v7510_v26 = vmax.f32 %v3367_v45, %v8652_v36  ;;  %v2968_v3 = vadd.f32 %v7356_v32, %v2718_v59  ;;  %v2719_v27 = vmul.f32 %v7330_v39, %v5392_v11  ;;  %v2146_v46 = vpop.f32.mrb[139].mxu0  ;;  %v8655_v1 = vmax.f32 %v7311_v35, 0.0 }
 0x215   : > { %v3368_v62 = vmax.f32 %v8653_v49, %v3206_v12  ;;  %v7517_v40 = vmax.f32 %v3370_v13, %v8654_v22  ;;  %v2966_v24 = vadd.f32 %v7356_v32, %v2716_v4  ;;  %v2717_v12 = vmul.f32 %v7330_v39, %v2146_v46  ;;  %v8656_v49 = vld [vmem:[#allocation49_spill] sm:$0xff] }
 0x216   : > { %v3051_v54 = vadd.f32 %v7356_v32, %v2801_v25  ;;  %v3211_v13 = vmax.f32 %v2968_v3, 0.0  ;;  %v2969_v8 = vadd.f32 %v7356_v32, %v2719_v27  ;;  %v3296_v59 = vmax.f32 %v7494_v52, 0.0 }
 0x217   : > { %v7526_v45 = vmax.f32 %v3368_v62, %v8655_v1  ;;  %v3054_v55 = vadd.f32 %v7356_v32, %v2804_v15  ;;  %v3209_v36 = vmax.f32 %v2966_v24, 0.0  ;;  %v2967_v21 = vadd.f32 %v7356_v32, %v2717_v12  ;;  %v8659_v24 = vld [vmem:[#allocation46_spill] sm:$0xff] }
 0x218   : > { %v2807_v35 = vmul.f32 %v7330_v39, %v8656_v49  ;;  %v8657_v25 = vmax.f32 %v7165_v53, 0.0  ;;  %v3212_v22 = vmax.f32 %v2969_v8, 0.0  ;;  %v3295_v3 = vmax.f32 %v7522_v16, 0.0  ;;  %v8662_v16 = vld [vmem:[#allocation50_spill] sm:$0xff] }
 0x219   : > { %v8658_v52 = vmax.f32 %v7116_v38, 0.0  ;;  %v3210_v27 = vmax.f32 %v2967_v21, 0.0  ;;  %v5395_v46 = vpop.f32.mrb[140].mxu0  ;;  %v3294_v1 = vmax.f32 %v3051_v54, 0.0  ;;  %v2806_v12 = vmul.f32 %v7330_v39, %v8659_v24  ;;  %v8665_v24 = vld [vmem:[#allocation52_spill] sm:$0xff] }
 0x21a   : > { %v3373_v11 = vmax.f32 %v8657_v25, %v3211_v13  ;;  %v8660_v49 = vmax.f32 %v7414_v14, 0.0  ;;  %v8661_v4 = vmax.f32 %v7145_v19, 0.0  ;;  %v2722_v13 = vmul.f32 %v7330_v39, %v5395_v46  ;;  %v2159_v8 = vpop.f32.mrb[141].mxu0 }
 0x21b   : > { %v3371_v15 = vmax.f32 %v8658_v52, %v3209_v36  ;;  %v2805_v38 = vmul.f32 %v7330_v39, %v8662_v16  ;;  %v8663_v36 = vmax.f32 %v7428_v5, 0.0  ;;  %v8664_v54 = vmax.f32 %v7154_v20, 0.0  ;;  %v8722_v20 = vld [vmem:[#allocation68_spill] sm:$0xff] }
 0x21c   : > { %v7549_v62 = vmax.f32 %v3373_v11, %v8660_v49  ;;  %v3374_v53 = vmax.f32 %v8661_v4, %v3212_v22  ;;  %v2720_v14 = vmul.f32 %v7330_v39, %v2159_v8  ;;  %v5396_v11 = vpop.f32.mrb[142].mxu0  ;;  %v7564_v52 = vadd.f32 %v7356_v32, %v2807_v35  ;;  %v8667_v8 = vld [vmem:[#allocation55_spill] sm:$0xff] }
 0x21d   : > { %v7558_v21 = vmax.f32 %v3371_v15, %v8663_v36  ;;  %v3372_v25 = vmax.f32 %v8664_v54, %v3210_v27  ;;  %v2972_v4 = vadd.f32 %v7356_v32, %v2722_v13  ;;  %v2723_v22 = vmul.f32 %v7330_v39, %v5396_v11  ;;  %v2162_v46 = vpop.f32.mrb[143].mxu0 }
 0x21e   : > { %v7566_v19 = vmax.f32 %v3374_v53, %v3293_v47  ;;  %v2808_v5 = vmul.f32 %v7330_v39, %v8665_v24  ;;  %v8666_v15 = vmax.f32 %v7425_v10, 0.0  ;;  %v2970_v35 = vadd.f32 %v7356_v32, %v2720_v14 }
 0x21f   : > { %v2721_v47 = vmul.f32 %v7330_v39, %v2162_v46  ;;  %v3215_v49 = vmax.f32 %v2972_v4, 0.0  ;;  %v2973_v53 = vadd.f32 %v7356_v32, %v2723_v22  ;;  %v3297_v13 = vmax.f32 %v3054_v55, 0.0 }
 0x220   : > { %v7576_v27 = vmax.f32 %v3372_v25, %v8666_v15  ;;  %v2811_v16 = vmul.f32 %v7330_v39, %v8667_v8  ;;  %v3213_v36 = vmax.f32 %v2970_v35, 0.0  ;;  %v7585_v11 = vadd.f32 %v7356_v32, %v2806_v12 }
 0x221   : > { %v2971_v54 = vadd.f32 %v7356_v32, %v2721_v47  ;;  %v8668_v25 = vmax.f32 %v7229_v60, 0.0  ;;  %v3216_v46 = vmax.f32 %v2973_v53, 0.0  ;;  %v3300_v4 = vmax.f32 %v7564_v52, 0.0  ;;  %v5399_v35 = vpop.f32.mrb[144].mxu0 }
 0x222   : > { %v3055_v55 = vadd.f32 %v7356_v32, %v2805_v38  ;;  %v8669_v22 = vmax.f32 %v7157_v30, 0.0  ;;  %v3058_v47 = vadd.f32 %v7356_v32, %v2808_v5  ;;  %v2809_v12 = vmul.f32 %v7330_v39, %v6732_v56  ;;  %v2175_v52 = vpop.f32.mrb[145].mxu0 }
 0x223   : > { %v3377_v14 = vmax.f32 %v8668_v25, %v3215_v49  ;;  %v3214_v15 = vmax.f32 %v2971_v54, 0.0  ;;  %v8670_v60 = vmax.f32 %v7181_v29, 0.0  ;;  %v2726_v53 = vmul.f32 %v7330_v39, %v5399_v35  ;;  %v5400_v25 = vpop.f32.mrb[146].mxu0 }
 0x224   : > { %v3375_v24 = vmax.f32 %v8669_v22, %v3213_v36  ;;  %v7604_v38 = vadd.f32 %v7356_v32, %v2811_v16  ;;  %v8671_v36 = vmax.f32 %v7193_v0, 0.0  ;;  %v2724_v5 = vmul.f32 %v7330_v39, %v2175_v52  ;;  %v8672_v16 = vld [vmem:[#allocation51_spill] sm:$0xff] }
 0x225   : > { %v7598_v8 = vmax.f32 %v3377_v14, %v3296_v59  ;;  %v3378_v49 = vmax.f32 %v8670_v60, %v3216_v46  ;;  %v2812_v56 = vmul.f32 %v7330_v39, %v6747_v37  ;;  %v2976_v29 = vadd.f32 %v7356_v32, %v2726_v53  ;;  %v2178_v46 = vpop.f32.mrb[147].mxu0 }
 0x226   : > { %v7606_v30 = vmax.f32 %v3375_v24, %v3294_v1  ;;  %v3376_v54 = vmax.f32 %v8671_v36, %v3214_v15  ;;  %v2727_v14 = vmul.f32 %v7330_v39, %v5400_v25  ;;  %v2810_v1 = vmul.f32 %v7330_v39, %v8672_v16 }
 0x227   : > { %v7613_v59 = vmax.f32 %v3378_v49, %v3297_v13  ;;  %v2974_v24 = vadd.f32 %v7356_v32, %v2724_v5  ;;  %v2725_v15 = vmul.f32 %v7330_v39, %v2178_v46  ;;  %v3299_v37 = vmax.f32 %v7585_v11, 0.0 }
 0x228   : > { %v7621_v22 = vmax.f32 %v3376_v54, %v3295_v3  ;;  %v3219_v13 = vmax.f32 %v2976_v29, 0.0  ;;  %v2977_v35 = vadd.f32 %v7356_v32, %v2727_v14  ;;  %v3298_v60 = vmax.f32 %v3055_v55, 0.0 }
 0x229   : > { %v3217_v49 = vmax.f32 %v2974_v24, 0.0  ;;  %v2975_v53 = vadd.f32 %v7356_v32, %v2725_v15  ;;  %v3059_v52 = vadd.f32 %v7356_v32, %v2809_v12  ;;  %v8673_v3 = vmax.f32 %v7249_v50, 0.0  ;;  %v5403_v16 = vpop.f32.mrb[148].mxu0 }
 0x22a   : > { %v3220_v5 = vmax.f32 %v2977_v35, 0.0  ;;  %v3301_v25 = vmax.f32 %v3058_v47, 0.0  ;;  %v3304_v46 = vmax.f32 %v7604_v38, 0.0  ;;  %v8674_v11 = vmax.f32 %v7209_v28, 0.0 }
 0x22b   : > { %v3381_v54 = vmax.f32 %v8673_v3, %v3219_v13  ;;  %v3218_v14 = vmax.f32 %v2975_v53, 0.0  ;;  %v3060_v55 = vadd.f32 %v7356_v32, %v2810_v1  ;;  %v3062_v24 = vadd.f32 %v7356_v32, %v2812_v56  ;;  %v2191_v13 = vpop.f32.mrb[149].mxu0 }
 0x22c   : > { %v3379_v29 = vmax.f32 %v8674_v11, %v3217_v49  ;;  %v8676_v15 = vmax.f32 %v7234_v42, 0.0  ;;  %v2730_v50 = vmul.f32 %v7330_v39, %v5403_v16  ;;  %v2815_v47 = vmul.f32 %v7330_v39, %v6792_v23  ;;  %v5404_v49 = vpop.f32.mrb[150].mxu0 }
 0x22d   : > { %v7638_v12 = vmax.f32 %v3381_v54, %v3300_v4  ;;  %v8677_v28 = vmax.f32 %v7242_v17, 0.0  ;;  %v2728_v1 = vmul.f32 %v7330_v39, %v2191_v13  ;;  %v3302_v56 = vmax.f32 %v3059_v52, 0.0  ;;  %v2194_v3 = vpop.f32.mrb[151].mxu0  ;;  %v8678_v54 = vld [vmem:[#allocation57_spill] sm:$0xff] }
 0x22e   : > { %v3382_v36 = vmax.f32 %v8676_v15, %v3220_v5  ;;  %v7645_v38 = vmax.f32 %v3379_v29, %v3298_v60  ;;  %v2980_v42 = vadd.f32 %v7356_v32, %v2730_v50  ;;  %v2731_v53 = vmul.f32 %v7330_v39, %v5404_v49 }
 0x22f   : > { %8675 = vst [vmem:[#allocation37_spill] sm:$0xff] %v7638_v12  ;;  %v3380_v35 = vmax.f32 %v8677_v28, %v3218_v14  ;;  %v2814_v5 = vmul.f32 %v7330_v39, %v8678_v54  ;;  %v2978_v60 = vadd.f32 %v7356_v32, %v2728_v1  ;;  %v2729_v17 = vmul.f32 %v7330_v39, %v2194_v3 }
 0x230   : > { %v7650_v4 = vmax.f32 %v3382_v36, %v3301_v25  ;;  %v2813_v11 = vmul.f32 %v7330_v39, %v6806_v48  ;;  %v3223_v36 = vmax.f32 %v2980_v42, 0.0  ;;  %v2981_v25 = vadd.f32 %v7356_v32, %v2731_v53 }
 0x231   : > { %v7656_v23 = vmax.f32 %v3380_v35, %v3299_v37  ;;  %v3065_v29 = vadd.f32 %v7356_v32, %v2815_v47  ;;  %v3221_v37 = vmax.f32 %v2978_v60, 0.0  ;;  %v2979_v16 = vadd.f32 %v7356_v32, %v2729_v17  ;;  %v5407_v53 = vpop.f32.mrb[152].mxu0 }
 0x232   : > { %v2816_v15 = vmul.f32 %v7330_v39, %v6821_v44  ;;  %v8679_v50 = vmax.f32 %v7337_v43, 0.0  ;;  %v3224_v13 = vmax.f32 %v2981_v25, 0.0  ;;  %v3064_v28 = vadd.f32 %v7356_v32, %v2814_v5  ;;  %v2207_v17 = vpop.f32.mrb[153].mxu0 }
 0x233   : > { %v3305_v35 = vmax.f32 %v3062_v24, 0.0  ;;  %v3303_v1 = vmax.f32 %v3060_v55, 0.0  ;;  %v8680_v49 = vmax.f32 %v7246_v63, 0.0  ;;  %v3222_v42 = vmax.f32 %v2979_v16, 0.0  ;;  %v5408_v5 = vpop.f32.mrb[154].mxu0 }
 0x234   : > { %v3385_v48 = vmax.f32 %v8679_v50, %v3223_v36  ;;  %v3063_v3 = vadd.f32 %v7356_v32, %v2813_v11  ;;  %v8682_v60 = vmax.f32 %v7283_v57, 0.0  ;;  %v2734_v43 = vmul.f32 %v7330_v39, %v5407_v53  ;;  %v2210_v50 = vpop.f32.mrb[155].mxu0 }
 0x235   : > { %v3383_v47 = vmax.f32 %v8680_v49, %v3221_v37  ;;  %v3308_v36 = vmax.f32 %v3065_v29, 0.0  ;;  %v8684_v55 = vmax.f32 %v7295_v34, 0.0  ;;  %v2732_v63 = vmul.f32 %v7330_v39, %v2207_v17 }
 0x236   : > { %v7677_v54 = vmax.f32 %v3385_v48, %v3304_v46  ;;  %v3386_v44 = vmax.f32 %v8682_v60, %v3224_v13  ;;  %v3066_v37 = vadd.f32 %v7356_v32, %v2816_v15  ;;  %v3307_v11 = vmax.f32 %v3064_v28, 0.0 }
 0x237   : > { %v7682_v25 = vmax.f32 %v3383_v47, %v3302_v56  ;;  %v3384_v24 = vmax.f32 %v8684_v55, %v3222_v42  ;;  %v2984_v57 = vadd.f32 %v7356_v32, %v2734_v43  ;;  %v2735_v16 = vmul.f32 %v7330_v39, %v5408_v5  ;;  %v8718_v42 = vld [vmem:[#allocation63_spill] sm:$0xff] }
 0x238   : > { %8681 = vst [vmem:[#allocation30_spill] sm:$0xff] %v7677_v54  ;;  %v7688_v46 = vmax.f32 %v3386_v44, %v3305_v35  ;;  %v2982_v56 = vadd.f32 %v7356_v32, %v2732_v63  ;;  %v2733_v34 = vmul.f32 %v7330_v39, %v2210_v50  ;;  %v2819_v29 = vmul.f32 %v7330_v39, %v6859_v31 }
 0x239   : > { %8683 = vst [vmem:[#allocation36_spill] sm:$0xff] %v7682_v25  ;;  %v7692_v48 = vmax.f32 %v3384_v24, %v3303_v1  ;;  %v3227_v13 = vmax.f32 %v2984_v57, 0.0  ;;  %v2985_v28 = vadd.f32 %v7356_v32, %v2735_v16  ;;  %v2817_v35 = vmul.f32 %v7330_v39, %v6870_v33  ;;  %v8689_v33 = vld [vmem:[#allocation62_spill] sm:$0xff]  ;;  %v5411_v63 = vpop.f32.mrb[156].mxu0 }
 0x23a   : > { %8685 = vst [vmem:[#allocation39_spill] sm:$0xff] %v7688_v46  ;;  %v3225_v49 = vmax.f32 %v2982_v56, 0.0  ;;  %v3306_v47 = vmax.f32 %v3063_v3, 0.0  ;;  %v2983_v1 = vadd.f32 %v7356_v32, %v2733_v34  ;;  %v8687_v53 = vmax.f32 %v7420_v9, 0.0  ;;  %v2223_v50 = vpop.f32.mrb[157].mxu0  ;;  %v8692_v56 = vld [vmem:[#allocation48_spill] sm:$0xff] }
 0x23b   : > { %8686 = vst [vmem:[#allocation40_spill] sm:$0xff] %v7692_v48  ;;  %v3228_v31 = vmax.f32 %v2985_v28, 0.0  ;;  %v3309_v44 = vmax.f32 %v3066_v37, 0.0  ;;  %v2820_v43 = vmul.f32 %v7330_v39, %v6887_v61  ;;  %v8688_v17 = vmax.f32 %v7314_v41, 0.0  ;;  %v8754_v46 = vld [vmem:[#allocation23_spill] sm:$0xff] }
 0x23c   : > { %v3389_v60 = vmax.f32 %v8687_v53, %v3227_v13  ;;  %v3226_v24 = vmax.f32 %v2983_v1, 0.0  ;;  %v2818_v3 = vmul.f32 %v7330_v39, %v8689_v33  ;;  %v3069_v5 = vadd.f32 %v7356_v32, %v2819_v29  ;;  %v8759_v48 = vld [vmem:[#allocation27_spill] sm:$0xff] }
 0x23d   : > { %v3387_v55 = vmax.f32 %v8688_v17, %v3225_v49  ;;  %v8691_v9 = vmax.f32 %v7371_v18, 0.0  ;;  %v2738_v37 = vmul.f32 %v7330_v39, %v5411_v63  ;;  %v3067_v61 = vadd.f32 %v7356_v32, %v2817_v35 }
 0x23e   : > { %v7715_v57 = vmax.f32 %v3389_v60, %v3308_v36  ;;  %v2660_v41 = vmul.f32 %v7330_v39, %v8692_v56  ;;  %v8694_v13 = vmax.f32 %v7387_v2, 0.0  ;;  %v2736_v29 = vmul.f32 %v7330_v39, %v2223_v50  ;;  %v5412_v36 = vpop.f32.mrb[158].mxu0  ;;  %v8699_v50 = vld [vmem:[#allocation67_spill] sm:$0xff] }
 0x23f   : > { %v3390_v16 = vmax.f32 %v8691_v9, %v3228_v31  ;;  %v7723_v34 = vmax.f32 %v3387_v55, %v3306_v47  ;;  %v2988_v18 = vadd.f32 %v7356_v32, %v2738_v37  ;;  %v2739_v1 = vmul.f32 %v7330_v39, %v5412_v36  ;;  %v2226_v53 = vpop.f32.mrb[159].mxu0 }
 0x240   : > { %8690 = vst [vmem:[#allocation41_spill] sm:$0xff] %v7715_v57  ;;  %v3388_v28 = vmax.f32 %v8694_v13, %v3226_v24  ;;  %v3070_v35 = vadd.f32 %v7356_v32, %v2820_v43  ;;  %v3068_v47 = vadd.f32 %v7356_v32, %v2818_v3  ;;  %v2986_v31 = vadd.f32 %v7356_v32, %v2736_v29  ;;  %v8697_v43 = vld [vmem:[#allocation72_spill] sm:$0xff]  ;;  %v8700_v13 = vld [vmem:[#allocation34_spill] sm:$0xff] }
 0x241   : > { %8693 = vst [vmem:[#allocation43_spill] sm:$0xff] %v7723_v34  ;;  %v7728_v49 = vmax.f32 %v3390_v16, %v3309_v44  ;;  %v2737_v2 = vmul.f32 %v7330_v39, %v2226_v53  ;;  %v3231_v17 = vmax.f32 %v2988_v18, 0.0  ;;  %v3312_v55 = vmax.f32 %v3069_v5, 0.0  ;;  %v8701_v29 = vld [vmem:[#allocation28_spill] sm:$0xff]  ;;  %v5415_v53 = vpop.f32.mrb[160].mxu0 }
 0x242   : > { %v7733_v60 = vmax.f32 %v3388_v28, %v3307_v11  ;;  %v2989_v44 = vadd.f32 %v7356_v32, %v2739_v1  ;;  %v3310_v24 = vmax.f32 %v3067_v61, 0.0  ;;  %v3229_v63 = vmax.f32 %v2986_v31, 0.0 }
 0x243   : > { %8695 = vst [vmem:[#allocation42_spill] sm:$0xff] %v7728_v49  ;;  %v2987_v9 = vadd.f32 %v7356_v32, %v2737_v2  ;;  %v2821_v11 = vmul.f32 %v7330_v39, %v8697_v43  ;;  %v8698_v3 = vmax.f32 %v7506_v58, 0.0  ;;  %v2822_v56 = vmul.f32 %v7330_v39, %v8699_v50  ;;  %v2239_v43 = vpop.f32.mrb[161].mxu0 }
 0x244   : > { %8696 = vst [vmem:[#allocation45_spill] sm:$0xff] %v7733_v60  ;;  %v3232_v37 = vmax.f32 %v2989_v44, 0.0  ;;  %v3313_v5 = vmax.f32 %v3070_v35, 0.0  ;;  %v3149_v28 = vmax.f32 %v8700_v13, 0.0  ;;  %v3311_v61 = vmax.f32 %v3068_v47, 0.0  ;;  %v5416_v50 = vpop.f32.mrb[162].mxu0 }
 0x245   : > { %v3393_v16 = vmax.f32 %v8698_v3, %v3231_v17  ;;  %v8702_v36 = vmax.f32 %v8701_v29, 0.0  ;;  %v3230_v1 = vmax.f32 %v2987_v9, 0.0  ;;  %v2910_v31 = vadd.f32 %v7356_v32, %v2660_v41 }
 0x246   : > { %v8704_v58 = vmax.f32 %v7459_v51, 0.0  ;;  %v2742_v44 = vmul.f32 %v7330_v39, %v5415_v53  ;;  %v2740_v47 = vmul.f32 %v7330_v39, %v2239_v43  ;;  %v3072_v9 = vadd.f32 %v7356_v32, %v2822_v56  ;;  %v8708_v53 = vld [vmem:[#allocation56_spill] sm:$0xff] }
 0x247   : > { %v3391_v18 = vmax.f32 %v8702_v36, %v3229_v63  ;;  %v7752_v2 = vmax.f32 %v3393_v16, %v3312_v55  ;;  %v3392_v35 = vmax.f32 %v3149_v28, %v3230_v1  ;;  %v3071_v63 = vadd.f32 %v7356_v32, %v2821_v11  ;;  %v2242_v55 = vpop.f32.mrb[163].mxu0  ;;  %v8717_v16 = vld [vmem:[#allocation60_spill] sm:$0xff] }
 0x248   : > { %v3394_v17 = vmax.f32 %v8704_v58, %v3232_v37  ;;  %v2992_v41 = vadd.f32 %v7356_v32, %v2742_v44  ;;  %v2743_v51 = vmul.f32 %v7330_v39, %v5416_v50  ;;  %v2990_v37 = vadd.f32 %v7356_v32, %v2740_v47 }
 0x249   : > { %8703 = vst [vmem:[#allocation38_spill] sm:$0xff] %v7752_v2  ;;  %v7757_v3 = vmax.f32 %v3391_v18, %v3310_v24  ;;  %v7768_v24 = vmax.f32 %v3392_v35, %v3311_v61  ;;  %v2741_v28 = vmul.f32 %v7330_v39, %v2242_v55  ;;  %v3152_v11 = vmax.f32 %v7489_v6, 0.0  ;;  %v5419_v47 = vpop.f32.mrb[164].mxu0  ;;  %v8709_v6 = vld [vmem:[#allocation53_spill] sm:$0xff]  ;;  %v8740_v2 = vld [vmem:[#allocation10_spill] sm:$0xff] }
 0x24a   : > { %v7762_v13 = vmax.f32 %v3394_v17, %v3313_v5  ;;  %v3235_v29 = vmax.f32 %v2992_v41, 0.0  ;;  %v2993_v56 = vadd.f32 %v7356_v32, %v2743_v51  ;;  %v3233_v5 = vmax.f32 %v2990_v37, 0.0  ;;  %v2255_v51 = vpop.f32.mrb[165].mxu0 }
 0x24b   : > { %8705 = vst [vmem:[#allocation44_spill] sm:$0xff] %v7757_v3  ;;  %8707 = vst [vmem:[#allocation49_spill] sm:$0xff] %v7768_v24  ;;  %v2991_v36 = vadd.f32 %v7356_v32, %v2741_v28  ;;  %v3314_v18 = vmax.f32 %v3071_v63, 0.0  ;;  %v3153_v17 = vmax.f32 %v2910_v31, 0.0  ;;  %v3315_v44 = vmax.f32 %v3072_v9, 0.0  ;;  %v5420_v28 = vpop.f32.mrb[166].mxu0 }
 0x24c   : > { %8706 = vst [vmem:[#allocation47_spill] sm:$0xff] %v7762_v13  ;;  %v7778_v58 = vmax.f32 %v8708_v53, %v3235_v29  ;;  %v3236_v61 = vmax.f32 %v2993_v56, 0.0  ;;  %v3395_v43 = vmax.f32 %v3152_v11, %v3233_v5  ;;  %v2746_v41 = vmul.f32 %v7330_v39, %v5419_v47  ;;  %v2258_v11 = vpop.f32.mrb[167].mxu0  ;;  %v8736_v13 = vld [vmem:[#allocation6_spill] sm:$0xff]  ;;  %v8739_v24 = vld [vmem:[#allocation9_spill] sm:$0xff] }
 0x24d   : > { %v3234_v35 = vmax.f32 %v2991_v36, 0.0  ;;  %v2744_v37 = vmul.f32 %v7330_v39, %v2255_v51  ;;  %v2747_v9 = vmul.f32 %v7330_v39, %v5420_v28  ;;  %v8714_v28 = vld [vmem:[#allocation58_spill] sm:$0xff]  ;;  %v8743_v3 = vld [vmem:[#allocation13_spill] sm:$0xff] }
 0x24e   : > { %v7781_v50 = vmax.f32 %v8709_v6, %v3236_v61  ;;  %v7784_v63 = vmax.f32 %v3395_v43, %v3314_v18  ;;  %v2996_v31 = vadd.f32 %v7356_v32, %v2746_v41  ;;  %v2745_v18 = vmul.f32 %v7330_v39, %v2258_v11  ;;  %v8713_v41 = vld [vmem:[#allocation54_spill] sm:$0xff]  ;;  %v8715_v11 = vld [vmem:[#allocation59_spill] sm:$0xff] }
 0x24f   : > { %v3396_v55 = vmax.f32 %v3153_v17, %v3234_v35  ;;  %v2994_v36 = vadd.f32 %v7356_v32, %v2744_v37  ;;  %v2997_v61 = vadd.f32 %v7356_v32, %v2747_v9  ;;  %v8712_v35 = vld [vmem:[#allocation61_spill] sm:$0xff] }
 0x250   : > { %8710 = vst [vmem:[#allocation46_spill] sm:$0xff] %v7784_v63  ;;  %v3239_v53 = vmax.f32 %v2996_v31, 0.0  ;;  %v2995_v43 = vadd.f32 %v7356_v32, %v2745_v18 }
 0x251   : > { %v7791_v56 = vmax.f32 %v3396_v55, %v3315_v44  ;;  %v3237_v17 = vmax.f32 %v2994_v36, 0.0  ;;  %v3240_v6 = vmax.f32 %v2997_v61, 0.0  ;;  %v5423_v55 = vpop.f32.mrb[168].mxu0 }
 0x252   : > { %v7800_v47 = vmax.f32 %v8712_v35, %v3239_v53  ;;  %v3238_v51 = vmax.f32 %v2995_v43, 0.0  ;;  %v2750_v37 = vmul.f32 %v7330_v39, %v5423_v55  ;;  %v2271_v31 = vpop.f32.mrb[169].mxu0 }
 0x253   : > { %8711 = vst [vmem:[#allocation50_spill] sm:$0xff] %v7791_v56  ;;  %v7803_v44 = vmax.f32 %v8713_v41, %v3237_v17  ;;  %v7806_v5 = vmax.f32 %v8714_v28, %v3240_v6  ;;  %v2748_v36 = vmul.f32 %v7330_v39, %v2271_v31  ;;  %v5424_v18 = vpop.f32.mrb[170].mxu0  ;;  %v8735_v56 = vld [vmem:[#allocation5_spill] sm:$0xff] }
 0x254   : > { %v7810_v9 = vmax.f32 %v8715_v11, %v3238_v51  ;;  %v3000_v61 = vadd.f32 %v7356_v32, %v2750_v37  ;;  %v2751_v17 = vmul.f32 %v7330_v39, %v5424_v18  ;;  %v2274_v43 = vpop.f32.mrb[171].mxu0  ;;  %v8716_v11 = vld [vmem:[#allocation66_spill] sm:$0xff] }
 0x255   : > { %v2998_v6 = vadd.f32 %v7356_v32, %v2748_v36  ;;  %v2749_v41 = vmul.f32 %v7330_v39, %v2274_v43 }
 0x256   : > { %v3243_v51 = vmax.f32 %v3000_v61, 0.0  ;;  %v3001_v55 = vadd.f32 %v7356_v32, %v2751_v17  ;;  %v8719_v61 = vld [vmem:[#allocation64_spill] sm:$0xff] }
 0x257   : > { %v3241_v28 = vmax.f32 %v2998_v6, 0.0  ;;  %v2999_v31 = vadd.f32 %v7356_v32, %v2749_v41 }
 0x258   : > { %v7824_v1 = vmax.f32 %v8716_v11, %v3243_v51  ;;  %v3244_v37 = vmax.f32 %v3001_v55, 0.0 }
 0x259   : > { %v7827_v18 = vmax.f32 %v8717_v16, %v3241_v28  ;;  %v3242_v33 = vmax.f32 %v2999_v31, 0.0  ;;  %v5427_v15 = vpop.f32.mrb[172].mxu0 }
 0x25a   : > { %v3406_v52 = vmax.f32 %v8718_v42, %v3244_v37  ;;  %v2754_v36 = vmul.f32 %v7330_v39, %v5427_v15  ;;  %v2287_v43 = vpop.f32.mrb[173].mxu0  ;;  %v8720_v37 = vld [vmem:[#allocation71_spill] sm:$0xff] }
 0x25b   : > { %v7832_v14 = vmax.f32 %v8719_v61, %v3242_v33  ;;  %v2752_v17 = vmul.f32 %v7330_v39, %v2287_v43  ;;  %v5428_v6 = vpop.f32.mrb[174].mxu0 }
 0x25c   : > { %v3004_v41 = vadd.f32 %v7356_v32, %v2754_v36  ;;  %v2755_v51 = vmul.f32 %v7330_v39, %v5428_v6  ;;  %v2290_v55 = vpop.f32.mrb[175].mxu0  ;;  %v8721_v36 = vld [vmem:[#allocation65_spill] sm:$0xff] }
 0x25d   : > { %v3002_v28 = vadd.f32 %v7356_v32, %v2752_v17  ;;  %v2753_v42 = vmul.f32 %v7330_v39, %v2290_v55  ;;  %v8723_v55 = vld [vmem:[#allocation69_spill] sm:$0xff] }
 0x25e   : > { %v3247_v15 = vmax.f32 %v3004_v41, 0.0  ;;  %v3005_v31 = vadd.f32 %v7356_v32, %v2755_v51  ;;  %v6033_v41 = vld [vmem:[%s8420_s4] sm:$0xff]  }
 0x25f   : > { %v3245_v33 = vmax.f32 %v3002_v28, 0.0  ;;  %v3003_v11 = vadd.f32 %v7356_v32, %v2753_v42 }
 0x260   : > { %v3409_v43 = vmax.f32 %v8720_v37, %v3247_v15  ;;  %v3248_v61 = vmax.f32 %v3005_v31, 0.0 }
 0x261   : > { %v3407_v0 = vmax.f32 %v8721_v36, %v3245_v33  ;;  %v3246_v6 = vmax.f32 %v3003_v11, 0.0  ;;  %v5431_v10 = vpop.f32.mrb[176].mxu0 }
 0x262   : > { %v7846_v53 = vmax.f32 %v8722_v20, %v3248_v61  ;;  %v2758_v17 = vmul.f32 %v7330_v39, %v5431_v10  ;;  %v2303_v16 = vpop.f32.mrb[177].mxu0 }
 0x263   : > { %v3487_v51 = vpack.c.bf16 %v3407_v0, %v3406_v52  ;;  %v3408_v28 = vmax.f32 %v8723_v55, %v3246_v6  ;;  %v2756_v42 = vmul.f32 %v7330_v39, %v2303_v16  ;;  %v5432_v15 = vpop.f32.mrb[178].mxu0  ;;  %v8724_v52 = vmov 0.0   ;;  %v6034_v16 = vld [vmem:[%s8420_s4 + $0x8] sm:$0xff]   ;;  %v8725_v6 = vld [vmem:[#allocation76_spill] sm:$0xff]  ;;  %v8726_v55 = vld [vmem:[#allocation70_spill] sm:$0xff] }
 0x264   : > { %v3008_v31 = vadd.f32 %v7356_v32, %v2758_v17  ;;  %v2759_v33 = vmul.f32 %v7330_v39, %v5432_v15  ;;  %v2306_v20 = vpop.f32.mrb[179].mxu0  ;;  %v8727_v15 = vld [vmem:[#allocation73_spill] sm:$0xff] }
 0x265   : > { %v3488_v11 = vpack.c.bf16 %v3409_v43, %v3408_v28  ;;  %v3006_v10 = vadd.f32 %v7356_v32, %v2756_v42  ;;  %v2757_v37 = vmul.f32 %v7330_v39, %v2306_v20  ;;  %5502 = vmatmul.mubr.msk.bf16.vlgmr.msra.gmra.mrb[32].mxu1 %vm3509_vm3, %v3487_v51 }
 0x266   : > { %v3251_v61 = vmax.f32 %v3008_v31, 0.0  ;;  %v3009_v0 = vadd.f32 %v7356_v32, %v2759_v33  ;;  %5522 = vmatpush3.bf16.msra.mxu1 %v6033_v41  ;;  %5505 = vmatprep.mubr.msk.bf16.mxu1 %vm6062_vm2, %v8724_v52 }
 0x267   : > { %v3249_v36 = vmax.f32 %v3006_v10, 0.0  ;;  %v3007_v43 = vadd.f32 %v7356_v32, %v2757_v37  ;;  %5523 = vmatprep.subr.bf16.mxu1 %v8724_v52  ;;  %v8728_v37 = vld [vmem:[#allocation74_spill] sm:$0xff] }
 0x268   : > { %v7868_v17 = vmax.f32 %v8725_v6, %v3251_v61  ;;  %v3252_v51 = vmax.f32 %v3009_v0, 0.0 }
 0x269   : > { %v3411_v28 = vmax.f32 %v8726_v55, %v3249_v36  ;;  %v3250_v42 = vmax.f32 %v3007_v43, 0.0  ;;  %v5435_v41 = vpop.f32.mrb[180].mxu0 }
 0x26a   : > { %v7872_v31 = vmax.f32 %v8727_v15, %v3252_v51  ;;  %v2762_v33 = vmul.f32 %v7330_v39, %v5435_v41  ;;  %v2319_v20 = vpop.f32.mrb[181].mxu0  ;;  %5524 = vmatpush3.bf16.msra.mxu1 %v6034_v16  ;;  %v8729_v41 = vld [vmem:[#allocation4_spill] sm:$0xff] }
 0x26b   : > { %v3489_v10 = vpack.c.bf16 %v3411_v28, %v7846_v53  ;;  %v3412_v35 = vmax.f32 %v8728_v37, %v3250_v42  ;;  %v2760_v29 = vmul.f32 %v7330_v39, %v2319_v20  ;;  %v5436_v61 = vpop.f32.mrb[182].mxu0  ;;  %5545 = vmatprep.subr.bf16.mxu1 %v8724_v52  ;;  %v8731_v37 = vld [vmem:[#allocation77_spill] sm:$0xff] }
 0x26c   : > { %v3012_v0 = vadd.f32 %v7356_v32, %v2762_v33  ;;  %v2763_v36 = vmul.f32 %v7330_v39, %v5436_v61  ;;  %v2322_v43 = vpop.f32.mrb[183].mxu0 }
 0x26d   : > { %v3490_v6 = vpack.c.bf16 %v7868_v17, %v3412_v35  ;;  %v3010_v51 = vadd.f32 %v7356_v32, %v2760_v29  ;;  %v2761_v16 = vmul.f32 %v7330_v39, %v2322_v43  ;;  %5506 = vmatmul.mubr.msk.bf16.gmra.mrb[36].mxu1 %vm3509_vm3, %v3488_v11  ;;  %v8730_v35 = vld [vmem:[#allocation75_spill] sm:$0xff] }
 0x26e   : > { %v3255_v53 = vmax.f32 %v3012_v0, 0.0  ;;  %v3013_v55 = vadd.f32 %v7356_v32, %v2763_v36  ;;  %5509 = vmatprep.mubr.msk.bf16.mxu1 %vm6062_vm2, %v8724_v52  ;;  %v8732_v36 = vld [vmem:[#allocation2_spill] sm:$0xff] }
 0x26f   : > { %v3253_v28 = vmax.f32 %v3010_v51, 0.0  ;;  %v3011_v42 = vadd.f32 %v7356_v32, %v2761_v16 }
 0x270   : > { %v7890_v15 = vmax.f32 %v8729_v41, %v3255_v53  ;;  %v3256_v33 = vmax.f32 %v3013_v55, 0.0  ;;  %v8734_v53 = vld [vmem:[#allocation3_spill] sm:$0xff] }
 0x271   : > { %v7893_v17 = vmax.f32 %v8730_v35, %v3253_v28  ;;  %v3254_v29 = vmax.f32 %v3011_v42, 0.0  ;;  %v5439_v20 = vpop.f32.mrb[184].mxu0 }
 0x272   : > { %v7896_v11 = vmax.f32 %v8731_v37, %v3256_v33  ;;  %v2766_v61 = vmul.f32 %v7330_v39, %v5439_v20  ;;  %v2335_v0 = vpop.f32.mrb[185].mxu0 }
 0x273   : > { %v7900_v43 = vmax.f32 %v8732_v36, %v3254_v29  ;;  %v2764_v51 = vmul.f32 %v7330_v39, %v2335_v0  ;;  %v5440_v16 = vpop.f32.mrb[186].mxu0  ;;  %v8733_v0 = vld [vmem:[#allocation8_spill] sm:$0xff] }
 0x274   : > { %v3016_v55 = vadd.f32 %v7356_v32, %v2766_v61  ;;  %v2767_v28 = vmul.f32 %v7330_v39, %v5440_v16  ;;  %v2338_v42 = vpop.f32.mrb[187].mxu0 }
 0x275   : > { %v3014_v33 = vadd.f32 %v7356_v32, %v2764_v51  ;;  %v2765_v35 = vmul.f32 %v7330_v39, %v2338_v42  ;;  %5510 = vmatmul.mubr.msk.bf16.gmra.mrb[40].mxu1 %vm3509_vm3, %v3489_v10 }
 0x276   : > { %v3259_v29 = vmax.f32 %v3016_v55, 0.0  ;;  %v3017_v20 = vadd.f32 %v7356_v32, %v2767_v28  ;;  %5513 = vmatprep.mubr.msk.bf16.mxu1 %vm6062_vm2, %v8724_v52 }
 0x277   : > { %v3257_v37 = vmax.f32 %v3014_v33, 0.0  ;;  %v3015_v61 = vadd.f32 %v7356_v32, %v2765_v35 }
 0x278   : > { %v7917_v36 = vmax.f32 %v8733_v0, %v3259_v29  ;;  %v3260_v16 = vmax.f32 %v3017_v20, 0.0 }
 0x279   : > { %v7920_v41 = vmax.f32 %v8734_v53, %v3257_v37  ;;  %v3258_v51 = vmax.f32 %v3015_v61, 0.0  ;;  %v5443_v42 = vpop.f32.mrb[188].mxu0 }
 0x27a   : > { %v7923_v10 = vmax.f32 %v8735_v56, %v3260_v16  ;;  %v2770_v55 = vmul.f32 %v7330_v39, %v5443_v42  ;;  %v2351_v28 = vpop.f32.mrb[189].mxu0 }
 0x27b   : > { %v7927_v63 = vmax.f32 %v8736_v13, %v3258_v51  ;;  %v2768_v33 = vmul.f32 %v7330_v39, %v2351_v28  ;;  %v5444_v35 = vpop.f32.mrb[190].mxu0  ;;  %v7940_v13 = vld [vmem:[%s8418_s2] ss:$0 sm:$0xff] }
 0x27c   : > { %v3020_v53 = vadd.f32 %v7356_v32, %v2770_v55  ;;  %v2771_v20 = vmul.f32 %v7330_v39, %v5444_v35  ;;  %v2354_v37 = vpop.f32.mrb[191].mxu0  ;;  %v8737_v55 = vld [vmem:[#allocation12_spill] sm:$0xff]  ;;  %v8738_v35 = vld [vmem:[#allocation7_spill] sm:$0xff] }
 0x27d   : > { %v3018_v61 = vadd.f32 %v7356_v32, %v2768_v33  ;;  %v2769_v0 = vmul.f32 %v7940_v13, %v2354_v37  ;;  %5514 = vmatmul.mubr.msk.bf16.gmra.mrb[44].mxu1 %vm3509_vm3, %v3490_v6 }
 0x27e   : > { %v3263_v16 = vmax.f32 %v3020_v53, 0.0  ;;  %v3021_v51 = vadd.f32 %v7356_v32, %v2771_v20  ;;  %5517 = vmatprep.mubr.msk.bf16.mxu1 %vm6062_vm2, %v8724_v52 }
 0x27f   : > { %v3261_v39 = vmax.f32 %v3018_v61, 0.0  ;;  %v3019_v42 = vadd.f32 %v7356_v32, %v2769_v0  ;;  %v3491_v61 = vpack.c.bf16 %v7872_v31, %v7872_v31 }
 0x280   : > { %v7949_v28 = vmax.f32 %v8737_v55, %v3263_v16  ;;  %v3264_v33 = vmax.f32 %v3021_v51, 0.0  ;;  %v7967_v51 = vld [vmem:[%s8419_s3] ss:$0 sm:$0xff]  ;;  %v8742_v55 = vld [vmem:[#allocation11_spill] sm:$0xff] }
 0x281   : > { %v7952_v29 = vmax.f32 %v8738_v35, %v3261_v39  ;;  %v3262_v56 = vmax.f32 %v3019_v42, 0.0  ;;  %v5447_v37 = vpop.f32.mrb[192].mxu0 }
 0x282   : > { %v7955_v6 = vmax.f32 %v8739_v24, %v3264_v33  ;;  %v2774_v53 = vmul.f32 %v7940_v13, %v5447_v37  ;;  %v2367_v20 = vpop.f32.mrb[193].mxu0 }
 0x283   : > { %v7961_v32 = vmax.f32 %v8740_v2, %v3262_v56  ;;  %v2772_v0 = vmul.f32 %v7940_v13, %v2367_v20  ;;  %v5448_v16 = vpop.f32.mrb[194].mxu0 }
 0x284   : > { %v3024_v24 = vadd.f32 %v7967_v51, %v2774_v53  ;;  %v2775_v39 = vmul.f32 %v7940_v13, %v5448_v16  ;;  %v2370_v42 = vpop.f32.mrb[195].mxu0  ;;  %v8741_v53 = vld [vmem:[#allocation16_spill] sm:$0xff] }
 0x285   : > { %v3022_v31 = vadd.f32 %v7967_v51, %v2772_v0  ;;  %v2773_v2 = vmul.f32 %v7940_v13, %v2370_v42  ;;  %5518 = vmatmul.mubr.msk.bf16.gmra.mrb[48].mxu1 %vm3509_vm3, %v3491_v61 }
 0x286   : > { %v3267_v56 = vmax.f32 %v3024_v24, 0.0  ;;  %v3025_v33 = vadd.f32 %v7967_v51, %v2775_v39  ;;  %5525 = vmatprep.mubr.msk.bf16.mxu1 %vm6062_vm2, %v8724_v52 }
 0x287   : > { %v3265_v35 = vmax.f32 %v3022_v31, 0.0  ;;  %v3023_v37 = vadd.f32 %v7967_v51, %v2773_v2  ;;  %v6035_v31 = vld [vmem:[%s8420_s4 + $0x20] sm:$0xff]   ;;  %v8745_v2 = vpack.c.bf16 %v7781_v50, %v7778_v58 }
 0x288   : > { %v7981_v20 = vmax.f32 %v8741_v53, %v3267_v56  ;;  %v3268_v16 = vmax.f32 %v3025_v33, 0.0  ;;  %v8744_v56 = vld [vmem:[#allocation14_spill] sm:$0xff] }
 0x289   : > { %v7984_v49 = vmax.f32 %v8742_v55, %v3265_v35  ;;  %v3266_v0 = vmax.f32 %v3023_v37, 0.0  ;;  %v5451_v42 = vpop.f32.mrb[196].mxu0 }
 0x28a   : > { %v7987_v61 = vmax.f32 %v8743_v3, %v3268_v16  ;;  %v2778_v24 = vmul.f32 %v7940_v13, %v5451_v42  ;;  %v2383_v39 = vpop.f32.mrb[197].mxu0 }
 0x28b   : > { %v7996_v33 = vmax.f32 %v8744_v56, %v3266_v0  ;;  %v2776_v55 = vmul.f32 %v7940_v13, %v2383_v39  ;;  %v5452_v35 = vpop.f32.mrb[198].mxu0 }
 0x28c   : > { %v3028_v37 = vadd.f32 %v7967_v51, %v2778_v24  ;;  %v2779_v3 = vmul.f32 %v7940_v13, %v5452_v35  ;;  %v2386_v53 = vpop.f32.mrb[199].mxu0  ;;  %v6036_v24 = vld [vmem:[%s8420_s4 + $0x28] sm:$0xff]   ;;  %v8746_v35 = vld [vmem:[#allocation20_spill] sm:$0xff] }
 0x28d   : > { %v3026_v42 = vadd.f32 %v7967_v51, %v2776_v55  ;;  %v2777_v60 = vmul.f32 %v7940_v13, %v2386_v53  ;;  %5526 = vmatmul.mubr.msk.bf16.vlgmr.msra.gmra.mrb[32].mxu1 %vm3509_vm3, %v8745_v2  ;;  %v8747_v2 = vld [vmem:[#allocation15_spill] sm:$0xff]  ;;  %v8748_v53 = vld [vmem:[#allocation17_spill] sm:$0xff] }
 0x28e   : > { %v3271_v0 = vmax.f32 %v3028_v37, 0.0  ;;  %v3029_v39 = vadd.f32 %v7967_v51, %v2779_v3  ;;  %5546 = vmatpush3.bf16.msra.mxu1 %v6035_v31  ;;  %5529 = vmatprep.mubr.msk.bf16.mxu1 %vm6062_vm2, %v8724_v52 }
 0x28f   : > { %v3269_v56 = vmax.f32 %v3026_v42, 0.0  ;;  %v3027_v55 = vadd.f32 %v7967_v51, %v2777_v60  ;;  %5547 = vmatprep.subr.bf16.mxu1 %v8724_v52  ;;  %v8749_v42 = vld [vmem:[#allocation18_spill] sm:$0xff] }
 0x290   : > { %v8018_v58 = vmax.f32 %v8746_v35, %v3271_v0  ;;  %v3272_v50 = vmax.f32 %v3029_v39, 0.0 }
 0x291   : > { %v8021_v37 = vmax.f32 %v8747_v2, %v3269_v56  ;;  %v3270_v31 = vmax.f32 %v3027_v55, 0.0  ;;  %v5455_v3 = vpop.f32.mrb[200].mxu0  ;;  %v8752_v56 = vld [vmem:[#allocation19_spill] sm:$0xff] }
 0x292   : > { %v8024_v16 = vmax.f32 %v8748_v53, %v3272_v50  ;;  %v2782_v57 = vmul.f32 %v7940_v13, %v5455_v3  ;;  %v2399_v34 = vpop.f32.mrb[201].mxu0  ;;  %5548 = vmatpush3.bf16.msra.mxu1 %v6036_v24 }
 0x293   : > { %v8030_v54 = vmax.f32 %v8749_v42, %v3270_v31  ;;  %v2780_v0 = vmul.f32 %v7940_v13, %v2399_v34  ;;  %v5456_v39 = vpop.f32.mrb[202].mxu0  ;;  %5569 = vmatprep.subr.bf16.mxu1 %v8724_v52  ;;  %v8750_v31 = vpack.c.bf16 %v7810_v9, %v7803_v44  ;;  %v8751_v42 = vld [vmem:[#allocation25_spill] sm:$0xff] }
 0x294   : > { %v3032_v55 = vadd.f32 %v7967_v51, %v2782_v57  ;;  %v2783_v35 = vmul.f32 %v7940_v13, %v5456_v39  ;;  %v2402_v50 = vpop.f32.mrb[203].mxu0  ;;  %v8753_v9 = vld [vmem:[#allocation21_spill] sm:$0xff] }
 0x295   : > { %v3030_v24 = vadd.f32 %v7967_v51, %v2780_v0  ;;  %v2781_v2 = vmul.f32 %v7940_v13, %v2402_v50  ;;  %5530 = vmatmul.mubr.msk.bf16.gmra.mrb[36].mxu1 %vm3509_vm3, %v8750_v31 }
 0x296   : > { %v3275_v34 = vmax.f32 %v3032_v55, 0.0  ;;  %v3033_v3 = vadd.f32 %v7967_v51, %v2783_v35  ;;  %5533 = vmatprep.mubr.msk.bf16.mxu1 %vm6062_vm2, %v8724_v52 }
 0x297   : > { %v3273_v53 = vmax.f32 %v3030_v24, 0.0  ;;  %v3031_v57 = vadd.f32 %v7967_v51, %v2781_v2 }
 0x298   : > { %v8049_v39 = vmax.f32 %v8751_v42, %v3275_v34  ;;  %v3276_v0 = vmax.f32 %v3033_v3, 0.0  ;;  %v8757_v34 = vld [vmem:[#allocation24_spill] sm:$0xff] }
 0x299   : > { %v8052_v50 = vmax.f32 %v8752_v56, %v3273_v53  ;;  %v3274_v60 = vmax.f32 %v3031_v57, 0.0  ;;  %v5459_v44 = vpop.f32.mrb[204].mxu0 }
 0x29a   : > { %v8055_v31 = vmax.f32 %v8753_v9, %v3276_v0  ;;  %v2786_v55 = vmul.f32 %v7940_v13, %v5459_v44  ;;  %v2415_v35 = vpop.f32.mrb[205].mxu0 }
 0x29b   : > { %v8059_v25 = vmax.f32 %v8754_v46, %v3274_v60  ;;  %v2784_v24 = vmul.f32 %v7940_v13, %v2415_v35  ;;  %v5460_v2 = vpop.f32.mrb[206].mxu0  ;;  %v8755_v46 = vpack.c.bf16 %v7806_v5, %v7800_v47  ;;  %v8756_v35 = vld [vmem:[#allocation29_spill] sm:$0xff]  ;;  %v8758_v47 = vld [vmem:[#allocation22_spill] sm:$0xff] }
 0x29c   : > { %v3036_v56 = vadd.f32 %v7967_v51, %v2786_v55  ;;  %v2787_v3 = vmul.f32 %v7940_v13, %v5460_v2  ;;  %v2418_v53 = vpop.f32.mrb[207].mxu0 }
 0x29d   : > { %v3034_v42 = vadd.f32 %v7967_v51, %v2784_v24  ;;  %v2785_v0 = vmul.f32 %v7940_v13, %v2418_v53  ;;  %5534 = vmatmul.mubr.msk.bf16.gmra.mrb[40].mxu1 %vm3509_vm3, %v8755_v46 }
 0x29e   : > { %v3279_v60 = vmax.f32 %v3036_v56, 0.0  ;;  %v3037_v44 = vadd.f32 %v7967_v51, %v2787_v3  ;;  %5537 = vmatprep.mubr.msk.bf16.mxu1 %vm6062_vm2, %v8724_v52 }
 0x29f   : > { %v3277_v9 = vmax.f32 %v3034_v42, 0.0  ;;  %v3035_v55 = vadd.f32 %v7967_v51, %v2785_v0 }
 0x2a0   : > { %v8079_v2 = vmax.f32 %v8756_v35, %v3279_v60  ;;  %v3280_v24 = vmax.f32 %v3037_v44, 0.0 }
 0x2a1   : > { %v8082_v53 = vmax.f32 %v8757_v34, %v3277_v9  ;;  %v3278_v57 = vmax.f32 %v3035_v55, 0.0  ;;  %v5463_v5 = vpop.f32.mrb[208].mxu0 }
 0x2a2   : > { %v8085_v46 = vmax.f32 %v8758_v47, %v3280_v24  ;;  %v2790_v56 = vmul.f32 %v7940_v13, %v5463_v5  ;;  %v2431_v3 = vpop.f32.mrb[209].mxu0  ;;  %v8760_v24 = vpack.c.bf16 %v7832_v14, %v7827_v18  ;;  %v8763_v14 = vld [vmem:[#allocation31_spill] sm:$0xff] }
 0x2a3   : > { %v8089_v12 = vmax.f32 %v8759_v48, %v3278_v57  ;;  %v2788_v42 = vmul.f32 %v7940_v13, %v2431_v3  ;;  %v5464_v0 = vpop.f32.mrb[210].mxu0 }
 0x2a4   : > { %v3040_v60 = vadd.f32 %v7967_v51, %v2790_v56  ;;  %v2791_v44 = vmul.f32 %v7940_v13, %v5464_v0  ;;  %v2434_v34 = vpop.f32.mrb[211].mxu0  ;;  %v8761_v56 = vld [vmem:[#allocation33_spill] sm:$0xff]  ;;  %v8762_v0 = vld [vmem:[#allocation26_spill] sm:$0xff] }
 0x2a5   : > { %v3935_v9 = vpack.c.bf16 %v8089_v12, %v8082_v53  ;;  %v3038_v55 = vadd.f32 %v7967_v51, %v2788_v42  ;;  %v2789_v35 = vmul.f32 %v7940_v13, %v2434_v34  ;;  %5538 = vmatmul.mubr.msk.bf16.gmra.mrb[44].mxu1 %vm3509_vm3, %v8760_v24  ;;  %v6044_v12 = vld [vmem:[%s8420_s4 + $0x68] sm:$0xff]   ;;  %v8793_v53 = vld [vmem:[#allocation45_spill] sm:$0xff] }
 0x2a6   : > { %v3283_v48 = vmax.f32 %v3040_v60, 0.0  ;;  %v3041_v57 = vadd.f32 %v7967_v51, %v2791_v44  ;;  %5541 = vmatprep.mubr.msk.bf16.mxu1 %vm6062_vm2, %v8724_v52  ;;  %v3482_v60 = vpack.c.bf16 %v7824_v1, %v7824_v1  ;;  %v6037_v1 = vld [vmem:[%s8420_s4 + $0x30] sm:$0xff]  }
 0x2a7   : > { %v3281_v5 = vmax.f32 %v3038_v55, 0.0  ;;  %v3039_v47 = vadd.f32 %v7967_v51, %v2789_v35  ;;  %v8764_v55 = vld [vmem:[#allocation32_spill] sm:$0xff]  ;;  %v8765_v51 = vld [vmem:[#allocation35_spill] sm:$0xff] }
 0x2a8   : > { %v8107_v3 = vmax.f32 %v8761_v56, %v3283_v48  ;;  %v3284_v42 = vmax.f32 %v3041_v57, 0.0  ;;  %v6038_v57 = vld [vmem:[%s8420_s4 + $0x38] sm:$0xff]   ;;  %v8796_v56 = vld [vmem:[#allocation42_spill] sm:$0xff] }
 0x2a9   : > { %v8110_v13 = vmax.f32 %v8762_v0, %v3281_v5  ;;  %v3282_v34 = vmax.f32 %v3039_v47, 0.0  ;;  %v8767_v5 = vpack.c.bf16 %v7896_v11, %v7890_v15  ;;  %v3700_v15 = vpack.c.bf16 %v7952_v29, %v7952_v29  ;;  %v8795_v47 = vld [vmem:[#allocation44_spill] sm:$0xff]  ;;  %v8799_v0 = vld [vmem:[#allocation49_spill] sm:$0xff] }
 0x2aa   : > { %v8113_v18 = vmax.f32 %v8763_v14, %v3284_v42  ;;  %v8770_v11 = vpack.c.bf16 %v7949_v28, %v7961_v32  ;;  %v8773_v29 = vpack.c.bf16 %v8021_v37, %v7987_v61  ;;  %v6041_v28 = vld [vmem:[%s8420_s4 + $0x50] sm:$0xff]   ;;  %v8775_v32 = vpack.c.bf16 %v8059_v25, %v8052_v50  ;;  %v6043_v61 = vld [vmem:[%s8420_s4 + $0x60] sm:$0xff]   ;;  %v8788_v37 = vld [vmem:[#allocation39_spill] sm:$0xff] }
 0x2ab   : > { %v4050_v44 = vpack.c.bf16 %v8110_v13, %v8085_v46  ;;  %v8120_v24 = vmax.f32 %v8764_v55, %v3282_v34  ;;  %v8766_v46 = vpack.c.bf16 %v7900_v43, %v7893_v17  ;;  %v8768_v17 = vpack.c.bf16 %v7927_v63, %v7920_v41  ;;  %v6039_v63 = vld [vmem:[%s8420_s4 + $0x40] sm:$0xff]   ;;  %v6040_v41 = vld [vmem:[%s8420_s4 + $0x48] sm:$0xff]  }
 0x2ac   : > { %v4052_v35 = vpack.c.bf16 %v8765_v51, %v8113_v18  ;;  %v8769_v43 = vpack.c.bf16 %v7923_v10, %v7917_v36  ;;  %v8771_v36 = vpack.c.bf16 %v7984_v49, %v7955_v6  ;;  %v8772_v10 = vpack.c.bf16 %v7981_v20, %v7996_v33  ;;  %v8798_v42 = vld [vmem:[#allocation38_spill] sm:$0xff]  ;;  %v8802_v14 = vld [vmem:[#allocation47_spill] sm:$0xff] }
 0x2ad   : > { %v4051_v48 = vpack.c.bf16 %v8107_v3, %v8120_v24  ;;  %5542 = vmatmul.mubr.msk.bf16.gmra.mrb[48].mxu1 %vm3509_vm3, %v3482_v60  ;;  %v3818_v49 = vpack.c.bf16 %v8030_v54, %v8030_v54  ;;  %v8774_v6 = vpack.c.bf16 %v8024_v16, %v8018_v58  ;;  %v6042_v54 = vld [vmem:[%s8420_s4 + $0x58] sm:$0xff]   ;;  %v8776_v20 = vpack.c.bf16 %v8055_v31, %v8049_v39  ;;  %v6045_v58 = vld [vmem:[%s8420_s4 + $0x70] sm:$0xff]   ;;  %v8789_v39 = vld [vmem:[#allocation30_spill] sm:$0xff] }
 0x2ae   : > { %5549 = vmatprep.mubr.msk.bf16.mxu1 %vm6062_vm2, %v8724_v52  ;;  %v3936_v25 = vpack.c.bf16 %v8079_v2, %v8079_v2  ;;  %v8777_v33 = vpack.c.bf16 %v7526_v45, %v7510_v26  ;;  %v4054_v16 = vpack.c.bf16 %v7498_v7, %v7498_v7  ;;  %v8778_v26 = vpack.c.bf16 %v7558_v21, %v7517_v40  ;;  %v6046_v7 = vld [vmem:[%s8420_s4 + $0x78] sm:$0xff]   ;;  %v8801_v34 = vld [vmem:[#allocation46_spill] sm:$0xff] }
 0x2af   : > { %v8779_v45 = vpack.c.bf16 %v7549_v62, %v7576_v27  ;;  %v8780_v40 = vpack.c.bf16 %v7606_v30, %v7566_v19  ;;  %v8781_v21 = vpack.c.bf16 %v7598_v8, %v7621_v22  ;;  %v4172_v62 = vpack.c.bf16 %v7613_v59, %v7613_v59  ;;  %v6047_v19 = vld [vmem:[%s8420_s4 + $0x80] sm:$0xff]   ;;  %v6048_v8 = vld [vmem:[%s8420_s4 + $0x88] sm:$0xff]   ;;  %v8783_v30 = vld [vmem:[#allocation37_spill] sm:$0xff] }
 0x2b0   : > { %v8782_v27 = vpack.c.bf16 %v7656_v23, %v7645_v38  ;;  %v8784_v59 = vpack.c.bf16 %v7650_v4, %v8783_v30  ;;  %v8785_v22 = vld [vmem:[#allocation40_spill] sm:$0xff]  ;;  %v8790_v50 = vpack.c.bf16 %v8788_v37, %v8789_v39  ;;  %v8791_v4 = vld [vmem:[#allocation43_spill] sm:$0xff]  ;;  %v8792_v2 = vld [vmem:[#allocation41_spill] sm:$0xff]  ;;  %v8797_v3 = vpack.c.bf16 %v8795_v47, %v8796_v56 }
 0x2b1   : > { %v8786_v38 = vld [vmem:[#allocation36_spill] sm:$0xff]  ;;  %v4290_v31 = vpack.c.bf16 %v8791_v4, %v8791_v4  ;;  %v8800_v13 = vpack.c.bf16 %v8798_v42, %v8799_v0  ;;  %v8803_v18 = vpack.c.bf16 %v8801_v34, %v8802_v14  ;;  %v8804_v60 = vld [vmem:[#allocation50_spill] sm:$0xff] }
 0x2b2   : > { %v8787_v23 = vpack.c.bf16 %v8785_v22, %v8786_v38  ;;  %v5022_v55 = vld [vmem:[%s8421_s5] ss:$0 sm:$0xff] }
 0x2b3   : > { %v8379_v51 = vld [vmem:[%s8422_s6] ss:$0 sm:$0xff] }
 0x2b5   : > { %5550 = vmatmul.mubr.msk.bf16.vlgmr.msra.gmra.mrb[32].mxu1 %vm3509_vm3, %v8766_v46 }
 0x2b6   : > { %5570 = vmatpush3.bf16.msra.mxu1 %v6037_v1  ;;  %5553 = vmatprep.mubr.msk.bf16.mxu1 %vm6062_vm2, %v8724_v52 }
 0x2b7   : > { %5571 = vmatprep.subr.bf16.mxu1 %v8724_v52 }
 0x2ba   : > { %5572 = vmatpush3.bf16.msra.mxu1 %v6038_v57 }
 0x2bb   : > { %5593 = vmatprep.subr.bf16.mxu1 %v8724_v52 }
 0x2bd   : > { %5554 = vmatmul.mubr.msk.bf16.gmra.mrb[36].mxu1 %vm3509_vm3, %v8767_v5 }
 0x2be   : > { %5557 = vmatprep.mubr.msk.bf16.mxu1 %vm6062_vm2, %v8724_v52 }
 0x2c5   : > { %5558 = vmatmul.mubr.msk.bf16.gmra.mrb[40].mxu1 %vm3509_vm3, %v8768_v17 }
 0x2c6   : > { %5561 = vmatprep.mubr.msk.bf16.mxu1 %vm6062_vm2, %v8724_v52 }
 0x2cd   : > { %5562 = vmatmul.mubr.msk.bf16.gmra.mrb[44].mxu1 %vm3509_vm3, %v8769_v43 }
 0x2ce   : > { %5565 = vmatprep.mubr.msk.bf16.mxu1 %vm6062_vm2, %v8724_v52 }
 0x2d5   : > { %5566 = vmatmul.mubr.msk.bf16.gmra.mrb[48].mxu1 %vm3509_vm3, %v3700_v15 }
 0x2d6   : > { %5573 = vmatprep.mubr.msk.bf16.mxu1 %vm6062_vm2, %v8724_v52 }
 0x2dd   : > { %5574 = vmatmul.mubr.msk.bf16.vlgmr.msra.gmra.mrb[32].mxu1 %vm3509_vm3, %v8770_v11 }
 0x2de   : > { %5594 = vmatpush3.bf16.msra.mxu1 %v6039_v63  ;;  %5577 = vmatprep.mubr.msk.bf16.mxu1 %vm6062_vm2, %v8724_v52 }
 0x2df   : > { %5595 = vmatprep.subr.bf16.mxu1 %v8724_v52 }
 0x2e2   : > { %5596 = vmatpush3.bf16.msra.mxu1 %v6040_v41 }
 0x2e3   : > { %5617 = vmatprep.subr.bf16.mxu1 %v8724_v52 }
 0x2e5   : > { %5578 = vmatmul.mubr.msk.bf16.gmra.mrb[36].mxu1 %vm3509_vm3, %v8771_v36 }
 0x2e6   : > { %5581 = vmatprep.mubr.msk.bf16.mxu1 %vm6062_vm2, %v8724_v52 }
 0x2ed   : > { %5582 = vmatmul.mubr.msk.bf16.gmra.mrb[40].mxu1 %vm3509_vm3, %v8772_v10 }
 0x2ee   : > { %5585 = vmatprep.mubr.msk.bf16.mxu1 %vm6062_vm2, %v8724_v52 }
 0x2f5   : > { %5586 = vmatmul.mubr.msk.bf16.gmra.mrb[44].mxu1 %vm3509_vm3, %v8773_v29 }
 0x2f6   : > { %5589 = vmatprep.mubr.msk.bf16.mxu1 %vm6062_vm2, %v8724_v52 }
 0x2fd   : > { %5590 = vmatmul.mubr.msk.bf16.gmra.mrb[48].mxu1 %vm3509_vm3, %v3818_v49 }
 0x2fe   : > { %5597 = vmatprep.mubr.msk.bf16.mxu1 %vm6062_vm2, %v8724_v52 }
 0x305   : > { %5598 = vmatmul.mubr.msk.bf16.vlgmr.msra.gmra.mrb[32].mxu1 %vm3509_vm3, %v8774_v6 }
 0x306   : > { %5618 = vmatpush3.bf16.msra.mxu1 %v6041_v28  ;;  %5601 = vmatprep.mubr.msk.bf16.mxu1 %vm6062_vm2, %v8724_v52 }
 0x307   : > { %5619 = vmatprep.subr.bf16.mxu1 %v8724_v52 }
 0x30a   : > { %5620 = vmatpush3.bf16.msra.mxu1 %v6042_v54 }
 0x30b   : > { %5641 = vmatprep.subr.bf16.mxu1 %v8724_v52 }
 0x30d   : > { %5602 = vmatmul.mubr.msk.bf16.gmra.mrb[36].mxu1 %vm3509_vm3, %v8775_v32 }
 0x30e   : > { %5605 = vmatprep.mubr.msk.bf16.mxu1 %vm6062_vm2, %v8724_v52 }
 0x315   : > { %5606 = vmatmul.mubr.msk.bf16.gmra.mrb[40].mxu1 %vm3509_vm3, %v8776_v20 }
 0x316   : > { %5609 = vmatprep.mubr.msk.bf16.mxu1 %vm6062_vm2, %v8724_v52 }
 0x31d   : > { %5610 = vmatmul.mubr.msk.bf16.gmra.mrb[44].mxu1 %vm3509_vm3, %v3935_v9  ;;  %v8794_v9 = vpack.c.bf16 %v8792_v2, %v8793_v53 }
 0x31e   : > { %5613 = vmatprep.mubr.msk.bf16.mxu1 %vm6062_vm2, %v8724_v52 }
 0x325   : > { %5614 = vmatmul.mubr.msk.bf16.gmra.mrb[48].mxu1 %vm3509_vm3, %v3936_v25 }
 0x326   : > { %5621 = vmatprep.mubr.msk.bf16.mxu1 %vm6062_vm2, %v8724_v52 }
 0x32d   : > { %5622 = vmatmul.mubr.msk.bf16.vlgmr.msra.gmra.mrb[32].mxu1 %vm3509_vm3, %v4050_v44  ;;  %v4408_v44 = vpack.c.bf16 %v8804_v60, %v8804_v60 }
 0x32e   : > { %5642 = vmatpush3.bf16.msra.mxu1 %v6043_v61  ;;  %5625 = vmatprep.mubr.msk.bf16.mxu1 %vm6062_vm2, %v8724_v52 }
 0x32f   : > { %5643 = vmatprep.subr.bf16.mxu1 %v8724_v52 }
 0x332   : > { %5644 = vmatpush3.bf16.msra.mxu1 %v6044_v12 }
 0x333   : > { %5665 = vmatprep.subr.bf16.mxu1 %v8724_v52 }
 0x335   : > { %5626 = vmatmul.mubr.msk.bf16.gmra.mrb[36].mxu1 %vm3509_vm3, %v4051_v48 }
 0x336   : > { %5629 = vmatprep.mubr.msk.bf16.mxu1 %vm6062_vm2, %v8724_v52 }
 0x33d   : > { %5630 = vmatmul.mubr.msk.bf16.gmra.mrb[40].mxu1 %vm3509_vm3, %v4052_v35 }
 0x33e   : > { %5633 = vmatprep.mubr.msk.bf16.mxu1 %vm6062_vm2, %v8724_v52 }
 0x345   : > { %5634 = vmatmul.mubr.msk.bf16.gmra.mrb[44].mxu1 %vm3509_vm3, %v8777_v33 }
 0x346   : > { %5637 = vmatprep.mubr.msk.bf16.mxu1 %vm6062_vm2, %v8724_v52 }
 0x34d   : > { %5638 = vmatmul.mubr.msk.bf16.gmra.mrb[48].mxu1 %vm3509_vm3, %v4054_v16 }
 0x34e   : > { %5645 = vmatprep.mubr.msk.bf16.mxu1 %vm6062_vm2, %v8724_v52 }
 0x355   : > { %5646 = vmatmul.mubr.msk.bf16.vlgmr.msra.gmra.mrb[32].mxu1 %vm3509_vm3, %v8778_v26 }
 0x356   : > { %5666 = vmatpush3.bf16.msra.mxu1 %v6045_v58  ;;  %5649 = vmatprep.mubr.msk.bf16.mxu1 %vm6062_vm2, %v8724_v52 }
 0x357   : > { %5667 = vmatprep.subr.bf16.mxu1 %v8724_v52 }
 0x35a   : > { %5668 = vmatpush3.bf16.msra.mxu1 %v6046_v7 }
 0x35b   : > { %5689 = vmatprep.subr.bf16.mxu1 %v8724_v52 }
 0x35d   : > { %5650 = vmatmul.mubr.msk.bf16.gmra.mrb[36].mxu1 %vm3509_vm3, %v8779_v45 }
 0x35e   : > { %5653 = vmatprep.mubr.msk.bf16.mxu1 %vm6062_vm2, %v8724_v52 }
 0x365   : > { %5654 = vmatmul.mubr.msk.bf16.gmra.mrb[40].mxu1 %vm3509_vm3, %v8780_v40 }
 0x366   : > { %5657 = vmatprep.mubr.msk.bf16.mxu1 %vm6062_vm2, %v8724_v52 }
 0x36d   : > { %5658 = vmatmul.mubr.msk.bf16.gmra.mrb[44].mxu1 %vm3509_vm3, %v8781_v21 }
 0x36e   : > { %5661 = vmatprep.mubr.msk.bf16.mxu1 %vm6062_vm2, %v8724_v52 }
 0x375   : > { %5662 = vmatmul.mubr.msk.bf16.gmra.mrb[48].mxu1 %vm3509_vm3, %v4172_v62 }
 0x376   : > { %5669 = vmatprep.mubr.msk.bf16.mxu1 %vm6062_vm2, %v8724_v52 }
 0x37d   : > { %5670 = vmatmul.mubr.msk.bf16.vlgmr.msra.gmra.mrb[32].mxu1 %vm3509_vm3, %v8782_v27 }
 0x37e   : > { %5690 = vmatpush3.bf16.msra.mxu1 %v6047_v19  ;;  %5673 = vmatprep.mubr.msk.bf16.mxu1 %vm6062_vm2, %v8724_v52 }
 0x37f   : > { %5691 = vmatprep.subr.bf16.mxu1 %v8724_v52 }
 0x382   : > { %5692 = vmatpush3.bf16.msra.mxu1 %v6048_v8 }
 0x385   : > { %5674 = vmatmul.mubr.msk.bf16.gmra.mrb[36].mxu1 %vm3509_vm3, %v8784_v59 }
 0x386   : > { %5677 = vmatprep.mubr.msk.bf16.mxu1 %vm6062_vm2, %v8724_v52 }
 0x38d   : > { %5678 = vmatmul.mubr.msk.bf16.gmra.mrb[40].mxu1 %vm3509_vm3, %v8787_v23 }
 0x38e   : > { %5681 = vmatprep.mubr.msk.bf16.mxu1 %vm6062_vm2, %v8724_v52 }
 0x395   : > { %5682 = vmatmul.mubr.msk.bf16.gmra.mrb[44].mxu1 %vm3509_vm3, %v8790_v50 }
 0x396   : > { %5685 = vmatprep.mubr.msk.bf16.mxu1 %vm6062_vm2, %v8724_v52 }
 0x39d   : > { %5686 = vmatmul.mubr.msk.bf16.gmra.mrb[48].mxu1 %vm3509_vm3, %v4290_v31 }
 0x39e   : > { %5693 = vmatprep.mubr.msk.bf16.mxu1 %vm6062_vm2, %v8724_v52 }
 0x3a5   : > { %5694 = vmatmul.mubr.msk.bf16.vlgmr.msra.gmra.mrb[32].mxu1 %vm3509_vm3, %v8794_v9 }
 0x3a6   : > { %5697 = vmatprep.mubr.msk.bf16.mxu1 %vm6062_vm2, %v8724_v52 }
 0x3ad   : > { %5698 = vmatmul.mubr.msk.bf16.gmra.mrb[36].mxu1 %vm3509_vm3, %v8797_v3 }
 0x3ae   : > { %5701 = vmatprep.mubr.msk.bf16.mxu1 %vm6062_vm2, %v8724_v52 }
 0x3b5   : > { %5702 = vmatmul.mubr.msk.bf16.gmra.mrb[40].mxu1 %vm3509_vm3, %v8800_v13 }
 0x3b6   : > { %5705 = vmatprep.mubr.msk.bf16.mxu1 %vm6062_vm2, %v8724_v52 }
 0x3bd   : > { %5706 = vmatmul.mubr.msk.bf16.gmra.mrb[44].mxu1 %vm3509_vm3, %v8803_v18 }
 0x3be   : > { %5709 = vmatprep.mubr.msk.bf16.mxu1 %vm6062_vm2, %v8724_v52 }
 0x3c5   : > { %5710 = vmatmul.mubr.msk.bf16.gmra.mrb[48].mxu1 %vm3509_vm3, %v4408_v44 }
 0x478   : > { %v4475_v24 = vpop.f32.mrb[32].mxu1 }
 0x479   : > { %v4529_v52 = vmul.f32 %v5022_v55, %v4475_v24  ;;  %v5695_v35 = vpop.f32.mrb[33].mxu1 }
 0x47a   : > { %v4478_v48 = vpop.f32.mrb[34].mxu1 }
 0x47b   : > { %v4545_v1 = vadd.f32 %v8379_v51, %v4529_v52  ;;  %v4530_v46 = vmul.f32 %v5022_v55, %v4478_v48  ;;  %v5696_v57 = vpop.f32.mrb[35].mxu1 }
 0x47d   : > { %v4554_v5 = vmax.f32 %v4545_v1, 0.0  ;;  %v4546_v17 = vadd.f32 %v8379_v51, %v4530_v46 }
 0x47f   : > { %v5035_v43 = vpack.c.bf16 %v4554_v5, %v4554_v5  ;;  %v4555_v15 = vmax.f32 %v4546_v17, 0.0 }
 0x480   : > { %v4483_v63 = vpop.f32.mrb[36].mxu1 }
 0x481   : > { %4601 = vst.msk [vmem:[%s8386_s16] sm:$0xf] %vm4600_vm4, %v5035_v43  ;;  %v5036_v11 = vpack.c.bf16 %v4555_v15, %v4555_v15  ;;  %v4531_v41 = vmul.f32 %v5022_v55, %v4483_v63  ;;  %v5699_v36 = vpop.f32.mrb[37].mxu1 }
 0x482   : > { %v4486_v10 = vpop.f32.mrb[38].mxu1 }
 0x483   : > { %4602 = vst.msk [vmem:[%s8386_s16 + $0x4] sm:$0xf] %vm4600_vm4, %v5036_v11  ;;  %v4547_v29 = vadd.f32 %v8379_v51, %v4531_v41  ;;  %v4532_v49 = vmul.f32 %v5022_v55, %v4486_v10  ;;  %v5700_v28 = vpop.f32.mrb[39].mxu1 }
 0x485   : > { %v4556_v6 = vmax.f32 %v4547_v29, 0.0  ;;  %v4548_v54 = vadd.f32 %v8379_v51, %v4532_v49 }
 0x487   : > { %v5037_v32 = vpack.c.bf16 %v4556_v6, %v4556_v6  ;;  %v4557_v20 = vmax.f32 %v4548_v54, 0.0 }
 0x488   : > { %v4491_v25 = vpop.f32.mrb[40].mxu1 }
 0x489   : > { %4603 = vst.msk [vmem:[%s8386_s16 + $0x8] sm:$0xf] %vm4600_vm4, %v5037_v32  ;;  %v5038_v61 = vpack.c.bf16 %v4557_v20, %v4557_v20  ;;  %v4533_v12 = vmul.f32 %v5022_v55, %v4491_v25  ;;  %v5703_v33 = vpop.f32.mrb[41].mxu1 }
 0x48a   : > { %v4494_v16 = vpop.f32.mrb[42].mxu1 }
 0x48b   : > { %4604 = vst.msk [vmem:[%s8386_s16 + $0xc] sm:$0xf] %vm4600_vm4, %v5038_v61  ;;  %v4549_v58 = vadd.f32 %v8379_v51, %v4533_v12  ;;  %v4534_v26 = vmul.f32 %v5022_v55, %v4494_v16  ;;  %v5704_v7 = vpop.f32.mrb[43].mxu1 }
 0x48d   : > { %v4558_v45 = vmax.f32 %v4549_v58, 0.0  ;;  %v4550_v40 = vadd.f32 %v8379_v51, %v4534_v26 }
 0x48f   : > { %v5039_v21 = vpack.c.bf16 %v4558_v45, %v4558_v45  ;;  %v4559_v62 = vmax.f32 %v4550_v40, 0.0 }
 0x490   : > { %v4499_v19 = vpop.f32.mrb[44].mxu1 }
 0x491   : > { %4605 = vst.msk [vmem:[%s8386_s16 + $0x10] sm:$0xf] %vm4600_vm4, %v5039_v21  ;;  %v5040_v27 = vpack.c.bf16 %v4559_v62, %v4559_v62  ;;  %v4535_v8 = vmul.f32 %v5022_v55, %v4499_v19  ;;  %v5707_v30 = vpop.f32.mrb[45].mxu1 }
 0x492   : > { %v4502_v59 = vpop.f32.mrb[46].mxu1 }
 0x493   : > { %4606 = vst.msk [vmem:[%s8386_s16 + $0x14] sm:$0xf] %vm4600_vm4, %v5040_v27  ;;  %v4551_v22 = vadd.f32 %v8379_v51, %v4535_v8  ;;  %v4536_v38 = vmul.f32 %v5022_v55, %v4502_v59  ;;  %v5708_v23 = vpop.f32.mrb[47].mxu1 }
 0x495   : > { %v4560_v37 = vmax.f32 %v4551_v22, 0.0  ;;  %v4552_v39 = vadd.f32 %v8379_v51, %v4536_v38 }
 0x497   : > { %v5041_v50 = vpack.c.bf16 %v4560_v37, %v4560_v37  ;;  %v4561_v4 = vmax.f32 %v4552_v39, 0.0 }
 0x498   : > { %v4507_v31 = vpop.f32.mrb[48].mxu1 }
 0x499   : > { %4607 = vst.msk [vmem:[%s8386_s16 + $0x18] sm:$0xf] %vm4600_vm4, %v5041_v50  ;;  %v5042_v2 = vpack.c.bf16 %v4561_v4, %v4561_v4  ;;  %v4537_v53 = vmul.f32 %v5022_v55, %v4507_v31  ;;  %v5711_v9 = vpop.f32.mrb[49].mxu1 }
 0x49a   : > { %v4510_v47 = vpop.f32.mrb[50].mxu1 }
 0x49b   : > { %4608 = vst.msk [vmem:[%s8386_s16 + $0x1c] sm:$0xf] %vm4600_vm4, %v5042_v2  ;;  %v4553_v56 = vadd.f32 %v8379_v51, %v4537_v53  ;;  %v5712_v3 = vpop.f32.mrb[51].mxu1 }
 0x49d   : > { %v4562_v42 = vmax.f32 %v4553_v56, 0.0 }
 0x49f   : > { %v5043_v0 = vpack.c.bf16 %v4562_v42, %v4562_v42 }
 0x4a1   : > { %4609 = vst.msk [vmem:[%s8386_s16 + $0x20] sm:$0xf] %vm4600_vm4, %v5043_v0 }
 0x4a2 PF: > { %s17_s24 = sadd.s32 1, %s6059_s24  }
 0x4a3   : > { %p14_p5 = scmp.ge.s32.totalorder %s17_s24, 4  }
 0x4a5   :  { %16 = sbr.rel (!%p14_p5) target bundleno = 1 (0x1), region = 86 }

// kernel: actor_forward.3
= control target key start
LH: loop header
LB: loop body
LE: loop exit
PB: predicated region body
PF: predicated region fallthrough
CT: control target
= control target key end

     0   :  { %19 = vsyncpa [#allocation4], 0  ;;  %s6406_s29 = smov 0   ;;  %s7889_s0 = inlined_call_operand.vmem [shape: bf16[2,4608], index: 0, kind: input, shape index: {}]   ;;  %s7890_s1 = inlined_call_operand.vmem [shape: f32[2,6], index: 1, kind: input, shape index: {}]   ;;  %s7891_s2 = inlined_call_operand.vmem [shape: bf16[4608,600], index: 2, kind: input, shape index: {}]   ;;  %s7892_s3 = inlined_call_operand.vmem [shape: f32[1,600], index: 3, kind: input, shape index: {}]   ;;  %s7893_s4 = inlined_call_operand.vmem [shape: f32[6,600], index: 4, kind: input, shape index: {}]   ;;  %s7894_s5 = inlined_call_operand.vmem [shape: f32[1,600], index: 5, kind: input, shape index: {}]   ;;  %s7895_s6 = inlined_call_operand.vmem [shape: bf16[600,512], index: 6, kind: input, shape index: {}]   ;;  %s7896_s7 = inlined_call_operand.vmem [shape: bf16[600,512], index: 7, kind: input, shape index: {}]   ;;  %s7897_s8 = inlined_call_operand.vmem [shape: f32[1,512], index: 8, kind: input, shape index: {}]   ;;  %s7898_s9 = inlined_call_operand.vmem [shape: f32[1,512], index: 9, kind: input, shape index: {}]   ;;  %s7899_s10 = inlined_call_operand.vmem [shape: f32[512,2], index: 10, kind: input, shape index: {}]   ;;  %s7900_s11 = inlined_call_operand.vmem [shape: f32[1,2], index: 11, kind: input, shape index: {}]   ;;  %s7901_s12 = inlined_call_operand.vmem [shape: f32[1,2], index: 12, kind: input, shape index: {}]   ;;  %s7902_s13 = inlined_call_operand.vmem [shape: f32[1,2], index: 13, kind: input, shape index: {}]   ;;  %s7903_s14 = inlined_call_operand.hbm [shape: f32[2,2], index: 14, kind: output, shape index: {}]  }
   0x1 LB: > { %s6412_s30 = sadd.s32 4294967295, %s6322_s29   ;;  %p4859_p0 = scmp.ge.s32.totalorder %s6322_s29, 1  ;;  %s6322_s29 = sphi %s6406_s29, %s25_s29  }
   0x2   : > { %p420_p1 = scmp.lt.s32.totalorder %s6322_s29, 10 }
   0x4   : > { %p421_p2 = pnand %p4859_p0, %p420_p1 }
   0x5   : > { %s4860_s15 = sshll.u32 (!%p421_p2), %s6412_s30, 2  ;;  %s4861_s16 = sshll.u32 (!%p421_p2), %s6412_s30, 6 }
   0x6   : > { %424 = sbr.rel (%p421_p2) target bundleno = 1303 (0x517), region = 76  ;;  %p467_p3 = scmp.lt.s32.totalorder (!%p421_p2), %s4860_s15, 35 }
   0x7   : > { %p472_p4 = scmp.lt.s32.totalorder (!%p421_p2), %s4861_s16, 575  ;;  %p4863_p5 = scmp.ne.s32.totalorder (!%p421_p2), %s6412_s30, 0 }
   0xd   : > { %s7905_s15 = smov (!%p467_p3, %s4860_s15), 35  ;;  %s7907_s16 = smov (!%p472_p4, %s4861_s16), 575 }
   0xe   : > { %s469_s19 = scalar_lea.vmem %s7889_s0, %s7905_s15  ;;  %s5586_s20 = smul.u32 20, %s7907_s16  ;;  %vm484_vm0 = vcmask (!%p4863_p5), 713728   ;;  %v6324_v0 = vmov (!%p4863_p5), 0.0  }
   0xf   : > { %482 = sbr.rel (%p4863_p5) target bundleno = 22 (0x16), region = 80  ;;  %483 = vst [vmem:[#allocation2] sm:$0xff] (!%p4863_p5), %v6324_v0  ;;  %485 = vst.msk [vmem:[#allocation2 + $0x8] sm:$0x3] (!%p4863_p5), %vm484_vm0, %v6324_v0 }
  0x10   : > { %s6427_s23 = scalar_lea.vmem %s7891_s2, %s5586_s20 }
  0x16 PF: > { %v5608_v1 = vld [vmem:[%s6427_s23 + $0x4] ss:$20 sps:$4 sm:$0xff]   ;;  %v5610_v2 = vld [vmem:[%s6427_s23 + $0xc] ss:$20 sps:$4 sm:$0xff]   ;;  %v5613_v4 = vld [vmem:[%s6427_s23 + $0x8] ss:$20 sps:$4 sm:$0xff]   ;;  %v693_v41 = vlaneseq }
  0x17   : > { %1542 = vmatprep.subr.bf16.mxu0 %v5608_v1  ;;  %v5612_v3 = vld [vmem:[%s6427_s23] ss:$20 sps:$4 sm:$0xff]   ;;  %1624 = vmatprep.subr.bf16.mxu1 %v5610_v2  ;;  %v5618_v7 = vld [vmem:[%s6427_s23 + $0x28] ss:$20 sps:$4 sm:$0xff]   ;;  %v5619_v8 = vld [vmem:[%s6427_s23 + $0x30] ss:$20 sps:$4 sm:$0xff]  }
  0x18   : > { %v5614_v5 = vld [vmem:[%s6427_s23 + $0x2c] ss:$20 sps:$4 sm:$0xff]   ;;  %1543 = vmatpush1.bf16.msra.mxu0 %v5612_v3  ;;  %1625 = vmatpush1.bf16.msra.mxu1 %v5613_v4  ;;  %v5616_v6 = vld [vmem:[%s6427_s23 + $0x34] ss:$20 sps:$4 sm:$0xff]   ;;  %v5622_v10 = vld [vmem:[%s6427_s23 + $0x5c] ss:$20 sps:$4 sm:$0xff]  }
  0x19   : > { %1544 = vmatprep.subr.bf16.mxu0 %v5614_v5  ;;  %1626 = vmatprep.subr.bf16.mxu1 %v5616_v6  ;;  %v5620_v9 = vld [vmem:[%s6427_s23 + $0x54] ss:$20 sps:$4 sm:$0xff]   ;;  %v5624_v11 = vld [vmem:[%s6427_s23 + $0x50] ss:$20 sps:$4 sm:$0xff]   ;;  %v5625_v12 = vld [vmem:[%s6427_s23 + $0x58] ss:$20 sps:$4 sm:$0xff]  }
  0x1a   : > { %v5626_v13 = vld [vmem:[%s6427_s23 + $0x7c] ss:$20 sps:$4 sm:$0xff]   ;;  %v5628_v14 = vld [vmem:[%s6427_s23 + $0x84] ss:$20 sps:$4 sm:$0xff]   ;;  %v5631_v16 = vld [vmem:[%s6427_s23 + $0x80] ss:$20 sps:$4 sm:$0xff]  }
  0x1b   : > { %v5630_v15 = vld [vmem:[%s6427_s23 + $0x78] ss:$20 sps:$4 sm:$0xff]   ;;  %v5636_v19 = vld [vmem:[%s6427_s23 + $0xa0] ss:$20 sps:$4 sm:$0xff]   ;;  %v5637_v20 = vld [vmem:[%s6427_s23 + $0xa8] ss:$20 sps:$4 sm:$0xff]  }
  0x1c   : > { %1545 = vmatpush1.bf16.msra.mxu0 %v5618_v7  ;;  %1627 = vmatpush1.bf16.msra.mxu1 %v5619_v8  ;;  %v5632_v17 = vld [vmem:[%s6427_s23 + $0xa4] ss:$20 sps:$4 sm:$0xff]   ;;  %v5634_v18 = vld [vmem:[%s6427_s23 + $0xac] ss:$20 sps:$4 sm:$0xff]   ;;  %v5640_v22 = vld [vmem:[%s6427_s23 + $0xd4] ss:$20 sps:$4 sm:$0xff]  }
  0x1d   : > { %1546 = vmatprep.subr.bf16.mxu0 %v5620_v9  ;;  %1628 = vmatprep.subr.bf16.mxu1 %v5622_v10  ;;  %v5638_v21 = vld [vmem:[%s6427_s23 + $0xcc] ss:$20 sps:$4 sm:$0xff]   ;;  %v5642_v23 = vld [vmem:[%s6427_s23 + $0xc8] ss:$20 sps:$4 sm:$0xff]   ;;  %v5643_v24 = vld [vmem:[%s6427_s23 + $0xd0] ss:$20 sps:$4 sm:$0xff]  }
  0x1e   : > { %v5644_v25 = vld [vmem:[%s6427_s23 + $0xf4] ss:$20 sps:$4 sm:$0xff]   ;;  %v5646_v26 = vld [vmem:[%s6427_s23 + $0xfc] ss:$20 sps:$4 sm:$0xff]   ;;  %v5649_v28 = vld [vmem:[%s6427_s23 + $0xf8] ss:$20 sps:$4 sm:$0xff]  }
  0x1f   : > { %v5648_v27 = vld [vmem:[%s6427_s23 + $0xf0] ss:$20 sps:$4 sm:$0xff]   ;;  %v5654_v31 = vld [vmem:[%s6427_s23 + $0x118] ss:$20 sps:$4 sm:$0xff]   ;;  %v5655_v32 = vld [vmem:[%s6427_s23 + $0x120] ss:$20 sps:$4 sm:$0xff]  }
  0x20   : > { %1547 = vmatpush1.bf16.msra.mxu0 %v5624_v11  ;;  %1629 = vmatpush1.bf16.msra.mxu1 %v5625_v12  ;;  %v5650_v29 = vld [vmem:[%s6427_s23 + $0x11c] ss:$20 sps:$4 sm:$0xff]   ;;  %v5652_v30 = vld [vmem:[%s6427_s23 + $0x124] ss:$20 sps:$4 sm:$0xff]   ;;  %v5658_v34 = vld [vmem:[%s6427_s23 + $0x14c] ss:$20 sps:$4 sm:$0xff]  }
  0x21   : > { %1548 = vmatprep.subr.bf16.mxu0 %v5626_v13  ;;  %1630 = vmatprep.subr.bf16.mxu1 %v5628_v14  ;;  %v5656_v33 = vld [vmem:[%s6427_s23 + $0x144] ss:$20 sps:$4 sm:$0xff]   ;;  %v5660_v35 = vld [vmem:[%s6427_s23 + $0x140] ss:$20 sps:$4 sm:$0xff]   ;;  %v5661_v36 = vld [vmem:[%s6427_s23 + $0x148] ss:$20 sps:$4 sm:$0xff]  }
  0x22   : > { %v5662_v37 = vld [vmem:[%s6427_s23 + $0x16c] ss:$20 sps:$4 sm:$0xff]   ;;  %v5664_v38 = vld [vmem:[%s6427_s23 + $0x174] ss:$20 sps:$4 sm:$0xff]   ;;  %v6325_v39 = vmov 1966171168  }
  0x23   : > { %v691_v40 = vunpack.c.l.s4 %v6325_v39  ;;  %v5666_v42 = vld [vmem:[%s6427_s23 + $0x168] ss:$20 sps:$4 sm:$0xff]   ;;  %v5667_v43 = vld [vmem:[%s6427_s23 + $0x170] ss:$20 sps:$4 sm:$0xff]   ;;  %v6472_v47 = vshrl.u32 %v693_v41, 7  ;;  %vm1820_vm1 = vcmask 713728  }
  0x24   : > { %1549 = vmatpush1.bf16.msra.mxu0 %v5630_v15  ;;  %1631 = vmatpush1.bf16.msra.mxu1 %v5631_v16  ;;  %v5668_v44 = vld [vmem:[%s6427_s23 + $0x194] ss:$20 sps:$4 sm:$0xff]   ;;  %v5670_v45 = vld [vmem:[%s6427_s23 + $0x19c] ss:$20 sps:$4 sm:$0xff]   ;;  %v5673_v49 = vld [vmem:[%s6427_s23 + $0x198] ss:$20 sps:$4 sm:$0xff]  }
  0x25   : > { %1550 = vmatprep.subr.bf16.mxu0 %v5632_v17  ;;  %1632 = vmatprep.subr.bf16.mxu1 %v5634_v18  ;;  %v692_v46 = vunpack.c.0.s8 %v691_v40  ;;  %v5672_v48 = vld [vmem:[%s6427_s23 + $0x190] ss:$20 sps:$4 sm:$0xff]   ;;  %v4864_v53 = vld.sshfl [vmem:[%s469_s19] sm:$0x33 pattern:$0x75316420] }
  0x26   : > { %v5674_v50 = vld [vmem:[%s6427_s23 + $0x1bc] ss:$20 sps:$4 sm:$0xff]   ;;  %v5676_v51 = vld [vmem:[%s6427_s23 + $0x1c4] ss:$20 sps:$4 sm:$0xff]   ;;  %v5679_v55 = vld [vmem:[%s6427_s23 + $0x1c0] ss:$20 sps:$4 sm:$0xff]   ;;  %v689_v56 = vcombine.high %v4864_v53, %v4864_v53 }
  0x27   : > { %v695_v52 = vsub.s32 %v692_v46, %v6472_v47  ;;  %v5678_v54 = vld [vmem:[%s6427_s23 + $0x1b8] ss:$20 sps:$4 sm:$0xff]   ;;  %v5684_v60 = vld [vmem:[%s6427_s23 + $0x1e0] ss:$20 sps:$4 sm:$0xff]   ;;  %v5685_v61 = vld [vmem:[%s6427_s23 + $0x1e8] ss:$20 sps:$4 sm:$0xff]  }
  0x28   : > { %1551 = vmatpush1.bf16.msra.mxu0 %v5636_v19  ;;  %1633 = vmatpush1.bf16.msra.mxu1 %v5637_v20  ;;  %v5680_v57 = vld [vmem:[%s6427_s23 + $0x1e4] ss:$20 sps:$4 sm:$0xff]   ;;  %v5682_v58 = vld [vmem:[%s6427_s23 + $0x1ec] ss:$20 sps:$4 sm:$0xff]   ;;  %v5688_v63 = vld [vmem:[%s6427_s23 + $0x214] ss:$20 sps:$4 sm:$0xff]  }
  0x29   : > { %1552 = vmatprep.subr.bf16.mxu0 %v5638_v21  ;;  %1634 = vmatprep.subr.bf16.mxu1 %v5640_v22  ;;  %v6488_v59 = vrot.slane %v689_v56, %v695_v52  ;;  %v5686_v62 = vld [vmem:[%s6427_s23 + $0x20c] ss:$20 sps:$4 sm:$0xff]   ;;  %v5690_v0 = vld [vmem:[%s6427_s23 + $0x208] ss:$20 sps:$4 sm:$0xff]   ;;  %v5691_v1 = vld [vmem:[%s6427_s23 + $0x210] ss:$20 sps:$4 sm:$0xff]   ;;  %v6509_v13 = vrot.slane %v4864_v53, %v695_v52 }
  0x2a   : > { %v5692_v2 = vld [vmem:[%s6427_s23 + $0x234] ss:$20 sps:$4 sm:$0xff]   ;;  %v5694_v3 = vld [vmem:[%s6427_s23 + $0x23c] ss:$20 sps:$4 sm:$0xff]   ;;  %v5697_v5 = vld [vmem:[%s6427_s23 + $0x238] ss:$20 sps:$4 sm:$0xff]  }
  0x2b   : > { %1574 = vmatprep.mubr.bf16.mxu0 %v6488_v59  ;;  %1656 = vmatprep.mubr.bf16.mxu1 %v6488_v59  ;;  %v5696_v4 = vld [vmem:[%s6427_s23 + $0x230] ss:$20 sps:$4 sm:$0xff]   ;;  %v5702_v8 = vld [vmem:[%s6427_s23 + $0x258] ss:$20 sps:$4 sm:$0xff]   ;;  %v5703_v9 = vld [vmem:[%s6427_s23 + $0x260] ss:$20 sps:$4 sm:$0xff]   ;;  %v6516_v17 = vcombine.high %v6488_v59, %v6488_v59 }
  0x2c   : > { %1553 = vmatpush1.bf16.msra.mxu0 %v5642_v23  ;;  %1635 = vmatpush1.bf16.msra.mxu1 %v5643_v24  ;;  %v5698_v6 = vld [vmem:[%s6427_s23 + $0x25c] ss:$20 sps:$4 sm:$0xff]   ;;  %v5700_v7 = vld [vmem:[%s6427_s23 + $0x264] ss:$20 sps:$4 sm:$0xff]   ;;  %v5709_v11 = vld [vmem:[%s6427_s23 + $0x28c] ss:$20 sps:$4 sm:$0xff]  }
  0x2d   : > { %1554 = vmatprep.subr.bf16.mxu0 %v5644_v25  ;;  %1636 = vmatprep.subr.bf16.mxu1 %v5646_v26  ;;  %v5706_v10 = vld [vmem:[%s6427_s23 + $0x284] ss:$20 sps:$4 sm:$0xff]   ;;  %v5704_v12 = vld [vmem:[%s6427_s23 + $0x280] ss:$20 sps:$4 sm:$0xff]   ;;  %v5707_v14 = vld [vmem:[%s6427_s23 + $0x288] ss:$20 sps:$4 sm:$0xff]  }
  0x2e   : > { %v5712_v15 = vld [vmem:[%s6427_s23 + $0x2ac] ss:$20 sps:$4 sm:$0xff]   ;;  %v5715_v16 = vld [vmem:[%s6427_s23 + $0x2b4] ss:$20 sps:$4 sm:$0xff]   ;;  %v5713_v19 = vld [vmem:[%s6427_s23 + $0x2b0] ss:$20 sps:$4 sm:$0xff]  }
  0x2f   : > { %v5710_v18 = vld [vmem:[%s6427_s23 + $0x2a8] ss:$20 sps:$4 sm:$0xff]   ;;  %v5716_v22 = vld [vmem:[%s6427_s23 + $0x2d0] ss:$20 sps:$4 sm:$0xff]   ;;  %v5719_v23 = vld [vmem:[%s6427_s23 + $0x2d8] ss:$20 sps:$4 sm:$0xff]  }
  0x30   : > { %1555 = vmatpush1.bf16.msra.mxu0 %v5648_v27  ;;  %1637 = vmatpush1.bf16.msra.mxu1 %v5649_v28  ;;  %v5718_v20 = vld [vmem:[%s6427_s23 + $0x2d4] ss:$20 sps:$4 sm:$0xff]   ;;  %v5721_v21 = vld [vmem:[%s6427_s23 + $0x2dc] ss:$20 sps:$4 sm:$0xff]   ;;  %v5727_v25 = vld [vmem:[%s6427_s23 + $0x304] ss:$20 sps:$4 sm:$0xff]  }
  0x31   : > { %1556 = vmatprep.subr.bf16.mxu0 %v5650_v29  ;;  %1638 = vmatprep.subr.bf16.mxu1 %v5652_v30  ;;  %v5724_v24 = vld [vmem:[%s6427_s23 + $0x2fc] ss:$20 sps:$4 sm:$0xff]   ;;  %v5722_v26 = vld [vmem:[%s6427_s23 + $0x2f8] ss:$20 sps:$4 sm:$0xff]   ;;  %v5725_v27 = vld [vmem:[%s6427_s23 + $0x300] ss:$20 sps:$4 sm:$0xff]  }
  0x32   : > { %v5730_v28 = vld [vmem:[%s6427_s23 + $0x324] ss:$20 sps:$4 sm:$0xff]   ;;  %v5733_v29 = vld [vmem:[%s6427_s23 + $0x32c] ss:$20 sps:$4 sm:$0xff]   ;;  %v5748_v40 = vld [vmem:[%s6427_s23 + $0x39c] ss:$20 sps:$4 sm:$0xff]  }
  0x33   : > { %v5728_v30 = vld [vmem:[%s6427_s23 + $0x320] ss:$20 sps:$4 sm:$0xff]   ;;  %v5743_v39 = vld [vmem:[%s6427_s23 + $0x378] ss:$20 sps:$4 sm:$0xff]   ;;  %v5761_v52 = vld [vmem:[%s6427_s23 + $0x3f0] ss:$20 sps:$4 sm:$0xff]  }
  0x34   : > { %1557 = vmatpush1.bf16.msra.mxu0 %v5654_v31  ;;  %1639 = vmatpush1.bf16.msra.mxu1 %v5655_v32  ;;  %v5731_v31 = vld [vmem:[%s6427_s23 + $0x328] ss:$20 sps:$4 sm:$0xff]   ;;  %v5736_v32 = vld [vmem:[%s6427_s23 + $0x34c] ss:$20 sps:$4 sm:$0xff]   ;;  %v5751_v41 = vld [vmem:[%s6427_s23 + $0x3a4] ss:$20 sps:$4 sm:$0xff]  }
  0x35   : > { %1558 = vmatprep.subr.bf16.mxu0 %v5656_v33  ;;  %1640 = vmatprep.subr.bf16.mxu1 %v5658_v34  ;;  %v5739_v33 = vld [vmem:[%s6427_s23 + $0x354] ss:$20 sps:$4 sm:$0xff]   ;;  %v5767_v56 = vld [vmem:[%s6427_s23 + $0x418] ss:$20 sps:$4 sm:$0xff]   ;;  %p5025_p6 = scmp.ne.s32.totalorder %s6412_s30, 8 }
  0x36   : > { %v5734_v34 = vld [vmem:[%s6427_s23 + $0x348] ss:$20 sps:$4 sm:$0xff]   ;;  %v5752_v46 = vld [vmem:[%s6427_s23 + $0x3c0] ss:$20 sps:$4 sm:$0xff]   ;;  %vm1917_vm2 = vcmask (!%p5025_p6), 1045504   ;;  %vm1913_vm3 = vcmask (!%p5025_p6), 48128  }
  0x37   : > { %v5766_v53 = vld [vmem:[%s6427_s23 + $0x414] ss:$20 sps:$4 sm:$0xff]   ;;  %vm6328_vm4 = vmmov (!%p5025_p6), 0   ;;  %vm3245_vm5 = vcmask (!%p5025_p6), 1043456   ;;  %vm3241_vm6 = vcmask (!%p5025_p6), 719872   ;;  %vm4799_vm7 = vcmask (!%p5025_p6), 9216  }
  0x38   : > { %1559 = vmatpush1.bf16.msra.mxu0 %v5660_v35  ;;  %1641 = vmatpush1.bf16.msra.mxu1 %v5661_v36  ;;  %v5737_v35 = vld [vmem:[%s6427_s23 + $0x350] ss:$20 sps:$4 sm:$0xff]   ;;  %v5742_v36 = vld [vmem:[%s6427_s23 + $0x374] ss:$20 sps:$4 sm:$0xff]  }
  0x39   : > { %1560 = vmatprep.subr.bf16.mxu0 %v5662_v37  ;;  %1642 = vmatprep.subr.bf16.mxu1 %v5664_v38  ;;  %v5745_v37 = vld [vmem:[%s6427_s23 + $0x37c] ss:$20 sps:$4 sm:$0xff]  }
  0x3a   : > { %v5740_v38 = vld [vmem:[%s6427_s23 + $0x370] ss:$20 sps:$4 sm:$0xff]  }
  0x3c   : > { %1561 = vmatpush1.bf16.msra.mxu0 %v5666_v42  ;;  %1643 = vmatpush1.bf16.msra.mxu1 %v5667_v43  ;;  %v5746_v42 = vld [vmem:[%s6427_s23 + $0x398] ss:$20 sps:$4 sm:$0xff]   ;;  %v5749_v43 = vld [vmem:[%s6427_s23 + $0x3a0] ss:$20 sps:$4 sm:$0xff]  }
  0x3d   : > { %1562 = vmatprep.subr.bf16.mxu0 %v5668_v44  ;;  %1644 = vmatprep.subr.bf16.mxu1 %v5670_v45  ;;  %v5754_v44 = vld [vmem:[%s6427_s23 + $0x3c4] ss:$20 sps:$4 sm:$0xff]   ;;  %v5757_v45 = vld [vmem:[%s6427_s23 + $0x3cc] ss:$20 sps:$4 sm:$0xff]  }
  0x40   : > { %1563 = vmatpush1.bf16.msra.mxu0 %v5672_v48  ;;  %1645 = vmatpush1.bf16.msra.mxu1 %v5673_v49  ;;  %v5755_v48 = vld [vmem:[%s6427_s23 + $0x3c8] ss:$20 sps:$4 sm:$0xff]   ;;  %v5760_v49 = vld [vmem:[%s6427_s23 + $0x3ec] ss:$20 sps:$4 sm:$0xff]  }
  0x41   : > { %1564 = vmatprep.subr.bf16.mxu0 %v5674_v50  ;;  %1646 = vmatprep.subr.bf16.mxu1 %v5676_v51  ;;  %v5763_v50 = vld [vmem:[%s6427_s23 + $0x3f4] ss:$20 sps:$4 sm:$0xff]  }
  0x42   : > { %v5758_v51 = vld [vmem:[%s6427_s23 + $0x3e8] ss:$20 sps:$4 sm:$0xff]  }
  0x44   : > { %1565 = vmatpush1.bf16.msra.mxu0 %v5678_v54  ;;  %1647 = vmatpush1.bf16.msra.mxu1 %v5679_v55  ;;  %v5769_v54 = vld [vmem:[%s6427_s23 + $0x41c] ss:$20 sps:$4 sm:$0xff]  }
  0x45   : > { %1566 = vmatprep.subr.bf16.mxu0 %v5680_v57  ;;  %1648 = vmatprep.subr.bf16.mxu1 %v5682_v58  ;;  %v5764_v55 = vld [vmem:[%s6427_s23 + $0x410] ss:$20 sps:$4 sm:$0xff]  }
  0x46   : > { %v5772_v57 = vld [vmem:[%s6427_s23 + $0x43c] ss:$20 sps:$4 sm:$0xff]   ;;  %v5775_v58 = vld [vmem:[%s6427_s23 + $0x444] ss:$20 sps:$4 sm:$0xff]  }
  0x48   : > { %1567 = vmatpush1.bf16.msra.mxu0 %v5684_v60  ;;  %1649 = vmatpush1.bf16.msra.mxu1 %v5685_v61  ;;  %v5770_v60 = vld [vmem:[%s6427_s23 + $0x438] ss:$20 sps:$4 sm:$0xff]   ;;  %v5773_v61 = vld [vmem:[%s6427_s23 + $0x440] ss:$20 sps:$4 sm:$0xff]  }
  0x49   : > { %1568 = vmatprep.subr.bf16.mxu0 %v5686_v62  ;;  %1650 = vmatprep.subr.bf16.mxu1 %v5688_v63  ;;  %v5778_v62 = vld [vmem:[%s6427_s23 + $0x464] ss:$20 sps:$4 sm:$0xff]   ;;  %v5781_v63 = vld [vmem:[%s6427_s23 + $0x46c] ss:$20 sps:$4 sm:$0xff]  }
  0x4c   : > { %1569 = vmatpush1.bf16.msra.mxu0 %v5690_v0  ;;  %1651 = vmatpush1.bf16.msra.mxu1 %v5691_v1  ;;  %v5776_v0 = vld [vmem:[%s6427_s23 + $0x460] ss:$20 sps:$4 sm:$0xff]   ;;  %v5779_v1 = vld [vmem:[%s6427_s23 + $0x468] ss:$20 sps:$4 sm:$0xff]  }
  0x4d   : > { %1570 = vmatprep.subr.bf16.mxu0 %v5692_v2  ;;  %1652 = vmatprep.subr.bf16.mxu1 %v5694_v3  ;;  %v5784_v2 = vld [vmem:[%s6427_s23 + $0x48c] ss:$20 sps:$4 sm:$0xff]   ;;  %v5787_v3 = vld [vmem:[%s6427_s23 + $0x494] ss:$20 sps:$4 sm:$0xff]  }
  0x50   : > { %1571 = vmatpush1.bf16.msra.mxu0 %v5696_v4  ;;  %1653 = vmatpush1.bf16.msra.mxu1 %v5697_v5  ;;  %v5782_v4 = vld [vmem:[%s6427_s23 + $0x488] ss:$20 sps:$4 sm:$0xff]   ;;  %v5785_v5 = vld [vmem:[%s6427_s23 + $0x490] ss:$20 sps:$4 sm:$0xff]  }
  0x51   : > { %1572 = vmatprep.subr.bf16.mxu0 %v5698_v6  ;;  %1654 = vmatprep.subr.bf16.mxu1 %v5700_v7  ;;  %v5790_v6 = vld [vmem:[%s6427_s23 + $0x4b4] ss:$20 sps:$4 sm:$0xff]   ;;  %v5793_v7 = vld [vmem:[%s6427_s23 + $0x4bc] ss:$20 sps:$4 sm:$0xff]  }
  0x54   : > { %1573 = vmatpush1.bf16.msra.mxu0 %v5702_v8  ;;  %1655 = vmatpush1.bf16.msra.mxu1 %v5703_v9  ;;  %v5788_v8 = vld [vmem:[%s6427_s23 + $0x4b0] ss:$20 sps:$4 sm:$0xff]   ;;  %v5791_v9 = vld [vmem:[%s6427_s23 + $0x4b8] ss:$20 sps:$4 sm:$0xff]  }
  0x55   : > { %1583 = vmatprep.subr.bf16.mxu0 %v5706_v10  ;;  %1665 = vmatprep.subr.bf16.mxu1 %v5709_v11  ;;  %v5796_v10 = vld [vmem:[%s6427_s23 + $0x4dc] ss:$20 sps:$4 sm:$0xff]   ;;  %v5799_v11 = vld [vmem:[%s6427_s23 + $0x4e4] ss:$20 sps:$4 sm:$0xff]  }
  0x57   : > { %1575 = vmatmul.mubr.bf16.vlgmr.msra.gmra.mrb[0].mxu0 %v6509_v13  ;;  %1657 = vmatmul.mubr.bf16.vlgmr.msra.gmra.mrb[0].mxu1 %v6509_v13 }
  0x58   : > { %1584 = vmatpush1.bf16.msra.mxu0 %v5704_v12  ;;  %1666 = vmatpush1.bf16.msra.mxu1 %v5707_v14  ;;  %v5794_v12 = vld [vmem:[%s6427_s23 + $0x4d8] ss:$20 sps:$4 sm:$0xff]   ;;  %v5797_v14 = vld [vmem:[%s6427_s23 + $0x4e0] ss:$20 sps:$4 sm:$0xff]  }
  0x59   : > { %1585 = vmatprep.subr.bf16.mxu0 %v5712_v15  ;;  %1667 = vmatprep.subr.bf16.mxu1 %v5715_v16  ;;  %v5800_v15 = vld [vmem:[%s6427_s23 + $0x150] ss:$20 sps:$4 sm:$0xff]  }
  0x5a   : > { %1615 = vmatprep.mubr.bf16.mxu0 %v6516_v17  ;;  %1697 = vmatprep.mubr.bf16.mxu1 %v6516_v17  ;;  %v5801_v16 = vld [vmem:[%s6427_s23 + $0x3d0] ss:$20 sps:$4 sm:$0xff]  }
  0x5c   : > { %1586 = vmatpush1.bf16.msra.mxu0 %v5710_v18  ;;  %1668 = vmatpush1.bf16.msra.mxu1 %v5713_v19  ;;  %v6584_v18 = vcombine.high %v6509_v13, %v6509_v13  ;;  %v5802_v19 = vld [vmem:[%s6427_s23 + $0x10] ss:$20 sps:$4 sm:$0xff]  }
  0x5d   : > { %1587 = vmatprep.subr.bf16.mxu0 %v5718_v20  ;;  %1669 = vmatprep.subr.bf16.mxu1 %v5721_v21  ;;  %v5803_v20 = vld [vmem:[%s6427_s23 + $0x290] ss:$20 sps:$4 sm:$0xff]   ;;  %v5804_v21 = vld [vmem:[%s6427_s23 + $0x178] ss:$20 sps:$4 sm:$0xff]  }
  0x60   : > { %1588 = vmatpush1.bf16.msra.mxu0 %v5716_v22  ;;  %1670 = vmatpush1.bf16.msra.mxu1 %v5719_v23  ;;  %v5805_v22 = vld [vmem:[%s6427_s23 + $0x3f8] ss:$20 sps:$4 sm:$0xff]  }
  0x61   : > { %1589 = vmatprep.subr.bf16.mxu0 %v5724_v24  ;;  %1671 = vmatprep.subr.bf16.mxu1 %v5727_v25  ;;  %v5806_v23 = vld [vmem:[%s6427_s23 + $0x38] ss:$20 sps:$4 sm:$0xff]   ;;  %v5808_v25 = vld [vmem:[%s6427_s23 + $0x1a0] ss:$20 sps:$4 sm:$0xff]  }
  0x62   : > { %v5807_v24 = vld [vmem:[%s6427_s23 + $0x2b8] ss:$20 sps:$4 sm:$0xff]  }
  0x64   : > { %1590 = vmatpush1.bf16.msra.mxu0 %v5722_v26  ;;  %1672 = vmatpush1.bf16.msra.mxu1 %v5725_v27  ;;  %v5809_v26 = vld [vmem:[%s6427_s23 + $0x420] ss:$20 sps:$4 sm:$0xff]  }
  0x65   : > { %1591 = vmatprep.subr.bf16.mxu0 %v5730_v28  ;;  %1673 = vmatprep.subr.bf16.mxu1 %v5733_v29  ;;  %v5810_v27 = vld [vmem:[%s6427_s23 + $0x60] ss:$20 sps:$4 sm:$0xff]   ;;  %v5812_v29 = vld [vmem:[%s6427_s23 + $0x1c8] ss:$20 sps:$4 sm:$0xff]  }
  0x66   : > { %v5811_v28 = vld [vmem:[%s6427_s23 + $0x2e0] ss:$20 sps:$4 sm:$0xff]  }
  0x68   : > { %1592 = vmatpush1.bf16.msra.mxu0 %v5728_v30  ;;  %1674 = vmatpush1.bf16.msra.mxu1 %v5731_v31  ;;  %v5813_v30 = vld [vmem:[%s6427_s23 + $0x448] ss:$20 sps:$4 sm:$0xff]  }
  0x69   : > { %1593 = vmatprep.subr.bf16.mxu0 %v5736_v32  ;;  %1675 = vmatprep.subr.bf16.mxu1 %v5739_v33  ;;  %v5814_v31 = vld [vmem:[%s6427_s23 + $0x88] ss:$20 sps:$4 sm:$0xff]   ;;  %v5817_v32 = vld [vmem:[%s6427_s23 + $0x470] ss:$20 sps:$4 sm:$0xff]  }
  0x6a   : > { %v5818_v33 = vld [vmem:[%s6427_s23 + $0xb0] ss:$20 sps:$4 sm:$0xff]  }
  0x6c   : > { %1594 = vmatpush1.bf16.msra.mxu0 %v5734_v34  ;;  %1676 = vmatpush1.bf16.msra.mxu1 %v5737_v35  ;;  %v5819_v34 = vld [vmem:[%s6427_s23 + $0x330] ss:$20 sps:$4 sm:$0xff]   ;;  %v5820_v35 = vld [vmem:[%s6427_s23 + $0x218] ss:$20 sps:$4 sm:$0xff]  }
  0x6d   : > { %1595 = vmatprep.subr.bf16.mxu0 %v5742_v36  ;;  %1677 = vmatprep.subr.bf16.mxu1 %v5745_v37  ;;  %v5821_v36 = vld [vmem:[%s6427_s23 + $0x498] ss:$20 sps:$4 sm:$0xff]  }
  0x6e   : > { %v5822_v37 = vld [vmem:[%s6427_s23 + $0xd8] ss:$20 sps:$4 sm:$0xff]  }
  0x70   : > { %1596 = vmatpush1.bf16.msra.mxu0 %v5740_v38  ;;  %1678 = vmatpush1.bf16.msra.mxu1 %v5743_v39  ;;  %v5823_v38 = vld [vmem:[%s6427_s23 + $0x358] ss:$20 sps:$4 sm:$0xff]   ;;  %v5824_v39 = vld [vmem:[%s6427_s23 + $0x240] ss:$20 sps:$4 sm:$0xff]  }
  0x71   : > { %1597 = vmatprep.subr.bf16.mxu0 %v5748_v40  ;;  %1679 = vmatprep.subr.bf16.mxu1 %v5751_v41  ;;  %v5825_v40 = vld [vmem:[%s6427_s23 + $0x4c0] ss:$20 sps:$4 sm:$0xff]  }
  0x72   : > { %v5826_v41 = vld [vmem:[%s6427_s23 + $0x100] ss:$20 sps:$4 sm:$0xff]  }
  0x74   : > { %1598 = vmatpush1.bf16.msra.mxu0 %v5746_v42  ;;  %1680 = vmatpush1.bf16.msra.mxu1 %v5749_v43  ;;  %v5827_v42 = vld [vmem:[%s6427_s23 + $0x380] ss:$20 sps:$4 sm:$0xff]   ;;  %v5828_v43 = vld [vmem:[%s6427_s23 + $0x268] ss:$20 sps:$4 sm:$0xff]  }
  0x75   : > { %1599 = vmatprep.subr.bf16.mxu0 %v5754_v44  ;;  %1681 = vmatprep.subr.bf16.mxu1 %v5757_v45  ;;  %v5829_v44 = vld [vmem:[%s6427_s23 + $0x4e8] ss:$20 sps:$4 sm:$0xff]  }
  0x76   : > { %v5830_v45 = vld [vmem:[%s6427_s23 + $0x128] ss:$20 sps:$4 sm:$0xff]  }
  0x78   : > { %1600 = vmatpush1.bf16.msra.mxu0 %v5752_v46  ;;  %1682 = vmatpush1.bf16.msra.mxu1 %v5755_v48  ;;  %v5831_v46 = vld [vmem:[%s6427_s23 + $0x3a8] ss:$20 sps:$4 sm:$0xff]   ;;  %v6326_v48 = vmov 1983009808  }
  0x79   : > { %1601 = vmatprep.subr.bf16.mxu0 %v5760_v49  ;;  %1683 = vmatprep.subr.bf16.mxu1 %v5763_v50  ;;  %v1794_v49 = vunpack.c.l.s4 %v6326_v48  ;;  %v5865_v48 = vld [vmem:[%s7896_s7 + $0xa8] ss:$16 sps:$4 sm:$0xff] (!%p5025_p6)  }
  0x7b   : > { %v1795_v50 = vunpack.c.0.s8 %v1794_v49  ;;  %v5870_v49 = vld [vmem:[%s7896_s7 + $0xc4] ss:$16 sps:$4 sm:$0xff] (!%p5025_p6)  }
  0x7c   : > { %1602 = vmatpush1.bf16.msra.mxu0 %v5758_v51  ;;  %1684 = vmatpush1.bf16.msra.mxu1 %v5761_v52 }
  0x7d   : > { %1603 = vmatprep.subr.bf16.mxu0 %v5766_v53  ;;  %1685 = vmatprep.subr.bf16.mxu1 %v5769_v54  ;;  %v6623_v53 = vsub.s32 %v1795_v50, %v6472_v47  ;;  %v5873_v50 = vld [vmem:[%s7896_s7 + $0xcc] ss:$16 sps:$4 sm:$0xff] (!%p5025_p6)  }
  0x80   : > { %1604 = vmatpush1.bf16.msra.mxu0 %v5764_v55  ;;  %1686 = vmatpush1.bf16.msra.mxu1 %v5767_v56 }
  0x81   : > { %1605 = vmatprep.subr.bf16.mxu0 %v5772_v57  ;;  %1687 = vmatprep.subr.bf16.mxu1 %v5775_v58 }
  0x84   : > { %1606 = vmatpush1.bf16.msra.mxu0 %v5770_v60  ;;  %1688 = vmatpush1.bf16.msra.mxu1 %v5773_v61 }
  0x85   : > { %1607 = vmatprep.subr.bf16.mxu0 %v5778_v62  ;;  %1689 = vmatprep.subr.bf16.mxu1 %v5781_v63 }
  0x88   : > { %1608 = vmatpush1.bf16.msra.mxu0 %v5776_v0  ;;  %1690 = vmatpush1.bf16.msra.mxu1 %v5779_v1  ;;  %v486_v0 = vld [vmem:[#allocation2] sm:$0xff] }
  0x89   : > { %1609 = vmatprep.subr.bf16.mxu0 %v5784_v2  ;;  %1691 = vmatprep.subr.bf16.mxu1 %v5787_v3 }
  0x8c   : > { %1610 = vmatpush1.bf16.msra.mxu0 %v5782_v4  ;;  %1692 = vmatpush1.bf16.msra.mxu1 %v5785_v5 }
  0x8d   : > { %1611 = vmatprep.subr.bf16.mxu0 %v5790_v6  ;;  %1693 = vmatprep.subr.bf16.mxu1 %v5793_v7 }
  0x90   : > { %1612 = vmatpush1.bf16.msra.mxu0 %v5788_v8  ;;  %1694 = vmatpush1.bf16.msra.mxu1 %v5791_v9 }
  0x91   : > { %1613 = vmatprep.subr.bf16.mxu0 %v5796_v10  ;;  %1695 = vmatprep.subr.bf16.mxu1 %v5799_v11 }
  0x94   : > { %1614 = vmatpush1.bf16.msra.mxu0 %v5794_v12  ;;  %1696 = vmatpush1.bf16.msra.mxu1 %v5797_v14 }
  0x95   : > { %5353 = vmatprep.subr.bf16.mxu0 %v5800_v15  ;;  %5375 = vmatprep.subr.bf16.mxu1 %v5801_v16  ;;  %v487_v15 = vld [vmem:[#allocation2 + $0x8] sm:$0x3] }
  0x97   : > { %1616 = vmatmul.mubr.bf16.vlgmr.msra.gmra.mrb[0].mxu0 %v6584_v18  ;;  %1698 = vmatmul.mubr.bf16.vlgmr.msra.gmra.mrb[0].mxu1 %v6584_v18 }
  0x98   : > { %5354 = vmatpush3.bf16.msra.mxu0 %v5802_v19  ;;  %5376 = vmatpush3.bf16.msra.mxu1 %v5803_v20  ;;  %v1882_v19 = vld [vmem:[%s7893_s4 + $0x8] sm:$0x3f] (!%p5025_p6)  ;;  %v1881_v20 = vld [vmem:[%s7893_s4] sm:$0x3f] (!%p5025_p6) }
  0x99   : > { %5355 = vmatprep.subr.bf16.mxu0 %v5804_v21  ;;  %5377 = vmatprep.subr.bf16.mxu1 %v5805_v22  ;;  %v6327_v21 = vmov (!%p5025_p6), 0.0   ;;  %v1880_v22 = vld [vmem:[%s7890_s1] sm:$0x3] (!%p5025_p6) }
  0x9a   : > { %1738 = vmatprep.mubr.bf16.mxu0 %v6488_v59  ;;  %1778 = vmatprep.mubr.bf16.mxu1 %v6516_v17  ;;  %v5815_v59 = vld [vmem:[%s6427_s23 + $0x308] ss:$20 sps:$4 sm:$0xff]   ;;  %v5816_v17 = vld [vmem:[%s6427_s23 + $0x1f0] ss:$20 sps:$4 sm:$0xff]  }
  0x9c   : > { %5356 = vmatpush3.bf16.msra.mxu0 %v5806_v23  ;;  %5378 = vmatpush3.bf16.msra.mxu1 %v5807_v24  ;;  %v1884_v23 = vld [vmem:[%s7893_s4 + $0x18] sm:$0x3f] (!%p5025_p6)  ;;  %v1883_v24 = vld [vmem:[%s7893_s4 + $0x10] sm:$0x3f] (!%p5025_p6) }
  0x9d   : > { %5357 = vmatprep.subr.bf16.mxu0 %v5808_v25  ;;  %5379 = vmatprep.subr.bf16.mxu1 %v5809_v26  ;;  %v1885_v25 = vld [vmem:[%s7893_s4 + $0x20] sm:$0x3f] (!%p5025_p6) }
  0x9e   : > { %v5832_v26 = vld [vmem:[%s7896_s7] ss:$16 sps:$4 sm:$0xff] (!%p5025_p6)  }
  0xa0   : > { %5358 = vmatpush3.bf16.msra.mxu0 %v5810_v27  ;;  %5380 = vmatpush3.bf16.msra.mxu1 %v5811_v28  ;;  %v5834_v27 = vld [vmem:[%s7896_s7 + $0x4] ss:$16 sps:$4 sm:$0xff] (!%p5025_p6)   ;;  %v5835_v28 = vld [vmem:[%s7896_s7 + $0x8] ss:$16 sps:$4 sm:$0xff] (!%p5025_p6)  }
  0xa1   : > { %5359 = vmatprep.subr.bf16.mxu0 %v5812_v29  ;;  %5381 = vmatprep.subr.bf16.mxu1 %v5813_v30  ;;  %v5837_v29 = vld [vmem:[%s7896_s7 + $0xc] ss:$16 sps:$4 sm:$0xff] (!%p5025_p6)   ;;  %v5840_v30 = vld [vmem:[%s7896_s7 + $0x24] ss:$16 sps:$4 sm:$0xff] (!%p5025_p6)  }
  0xa4   : > { %5360 = vmatpush3.bf16.msra.mxu0 %v5814_v31  ;;  %5382 = vmatpush3.bf16.msra.mxu1 %v5815_v59  ;;  %v5838_v31 = vld [vmem:[%s7896_s7 + $0x20] ss:$16 sps:$4 sm:$0xff] (!%p5025_p6)   ;;  %v5843_v59 = vld [vmem:[%s7896_s7 + $0x2c] ss:$16 sps:$4 sm:$0xff] (!%p5025_p6)  }
  0xa5   : > { %5361 = vmatprep.subr.bf16.mxu0 %v5816_v17  ;;  %5383 = vmatprep.subr.bf16.mxu1 %v5817_v32  ;;  %v5841_v17 = vld [vmem:[%s7896_s7 + $0x28] ss:$16 sps:$4 sm:$0xff] (!%p5025_p6)   ;;  %v5846_v32 = vld [vmem:[%s7896_s7 + $0x44] ss:$16 sps:$4 sm:$0xff] (!%p5025_p6)  }
  0xa8   : > { %5362 = vmatpush3.bf16.msra.mxu0 %v5818_v33  ;;  %5384 = vmatpush3.bf16.msra.mxu1 %v5819_v34  ;;  %v5849_v33 = vld [vmem:[%s7896_s7 + $0x4c] ss:$16 sps:$4 sm:$0xff] (!%p5025_p6)   ;;  %v5844_v34 = vld [vmem:[%s7896_s7 + $0x40] ss:$16 sps:$4 sm:$0xff] (!%p5025_p6)  }
  0xa9   : > { %5363 = vmatprep.subr.bf16.mxu0 %v5820_v35  ;;  %5385 = vmatprep.subr.bf16.mxu1 %v5821_v36  ;;  %v5847_v35 = vld [vmem:[%s7896_s7 + $0x48] ss:$16 sps:$4 sm:$0xff] (!%p5025_p6)   ;;  %v5852_v36 = vld [vmem:[%s7896_s7 + $0x64] ss:$16 sps:$4 sm:$0xff] (!%p5025_p6)  }
  0xac   : > { %5364 = vmatpush3.bf16.msra.mxu0 %v5822_v37  ;;  %5386 = vmatpush3.bf16.msra.mxu1 %v5823_v38  ;;  %v5855_v37 = vld [vmem:[%s7896_s7 + $0x6c] ss:$16 sps:$4 sm:$0xff] (!%p5025_p6)   ;;  %v5850_v38 = vld [vmem:[%s7896_s7 + $0x60] ss:$16 sps:$4 sm:$0xff] (!%p5025_p6)  }
  0xad   : > { %5365 = vmatprep.subr.bf16.mxu0 %v5824_v39  ;;  %5387 = vmatprep.subr.bf16.mxu1 %v5825_v40  ;;  %v5853_v39 = vld [vmem:[%s7896_s7 + $0x68] ss:$16 sps:$4 sm:$0xff] (!%p5025_p6)   ;;  %v5858_v40 = vld [vmem:[%s7896_s7 + $0x84] ss:$16 sps:$4 sm:$0xff] (!%p5025_p6)  }
  0xb0   : > { %5366 = vmatpush3.bf16.msra.mxu0 %v5826_v41  ;;  %5388 = vmatpush3.bf16.msra.mxu1 %v5827_v42  ;;  %v5861_v41 = vld [vmem:[%s7896_s7 + $0x8c] ss:$16 sps:$4 sm:$0xff] (!%p5025_p6)   ;;  %v5856_v42 = vld [vmem:[%s7896_s7 + $0x80] ss:$16 sps:$4 sm:$0xff] (!%p5025_p6)  }
  0xb1   : > { %5367 = vmatprep.subr.bf16.mxu0 %v5828_v43  ;;  %5389 = vmatprep.subr.bf16.mxu1 %v5829_v44  ;;  %v5859_v43 = vld [vmem:[%s7896_s7 + $0x88] ss:$16 sps:$4 sm:$0xff] (!%p5025_p6)   ;;  %v5864_v44 = vld [vmem:[%s7896_s7 + $0xa4] ss:$16 sps:$4 sm:$0xff] (!%p5025_p6)  }
  0xb4   : > { %5368 = vmatpush3.bf16.msra.mxu0 %v5830_v45  ;;  %5390 = vmatpush3.bf16.msra.mxu1 %v5831_v46  ;;  %v5867_v45 = vld [vmem:[%s7896_s7 + $0xac] ss:$16 sps:$4 sm:$0xff] (!%p5025_p6)   ;;  %v5862_v46 = vld [vmem:[%s7896_s7 + $0xa0] ss:$16 sps:$4 sm:$0xff] (!%p5025_p6)  }
  0xb5   : > { %5026 = vmatprep.subr.msk.mxu0 (!%p5025_p6), %vm1917_vm2, %v1882_v19  ;;  %5029 = vmatprep.subr.msk.mxu1 (!%p5025_p6), %vm1917_vm2, %v1884_v23  ;;  %v5913_v19 = vld [vmem:[%s7896_s7 + $0x1a8] ss:$16 sps:$4 sm:$0xff] (!%p5025_p6)  }
  0xb6   : > { %v5919_v23 = vld [vmem:[%s7896_s7 + $0x1c8] ss:$16 sps:$4 sm:$0xff] (!%p5025_p6)  }
  0xb7   : > { %1739 = vmatmul.mubr.bf16.vlgmr.msra.gmra.mrb[4].mxu0 %v6509_v13  ;;  %1779 = vmatmul.mubr.bf16.vlgmr.msra.gmra.mrb[4].mxu1 %v6584_v18 }
  0xb8   : > { %1997 = vmatprep.mubr.f32.mxu0 (!%p5025_p6), %v6327_v21  ;;  %5027 = vmatpush1.msk.msra.mxu0 (!%p5025_p6), %vm1917_vm2, %v1881_v20  ;;  %v5918_v20 = vld [vmem:[%s7896_s7 + $0x1c4] ss:$16 sps:$4 sm:$0xff] (!%p5025_p6)  }
  0xb9   : > { %5030 = vmatpush1.msk.msra.mxu1 (!%p5025_p6), %vm1917_vm2, %v1883_v24  ;;  %2068 = vmatprep.mubr.f32.mxu1 (!%p5025_p6), %v6327_v21  ;;  %v5924_v24 = vld [vmem:[%s7896_s7 + $0x1e4] ss:$16 sps:$4 sm:$0xff] (!%p5025_p6)  }
  0xba   : > { %5469 = vmatprep.subr.mxu0 (!%p5025_p6), %v6327_v21  ;;  %3258 = vmatprep.subr.bf16.mxu1 (!%p5025_p6), %v5834_v27  ;;  %v5925_v27 = vld [vmem:[%s7896_s7 + $0x1e8] ss:$16 sps:$4 sm:$0xff] (!%p5025_p6)  }
 0x16a   : > { %v1617_v51 = vpop.f32.mrb[0].mxu0  ;;  %v1699_v52 = vpop.f32.mrb[0].mxu1 }
 0x16b   : > { %v1619_v54 = vpop.f32.mrb[1].mxu0  ;;  %v1701_v55 = vpop.f32.mrb[1].mxu1  ;;  %5028 = vmatmul.mubr.msk.f32.vlgmr.msra.gmra.mrb[0].mxu0 (!%p5025_p6), %vm1913_vm3, %v1880_v22  ;;  %5031 = vmatmul.mubr.msk.f32.vlgmr.msra.gmra.mrb[0].mxu1 (!%p5025_p6), %vm1913_vm3, %v1880_v22 }
 0x16c   : > { %v1791_v56 = vcombine.low %v1617_v51, %v1619_v54  ;;  %v1792_v57 = vcombine.low %v1699_v52, %v1701_v55  ;;  %v1621_v58 = vpop.f32.mrb[2].mxu0  ;;  %v1703_v60 = vpop.f32.mrb[2].mxu1  ;;  %5470 = vmatpush3.msk.msra.mxu0 (!%p5025_p6), %vm1917_vm2, %v1885_v25  ;;  %5471 = vmatprep.mubr.msk.f32.mxu0 (!%p5025_p6), %vm6328_vm4, %v6327_v21  ;;  %v5868_v51 = vld [vmem:[%s7896_s7 + $0xc0] ss:$16 sps:$4 sm:$0xff] (!%p5025_p6)   ;;  %v5871_v52 = vld [vmem:[%s7896_s7 + $0xc8] ss:$16 sps:$4 sm:$0xff] (!%p5025_p6)  }
 0x16d   : > { %v1622_v61 = vpop.f32.mrb[3].mxu0  ;;  %v1704_v62 = vpop.f32.mrb[3].mxu1  ;;  %3381 = vmatprep.subr.bf16.mxu0 (!%p5025_p6), %v5837_v29  ;;  %3259 = vmatpush1.bf16.msra.mxu1 (!%p5025_p6), %v5832_v26  ;;  %v5876_v54 = vld [vmem:[%s7896_s7 + $0xe4] ss:$16 sps:$4 sm:$0xff] (!%p5025_p6)   ;;  %v5879_v55 = vld [vmem:[%s7896_s7 + $0xec] ss:$16 sps:$4 sm:$0xff] (!%p5025_p6)  }
 0x16e   : > { %v1799_v13 = vrot.slane %v1791_v56, %v6623_v53  ;;  %v1806_v63 = vrot.slane %v1792_v57, %v6623_v53  ;;  %3260 = vmatprep.subr.bf16.mxu1 (!%p5025_p6), %v5840_v30  ;;  %v5874_v56 = vld [vmem:[%s7896_s7 + $0xe0] ss:$16 sps:$4 sm:$0xff] (!%p5025_p6)   ;;  %v5877_v57 = vld [vmem:[%s7896_s7 + $0xe8] ss:$16 sps:$4 sm:$0xff] (!%p5025_p6)   ;;  %v5882_v58 = vld [vmem:[%s7896_s7 + $0x104] ss:$16 sps:$4 sm:$0xff] (!%p5025_p6)  }
 0x16f   : > { %5472 = vmatmul.mubr.msk.f32.vlgmr.msra.gmra.mrb[2].mxu0 (!%p5025_p6), %vm1913_vm3, %v1880_v22  ;;  %v5885_v60 = vld [vmem:[%s7896_s7 + $0x10c] ss:$16 sps:$4 sm:$0xff] (!%p5025_p6)   ;;  %v5880_v61 = vld [vmem:[%s7896_s7 + $0x100] ss:$16 sps:$4 sm:$0xff] (!%p5025_p6)   ;;  %v5883_v62 = vld [vmem:[%s7896_s7 + $0x108] ss:$16 sps:$4 sm:$0xff] (!%p5025_p6)  }
 0x170   : > { %v1807_v1 = vcombine.low %v1799_v13, %v1806_v63  ;;  %3382 = vmatpush1.bf16.msra.mxu0 (!%p5025_p6), %v5835_v28  ;;  %v5888_v13 = vld [vmem:[%s7896_s7 + $0x124] ss:$16 sps:$4 sm:$0xff] (!%p5025_p6)   ;;  %v5891_v63 = vld [vmem:[%s7896_s7 + $0x12c] ss:$16 sps:$4 sm:$0xff] (!%p5025_p6)   ;;  %v5916_v22 = vld [vmem:[%s7896_s7 + $0x1c0] ss:$16 sps:$4 sm:$0xff] (!%p5025_p6)  }
 0x171   : > { %3383 = vmatprep.subr.bf16.mxu0 (!%p5025_p6), %v5843_v59  ;;  %3261 = vmatpush1.bf16.msra.mxu1 (!%p5025_p6), %v5838_v31  ;;  %v5921_v21 = vld [vmem:[%s7896_s7 + $0x1cc] ss:$16 sps:$4 sm:$0xff] (!%p5025_p6)   ;;  %v5922_v26 = vld [vmem:[%s7896_s7 + $0x1e0] ss:$16 sps:$4 sm:$0xff] (!%p5025_p6)   ;;  %v5930_v28 = vld [vmem:[%s7896_s7 + $0x204] ss:$16 sps:$4 sm:$0xff] (!%p5025_p6)  }
 0x172   : > { %v1817_v2 = vadd.f32 %v1807_v1, %v486_v0  ;;  %3262 = vmatprep.subr.bf16.mxu1 (!%p5025_p6), %v5846_v32  ;;  %v5886_v0 = vld [vmem:[%s7896_s7 + $0x120] ss:$16 sps:$4 sm:$0xff] (!%p5025_p6)   ;;  %v5889_v1 = vld [vmem:[%s7896_s7 + $0x128] ss:$16 sps:$4 sm:$0xff] (!%p5025_p6)   ;;  %v5927_v25 = vld [vmem:[%s7896_s7 + $0x1ec] ss:$16 sps:$4 sm:$0xff] (!%p5025_p6)  }
 0x173   : > { %v5933_v29 = vld [vmem:[%s7896_s7 + $0x20c] ss:$16 sps:$4 sm:$0xff] (!%p5025_p6)   ;;  %v1848_v30 = vsub.s32 (!%p5025_p6), 4, %v6472_v47  ;;  %v6857_v31 = vld [vmem:[%s7892_s3] sm:$0x1f] (!%p5025_p6) }
 0x174   : > { %1819 = vst [vmem:[#allocation2] sm:$0xff] %v1817_v2  ;;  %3384 = vmatpush1.bf16.msra.mxu0 (!%p5025_p6), %v5841_v17  ;;  %v5894_v2 = vld [vmem:[%s7896_s7 + $0x144] ss:$16 sps:$4 sm:$0xff] (!%p5025_p6)   ;;  %v6865_v17 = vsub.s32 (!%p5025_p6), 0, %v6472_v47 }
 0x175   : > { %3385 = vmatprep.subr.bf16.mxu0 (!%p5025_p6), %v5849_v33  ;;  %3263 = vmatpush1.bf16.msra.mxu1 (!%p5025_p6), %v5844_v34  ;;  %v6862_v59 = vrot.slane (!%p5025_p6), %v6857_v31, %v1848_v30  ;;  %v6870_v32 = vld [vmem:[%s7894_s5] sm:$0x1f] (!%p5025_p6)  ;;  %v6873_v33 = vsub.s32 (!%p5025_p6), 1, %v6472_v47  ;;  %v6876_v34 = vsub.s32 (!%p5025_p6), 3, %v6472_v47 }
 0x176   : > { %3264 = vmatprep.subr.bf16.mxu1 (!%p5025_p6), %v5852_v36 }
 0x177   : > { %v1895_v36 = vrot.slane (!%p5025_p6), %v6870_v32, %v6873_v33 }
 0x178   : > { %3386 = vmatpush1.bf16.msra.mxu0 (!%p5025_p6), %v5847_v35  ;;  %v1891_v35 = vrot.slane (!%p5025_p6), %v6870_v32, %v6865_v17 }
 0x179   : > { %3387 = vmatprep.subr.bf16.mxu0 (!%p5025_p6), %v5855_v37  ;;  %3265 = vmatpush1.bf16.msra.mxu1 (!%p5025_p6), %v5850_v38  ;;  %v1903_v38 = vrot.slane (!%p5025_p6), %v6870_v32, %v6876_v34 }
 0x17a   : > { %3266 = vmatprep.subr.bf16.mxu1 (!%p5025_p6), %v5858_v40 }
 0x17c   : > { %3388 = vmatpush1.bf16.msra.mxu0 (!%p5025_p6), %v5853_v39 }
 0x17d   : > { %3389 = vmatprep.subr.bf16.mxu0 (!%p5025_p6), %v5861_v41  ;;  %3267 = vmatpush1.bf16.msra.mxu1 (!%p5025_p6), %v5856_v42 }
 0x17e   : > { %3268 = vmatprep.subr.bf16.mxu1 (!%p5025_p6), %v5864_v44 }
 0x180   : > { %3390 = vmatpush1.bf16.msra.mxu0 (!%p5025_p6), %v5859_v43 }
 0x181   : > { %3391 = vmatprep.subr.bf16.mxu0 (!%p5025_p6), %v5867_v45  ;;  %3269 = vmatpush1.bf16.msra.mxu1 (!%p5025_p6), %v5862_v46 }
 0x182   : > { %3270 = vmatprep.subr.bf16.mxu1 (!%p5025_p6), %v5870_v49 }
 0x184   : > { %3392 = vmatpush1.bf16.msra.mxu0 (!%p5025_p6), %v5865_v48 }
 0x185   : > { %3393 = vmatprep.subr.bf16.mxu0 (!%p5025_p6), %v5873_v50  ;;  %3271 = vmatpush1.bf16.msra.mxu1 (!%p5025_p6), %v5868_v51  ;;  %v5928_v51 = vld [vmem:[%s7896_s7 + $0x200] ss:$16 sps:$4 sm:$0xff] (!%p5025_p6)  }
 0x186   : > { %3272 = vmatprep.subr.bf16.mxu1 (!%p5025_p6), %v5876_v54 }
 0x188   : > { %3394 = vmatpush1.bf16.msra.mxu0 (!%p5025_p6), %v5871_v52  ;;  %v5931_v52 = vld [vmem:[%s7896_s7 + $0x208] ss:$16 sps:$4 sm:$0xff] (!%p5025_p6)  }
 0x189   : > { %3395 = vmatprep.subr.bf16.mxu0 (!%p5025_p6), %v5879_v55  ;;  %3273 = vmatpush1.bf16.msra.mxu1 (!%p5025_p6), %v5874_v56  ;;  %v5936_v56 = vld [vmem:[%s7896_s7 + $0x224] ss:$16 sps:$4 sm:$0xff] (!%p5025_p6)  }
 0x18a   : > { %v5369_v3 = vpop.f32.mrb[4].mxu0  ;;  %v5391_v4 = vpop.f32.mrb[4].mxu1  ;;  %3274 = vmatprep.subr.bf16.mxu1 (!%p5025_p6), %v5882_v58 }
 0x18b   : > { %v5370_v5 = vpop.f32.mrb[5].mxu0  ;;  %v5392_v6 = vpop.f32.mrb[5].mxu1 }
 0x18c   : > { %v5371_v7 = vadd.f32 %v5370_v5, %v5369_v3  ;;  %v5393_v8 = vadd.f32 %v5392_v6, %v5391_v4  ;;  %v5372_v9 = vpop.f32.mrb[6].mxu0  ;;  %v5394_v10 = vpop.f32.mrb[6].mxu1  ;;  %3396 = vmatpush1.bf16.msra.mxu0 (!%p5025_p6), %v5877_v57  ;;  %v5897_v3 = vld [vmem:[%s7896_s7 + $0x14c] ss:$16 sps:$4 sm:$0xff] (!%p5025_p6)   ;;  %v5892_v4 = vld [vmem:[%s7896_s7 + $0x140] ss:$16 sps:$4 sm:$0xff] (!%p5025_p6)  }
 0x18d   : > { %v5373_v11 = vpop.f32.mrb[7].mxu0  ;;  %v5395_v12 = vpop.f32.mrb[7].mxu1  ;;  %3397 = vmatprep.subr.bf16.mxu0 (!%p5025_p6), %v5885_v60  ;;  %3275 = vmatpush1.bf16.msra.mxu1 (!%p5025_p6), %v5880_v61  ;;  %v5895_v5 = vld [vmem:[%s7896_s7 + $0x148] ss:$16 sps:$4 sm:$0xff] (!%p5025_p6)   ;;  %v5900_v6 = vld [vmem:[%s7896_s7 + $0x164] ss:$16 sps:$4 sm:$0xff] (!%p5025_p6)  }
 0x18e   : > { %v1781_v14 = vadd.f32 %v5393_v8, %v5371_v7  ;;  %1825 = sbr.rel (%p5025_p6) target bundleno = 1278 (0x4fe), region = 84  ;;  %3276 = vmatprep.subr.bf16.mxu1 (!%p5025_p6), %v5888_v13  ;;  %v5903_v7 = vld [vmem:[%s7896_s7 + $0x16c] ss:$16 sps:$4 sm:$0xff] (!%p5025_p6)   ;;  %v5898_v8 = vld [vmem:[%s7896_s7 + $0x160] ss:$16 sps:$4 sm:$0xff] (!%p5025_p6)  }
 0x18f   : > { %v5901_v9 = vld [vmem:[%s7896_s7 + $0x168] ss:$16 sps:$4 sm:$0xff] (!%p5025_p6)   ;;  %v5906_v10 = vld [vmem:[%s7896_s7 + $0x184] ss:$16 sps:$4 sm:$0xff] (!%p5025_p6)   ;;  %v5909_v11 = vld [vmem:[%s7896_s7 + $0x18c] ss:$16 sps:$4 sm:$0xff] (!%p5025_p6)  }
 0x190   : > { %v1814_v16 = vrot.slane %v1781_v14, %v6623_v53  ;;  %3398 = vmatpush1.bf16.msra.mxu0 (!%p5025_p6), %v5883_v62  ;;  %v5904_v12 = vld [vmem:[%s7896_s7 + $0x180] ss:$16 sps:$4 sm:$0xff] (!%p5025_p6)   ;;  %v5907_v14 = vld [vmem:[%s7896_s7 + $0x188] ss:$16 sps:$4 sm:$0xff] (!%p5025_p6)   ;;  %v5939_v57 = vld [vmem:[%s7896_s7 + $0x22c] ss:$16 sps:$4 sm:$0xff] (!%p5025_p6)  }
 0x191   : > { %3399 = vmatprep.subr.bf16.mxu0 (!%p5025_p6), %v5891_v63  ;;  %3277 = vmatpush1.bf16.msra.mxu1 (!%p5025_p6), %v5886_v0  ;;  %v5934_v60 = vld [vmem:[%s7896_s7 + $0x220] ss:$16 sps:$4 sm:$0xff] (!%p5025_p6)   ;;  %v5937_v61 = vld [vmem:[%s7896_s7 + $0x228] ss:$16 sps:$4 sm:$0xff] (!%p5025_p6)   ;;  %v5942_v62 = vld [vmem:[%s7896_s7 + $0x244] ss:$16 sps:$4 sm:$0xff] (!%p5025_p6)  }
 0x192   : > { %v1818_v18 = vadd.f32 %v1814_v16, %v487_v15  ;;  %3278 = vmatprep.subr.bf16.mxu1 (!%p5025_p6), %v5894_v2  ;;  %v5912_v15 = vld [vmem:[%s7896_s7 + $0x1a4] ss:$16 sps:$4 sm:$0xff] (!%p5025_p6)   ;;  %v5915_v16 = vld [vmem:[%s7896_s7 + $0x1ac] ss:$16 sps:$4 sm:$0xff] (!%p5025_p6)   ;;  %v5940_v63 = vld [vmem:[%s7896_s7 + $0x240] ss:$16 sps:$4 sm:$0xff] (!%p5025_p6)  }
 0x193   : > { %v5945_v13 = vld [vmem:[%s7896_s7 + $0x24c] ss:$16 sps:$4 sm:$0xff] (!%p5025_p6)   ;;  %v5943_v0 = vld [vmem:[%s7896_s7 + $0x248] ss:$16 sps:$4 sm:$0xff] (!%p5025_p6)  }
 0x194   : > { %1821 = vst.msk [vmem:[#allocation2 + $0x8] sm:$0x3] %vm1820_vm1, %v1818_v18  ;;  %3400 = vmatpush1.bf16.msra.mxu0 (!%p5025_p6), %v5889_v1  ;;  %v5910_v18 = vld [vmem:[%s7896_s7 + $0x1a0] ss:$16 sps:$4 sm:$0xff] (!%p5025_p6)   ;;  %v5948_v1 = vld [vmem:[%s7896_s7 + $0x264] ss:$16 sps:$4 sm:$0xff] (!%p5025_p6)  }
 0x195   : > { %3401 = vmatprep.subr.bf16.mxu0 %v5897_v3  ;;  %3279 = vmatpush1.bf16.msra.mxu1 %v5892_v4  ;;  %v5951_v2 = vld [vmem:[%s7896_s7 + $0x26c] ss:$16 sps:$4 sm:$0xff]   ;;  %v5946_v3 = vld [vmem:[%s7896_s7 + $0x260] ss:$16 sps:$4 sm:$0xff]   ;;  %v5949_v4 = vld [vmem:[%s7896_s7 + $0x268] ss:$16 sps:$4 sm:$0xff]  }
 0x196   : > { %3280 = vmatprep.subr.bf16.mxu1 %v5900_v6  ;;  %v5957_v6 = vld [vmem:[%s7896_s7 + $0x28c] ss:$16 sps:$4 sm:$0xff]  }
 0x198   : > { %3402 = vmatpush1.bf16.msra.mxu0 %v5895_v5  ;;  %v5954_v5 = vld [vmem:[%s7896_s7 + $0x284] ss:$16 sps:$4 sm:$0xff]  }
 0x199   : > { %3403 = vmatprep.subr.bf16.mxu0 %v5903_v7  ;;  %3281 = vmatpush1.bf16.msra.mxu1 %v5898_v8  ;;  %v5952_v7 = vld [vmem:[%s7896_s7 + $0x280] ss:$16 sps:$4 sm:$0xff]   ;;  %v5955_v8 = vld [vmem:[%s7896_s7 + $0x288] ss:$16 sps:$4 sm:$0xff]  }
 0x19a   : > { %3282 = vmatprep.subr.bf16.mxu1 %v5906_v10  ;;  %v5963_v10 = vld [vmem:[%s7896_s7 + $0x2ac] ss:$16 sps:$4 sm:$0xff]  }
 0x19c   : > { %3404 = vmatpush1.bf16.msra.mxu0 %v5901_v9  ;;  %v5960_v9 = vld [vmem:[%s7896_s7 + $0x2a4] ss:$16 sps:$4 sm:$0xff]  }
 0x19d   : > { %3405 = vmatprep.subr.bf16.mxu0 %v5909_v11  ;;  %3283 = vmatpush1.bf16.msra.mxu1 %v5904_v12  ;;  %v5958_v11 = vld [vmem:[%s7896_s7 + $0x2a0] ss:$16 sps:$4 sm:$0xff]   ;;  %v5961_v12 = vld [vmem:[%s7896_s7 + $0x2a8] ss:$16 sps:$4 sm:$0xff]  }
 0x19e   : > { %3284 = vmatprep.subr.bf16.mxu1 %v5912_v15  ;;  %v5969_v15 = vld [vmem:[%s7896_s7 + $0x2cc] ss:$16 sps:$4 sm:$0xff]  }
 0x1a0   : > { %3406 = vmatpush1.bf16.msra.mxu0 %v5907_v14  ;;  %v5966_v14 = vld [vmem:[%s7896_s7 + $0x2c4] ss:$16 sps:$4 sm:$0xff]  }
 0x1a1   : > { %3407 = vmatprep.subr.bf16.mxu0 %v5915_v16  ;;  %3285 = vmatpush1.bf16.msra.mxu1 %v5910_v18  ;;  %v5964_v16 = vld [vmem:[%s7896_s7 + $0x2c0] ss:$16 sps:$4 sm:$0xff]   ;;  %v5967_v18 = vld [vmem:[%s7896_s7 + $0x2c8] ss:$16 sps:$4 sm:$0xff]  }
 0x1a2   : > { %3286 = vmatprep.subr.bf16.mxu1 %v5918_v20  ;;  %v5975_v20 = vld [vmem:[%s7896_s7 + $0x2ec] ss:$16 sps:$4 sm:$0xff]  }
 0x1a4   : > { %3408 = vmatpush1.bf16.msra.mxu0 %v5913_v19  ;;  %v5972_v19 = vld [vmem:[%s7896_s7 + $0x2e4] ss:$16 sps:$4 sm:$0xff]  }
 0x1a5   : > { %3409 = vmatprep.subr.bf16.mxu0 %v5921_v21  ;;  %3287 = vmatpush1.bf16.msra.mxu1 %v5916_v22  ;;  %v5970_v21 = vld [vmem:[%s7896_s7 + $0x2e0] ss:$16 sps:$4 sm:$0xff]   ;;  %v5973_v22 = vld [vmem:[%s7896_s7 + $0x2e8] ss:$16 sps:$4 sm:$0xff]  }
 0x1a6   : > { %3288 = vmatprep.subr.bf16.mxu1 %v5924_v24  ;;  %v5981_v24 = vld [vmem:[%s7896_s7 + $0x30c] ss:$16 sps:$4 sm:$0xff]  }
 0x1a8   : > { %3410 = vmatpush1.bf16.msra.mxu0 %v5919_v23  ;;  %v5978_v23 = vld [vmem:[%s7896_s7 + $0x304] ss:$16 sps:$4 sm:$0xff]  }
 0x1a9   : > { %3411 = vmatprep.subr.bf16.mxu0 %v5927_v25  ;;  %3289 = vmatpush1.bf16.msra.mxu1 %v5922_v26  ;;  %v5976_v25 = vld [vmem:[%s7896_s7 + $0x300] ss:$16 sps:$4 sm:$0xff]   ;;  %v5979_v26 = vld [vmem:[%s7896_s7 + $0x308] ss:$16 sps:$4 sm:$0xff]  }
 0x1aa   : > { %3299 = vmatprep.subr.bf16.mxu1 %v5930_v28  ;;  %v5987_v28 = vld [vmem:[%s7896_s7 + $0x32c] ss:$16 sps:$4 sm:$0xff]  }
 0x1ac   : > { %3412 = vmatpush1.bf16.msra.mxu0 %v5925_v27  ;;  %v5984_v27 = vld [vmem:[%s7896_s7 + $0x324] ss:$16 sps:$4 sm:$0xff]  }
 0x1ad   : > { %3422 = vmatprep.subr.bf16.mxu0 %v5933_v29  ;;  %v5982_v29 = vld [vmem:[%s7896_s7 + $0x320] ss:$16 sps:$4 sm:$0xff]  }
 0x23e   : > { %v1999_v37 = vpop.f32.mrb[0].mxu0  ;;  %v6884_v42 = vpop.f32.mrb[0].mxu1 }
 0x23f   : > { %v2000_v39 = vadd.f32 %v1999_v37, %v1891_v35  ;;  %v2001_v40 = vpop.f32.mrb[1].mxu0  ;;  %v2072_v44 = vpop.f32.mrb[1].mxu1  ;;  %v5985_v35 = vld [vmem:[%s7896_s7 + $0x328] ss:$16 sps:$4 sm:$0xff]   ;;  %v5993_v37 = vld [vmem:[%s7896_s7 + $0x34c] ss:$16 sps:$4 sm:$0xff]  }
 0x240   : > { %v2002_v41 = vadd.f32 %v2001_v40, %v1895_v36  ;;  %v2073_v46 = vadd.f32 %v2072_v44, %v1903_v38  ;;  %v5990_v36 = vld [vmem:[%s7896_s7 + $0x344] ss:$16 sps:$4 sm:$0xff]   ;;  %v5988_v38 = vld [vmem:[%s7896_s7 + $0x340] ss:$16 sps:$4 sm:$0xff]   ;;  %v5997_v44 = vld [vmem:[%s7896_s7 + $0x368] ss:$16 sps:$4 sm:$0xff]  }
 0x241   : > { %v2145_v43 = vmax.f32 %v2000_v39, 0.0  ;;  %v5991_v39 = vld [vmem:[%s7896_s7 + $0x348] ss:$16 sps:$4 sm:$0xff]   ;;  %v5996_v40 = vld [vmem:[%s7896_s7 + $0x364] ss:$16 sps:$4 sm:$0xff]  }
 0x242   : > { %v2146_v45 = vmax.f32 %v2002_v41, 0.0  ;;  %v6886_v48 = vpop.f32.mrb[2].mxu0  ;;  %v2148_v54 = vmax.f32 %v2073_v46, 0.0  ;;  %v5999_v41 = vld [vmem:[%s7896_s7 + $0x36c] ss:$16 sps:$4 sm:$0xff]  }
 0x243   : > { %v5473_v49 = vpop.f32.mrb[3].mxu0  ;;  %v2336_v55 = vpack.c.bf16 %v2145_v43, %v2145_v43  ;;  %v5994_v43 = vld [vmem:[%s7896_s7 + $0x360] ss:$16 sps:$4 sm:$0xff]   ;;  %v6005_v46 = vld [vmem:[%s7896_s7 + $0x38c] ss:$16 sps:$4 sm:$0xff]  }
 0x244   : > { %v2337_v50 = vpack.c.bf16 %v2146_v45, %v2146_v45  ;;  %v2339_v58 = vpack.c.bf16 %v2148_v54, %v2148_v54  ;;  %v6002_v45 = vld [vmem:[%s7896_s7 + $0x384] ss:$16 sps:$4 sm:$0xff]   ;;  %v7033_v49 = vsub.s32 2, %v6472_v47  ;;  %v6011_v54 = vld [vmem:[%s7896_s7 + $0x3ac] ss:$16 sps:$4 sm:$0xff]  }
 0x245   : > { %v6053_v47 = vld [vmem:[%s7896_s7 + $0x48c] ss:$16 sps:$4 sm:$0xff]  }
 0x246   : > { %3290 = vmatprep.mubr.bf16.mxu1 %v2337_v50  ;;  %3413 = vmatprep.mubr.bf16.mxu0 %v2337_v50  ;;  %v6000_v50 = vld [vmem:[%s7896_s7 + $0x380] ss:$16 sps:$4 sm:$0xff]  }
 0x247   : > { %3291 = vmatmul.mubr.bf16.vlgmr.msra.gmra.mrb[4].mxu1 %v2336_v55  ;;  %3414 = vmatmul.mubr.bf16.vlgmr.msra.gmra.mrb[4].mxu0 %v2336_v55  ;;  %v1899_v55 = vrot.slane %v6870_v32, %v7033_v49 }
 0x248   : > { %3300 = vmatpush1.bf16.msra.mxu1 %v5928_v51  ;;  %3423 = vmatpush1.bf16.msra.mxu0 %v5931_v52  ;;  %v6003_v51 = vld [vmem:[%s7896_s7 + $0x388] ss:$16 sps:$4 sm:$0xff]   ;;  %v6008_v52 = vld [vmem:[%s7896_s7 + $0x3a4] ss:$16 sps:$4 sm:$0xff]  }
 0x249   : > { %3301 = vmatprep.subr.bf16.mxu1 %v5936_v56  ;;  %3424 = vmatprep.subr.bf16.mxu0 %v5939_v57  ;;  %v6006_v56 = vld [vmem:[%s7896_s7 + $0x3a0] ss:$16 sps:$4 sm:$0xff]   ;;  %v6009_v57 = vld [vmem:[%s7896_s7 + $0x3a8] ss:$16 sps:$4 sm:$0xff]  }
 0x24a   : > { %3331 = vmatprep.mubr.bf16.mxu1 %v2339_v58  ;;  %3454 = vmatprep.mubr.bf16.mxu0 %v2339_v58  ;;  %v6014_v58 = vld [vmem:[%s7896_s7 + $0x3c4] ss:$16 sps:$4 sm:$0xff]  }
 0x24c   : > { %3302 = vmatpush1.bf16.msra.mxu1 %v5934_v60  ;;  %3425 = vmatpush1.bf16.msra.mxu0 %v5937_v61  ;;  %v6017_v60 = vld [vmem:[%s7896_s7 + $0x3cc] ss:$16 sps:$4 sm:$0xff]   ;;  %v2071_v61 = vadd.f32 %v6884_v42, %v1899_v55 }
 0x24d   : > { %3303 = vmatprep.subr.bf16.mxu1 %v5942_v62  ;;  %3426 = vmatprep.subr.bf16.mxu0 %v5945_v13  ;;  %v6012_v62 = vld [vmem:[%s7896_s7 + $0x3c0] ss:$16 sps:$4 sm:$0xff]   ;;  %v6015_v13 = vld [vmem:[%s7896_s7 + $0x3c8] ss:$16 sps:$4 sm:$0xff]   ;;  %v6023_v42 = vld [vmem:[%s7896_s7 + $0x3ec] ss:$16 sps:$4 sm:$0xff]  }
 0x250   : > { %3304 = vmatpush1.bf16.msra.mxu1 %v5940_v63  ;;  %3427 = vmatpush1.bf16.msra.mxu0 %v5943_v0  ;;  %v6020_v63 = vld [vmem:[%s7896_s7 + $0x3e4] ss:$16 sps:$4 sm:$0xff]   ;;  %v1833_v0 = vrot.slane %v6857_v31, %v6865_v17 }
 0x251   : > { %3305 = vmatprep.subr.bf16.mxu1 %v5948_v1  ;;  %3428 = vmatprep.subr.bf16.mxu0 %v5951_v2  ;;  %v1837_v1 = vrot.slane %v6857_v31, %v6873_v33  ;;  %v1841_v2 = vrot.slane %v6857_v31, %v7033_v49 }
 0x254   : > { %3306 = vmatpush1.bf16.msra.mxu1 %v5946_v3  ;;  %3429 = vmatpush1.bf16.msra.mxu0 %v5949_v4  ;;  %v1845_v3 = vrot.slane %v6857_v31, %v6876_v34  ;;  %v2147_v4 = vmax.f32 %v2071_v61, 0.0  ;;  %v6029_v31 = vld [vmem:[%s7896_s7 + $0x40c] ss:$16 sps:$4 sm:$0xff]   ;;  %v6058_v61 = vld [vmem:[%s7895_s6] ss:$16 sps:$4 sm:$0xff]  }
 0x255   : > { %3307 = vmatprep.subr.bf16.mxu1 %v5954_v5  ;;  %3430 = vmatprep.subr.bf16.mxu0 %v5957_v6  ;;  %v6018_v5 = vld [vmem:[%s7896_s7 + $0x3e0] ss:$16 sps:$4 sm:$0xff]   ;;  %v6021_v6 = vld [vmem:[%s7896_s7 + $0x3e8] ss:$16 sps:$4 sm:$0xff]  }
 0x258   : > { %3308 = vmatpush1.bf16.msra.mxu1 %v5952_v7  ;;  %3431 = vmatpush1.bf16.msra.mxu0 %v5955_v8  ;;  %v6026_v7 = vld [vmem:[%s7896_s7 + $0x404] ss:$16 sps:$4 sm:$0xff]   ;;  %v1850_v8 = vcombine.low %v1833_v0, %v1837_v1  ;;  %v6064_v0 = vld [vmem:[%s7895_s6 + $0x20] ss:$16 sps:$4 sm:$0xff]   ;;  %v6067_v1 = vld [vmem:[%s7895_s6 + $0x28] ss:$16 sps:$4 sm:$0xff]  }
 0x259   : > { %3309 = vmatprep.subr.bf16.mxu1 %v5960_v9  ;;  %3432 = vmatprep.subr.bf16.mxu0 %v5963_v10  ;;  %v1851_v9 = vcombine.low %v1841_v2, %v1845_v3  ;;  %v2338_v10 = vpack.c.bf16 %v2147_v4, %v2147_v4  ;;  %v6072_v2 = vld [vmem:[%s7895_s6 + $0x44] ss:$16 sps:$4 sm:$0xff]   ;;  %v6075_v3 = vld [vmem:[%s7895_s6 + $0x4c] ss:$16 sps:$4 sm:$0xff]   ;;  %v6070_v4 = vld [vmem:[%s7895_s6 + $0x40] ss:$16 sps:$4 sm:$0xff]  }
 0x25c   : > { %3310 = vmatpush1.bf16.msra.mxu1 %v5958_v11  ;;  %3433 = vmatpush1.bf16.msra.mxu0 %v5961_v12  ;;  %v6024_v11 = vld [vmem:[%s7896_s7 + $0x400] ss:$16 sps:$4 sm:$0xff]   ;;  %v6027_v12 = vld [vmem:[%s7896_s7 + $0x408] ss:$16 sps:$4 sm:$0xff]  }
 0x25d   : > { %3311 = vmatprep.subr.bf16.mxu1 %v5966_v14  ;;  %3434 = vmatprep.subr.bf16.mxu0 %v5969_v15  ;;  %v6032_v14 = vld [vmem:[%s7896_s7 + $0x424] ss:$16 sps:$4 sm:$0xff]   ;;  %v6035_v15 = vld [vmem:[%s7896_s7 + $0x42c] ss:$16 sps:$4 sm:$0xff]  }
 0x260   : > { %3312 = vmatpush1.bf16.msra.mxu1 %v5964_v16  ;;  %3435 = vmatpush1.bf16.msra.mxu0 %v5967_v18  ;;  %v1858_v16 = vrot.slane %v1850_v8, %v6623_v53  ;;  %v1865_v18 = vrot.slane %v1851_v9, %v6623_v53  ;;  %v6079_v8 = vld [vmem:[%s7895_s6 + $0x68] ss:$16 sps:$4 sm:$0xff]   ;;  %v6084_v9 = vld [vmem:[%s7895_s6 + $0x84] ss:$16 sps:$4 sm:$0xff]  }
 0x261   : > { %3313 = vmatprep.subr.bf16.mxu1 %v5972_v19  ;;  %3436 = vmatprep.subr.bf16.mxu0 %v5975_v20  ;;  %v6030_v19 = vld [vmem:[%s7896_s7 + $0x420] ss:$16 sps:$4 sm:$0xff]   ;;  %v6033_v20 = vld [vmem:[%s7896_s7 + $0x428] ss:$16 sps:$4 sm:$0xff]  }
 0x264   : > { %3314 = vmatpush1.bf16.msra.mxu1 %v5970_v21  ;;  %3437 = vmatpush1.bf16.msra.mxu0 %v5973_v22  ;;  %v6038_v21 = vld [vmem:[%s7896_s7 + $0x444] ss:$16 sps:$4 sm:$0xff]   ;;  %v6041_v22 = vld [vmem:[%s7896_s7 + $0x44c] ss:$16 sps:$4 sm:$0xff]  }
 0x265   : > { %3315 = vmatprep.subr.bf16.mxu1 %v5978_v23  ;;  %3438 = vmatprep.subr.bf16.mxu0 %v5981_v24  ;;  %v6329_v23 = vmov 0   ;;  %v1866_v24 = vcombine.low %v1858_v16, %v1865_v18  ;;  %v6088_v16 = vld [vmem:[%s7895_s6 + $0xa0] ss:$16 sps:$4 sm:$0xff]   ;;  %v6091_v18 = vld [vmem:[%s7895_s6 + $0xa8] ss:$16 sps:$4 sm:$0xff]  }
 0x268   : > { %3316 = vmatpush1.bf16.msra.mxu1 %v5976_v25  ;;  %3439 = vmatpush1.bf16.msra.mxu0 %v5979_v26  ;;  %v1826_v25 = vld [vmem:[#allocation2] sm:$0xff] }
 0x269   : > { %3317 = vmatprep.subr.bf16.mxu1 %v5984_v27  ;;  %3440 = vmatprep.subr.bf16.mxu0 %v5987_v28  ;;  %v6036_v26 = vld [vmem:[%s7896_s7 + $0x440] ss:$16 sps:$4 sm:$0xff]   ;;  %v6039_v27 = vld [vmem:[%s7896_s7 + $0x448] ss:$16 sps:$4 sm:$0xff]   ;;  %v6044_v28 = vld [vmem:[%s7896_s7 + $0x464] ss:$16 sps:$4 sm:$0xff]  }
 0x26c   : > { %3318 = vmatpush1.bf16.msra.mxu1 %v5982_v29  ;;  %3441 = vmatpush1.bf16.msra.mxu0 %v5985_v35  ;;  %v6047_v29 = vld [vmem:[%s7896_s7 + $0x46c] ss:$16 sps:$4 sm:$0xff]   ;;  %v1876_v35 = vadd.f32 %v1866_v24, %v1826_v25  ;;  %v6102_v24 = vld [vmem:[%s7895_s6 + $0xe4] ss:$16 sps:$4 sm:$0xff]  }
 0x26d   : > { %3319 = vmatprep.subr.bf16.mxu1 %v5990_v36  ;;  %3442 = vmatprep.subr.bf16.mxu0 %v5993_v37  ;;  %v1907_v36 = vrot.slane %v6870_v32, %v1848_v30  ;;  %v6042_v37 = vld [vmem:[%s7896_s7 + $0x460] ss:$16 sps:$4 sm:$0xff]   ;;  %v2490_v32 = vld [vmem:[%s7896_s7 + $0x4a8] sm:$0xff] }
 0x26e   : > { %v2489_v30 = vld [vmem:[%s7896_s7 + $0x4a0] sm:$0xff]  ;;  %v6105_v25 = vld [vmem:[%s7895_s6 + $0xec] ss:$16 sps:$4 sm:$0xff]  }
 0x270   : > { %3320 = vmatpush1.bf16.msra.mxu1 %v5988_v38  ;;  %3443 = vmatpush1.bf16.msra.mxu0 %v5991_v39  ;;  %v6045_v38 = vld [vmem:[%s7896_s7 + $0x468] ss:$16 sps:$4 sm:$0xff]   ;;  %v6050_v39 = vld [vmem:[%s7896_s7 + $0x484] ss:$16 sps:$4 sm:$0xff]  }
 0x271   : > { %3321 = vmatprep.subr.bf16.mxu1 %v5996_v40  ;;  %3444 = vmatprep.subr.bf16.mxu0 %v5999_v41  ;;  %v7155_v40 = vmax.f32 %v1876_v35, 0.0  ;;  %v2142_v41 = vadd.f32 %v6886_v48, %v1907_v36  ;;  %v6106_v35 = vld [vmem:[%s7895_s6 + $0x100] ss:$16 sps:$4 sm:$0xff]   ;;  %v6109_v36 = vld [vmem:[%s7895_s6 + $0x108] ss:$16 sps:$4 sm:$0xff]  }
 0x273   : > { %v7166_v48 = vrot.slane %v7155_v40, %v6623_v53 }
 0x274   : > { %3322 = vmatpush1.bf16.msra.mxu1 %v5994_v43  ;;  %3445 = vmatpush1.bf16.msra.mxu0 %v5997_v44  ;;  %v6048_v43 = vld [vmem:[%s7896_s7 + $0x480] ss:$16 sps:$4 sm:$0xff]   ;;  %v6051_v44 = vld [vmem:[%s7896_s7 + $0x488] ss:$16 sps:$4 sm:$0xff]  }
 0x275   : > { %3323 = vmatprep.subr.bf16.mxu1 %v6002_v45  ;;  %3446 = vmatprep.subr.bf16.mxu0 %v6005_v46  ;;  %v5183_v45 = vcombine.high %v2489_v30, %v2489_v30  ;;  %v5185_v46 = vcombine.high %v2490_v32, %v2490_v32 }
 0x278   : > { %3324 = vmatpush1.bf16.msra.mxu1 %v6000_v50  ;;  %3447 = vmatpush1.bf16.msra.mxu0 %v6003_v51  ;;  %v5182_v50 = vcombine.low %v2489_v30, %v2489_v30  ;;  %v5184_v51 = vcombine.low %v2490_v32, %v2490_v32  ;;  %v6120_v30 = vld [vmem:[%s7895_s6 + $0x144] ss:$16 sps:$4 sm:$0xff]   ;;  %v6123_v32 = vld [vmem:[%s7895_s6 + $0x14c] ss:$16 sps:$4 sm:$0xff]  }
 0x279   : > { %3325 = vmatprep.subr.bf16.mxu1 %v6008_v52  ;;  %3448 = vmatprep.subr.bf16.mxu0 %v6011_v54  ;;  %v2149_v52 = vmax.f32 %v2142_v41, 0.0  ;;  %v6118_v41 = vld [vmem:[%s7895_s6 + $0x140] ss:$16 sps:$4 sm:$0xff]  }
 0x27a   : > { %v3247_v54 = vsel %vm3245_vm5, %v5182_v50, 0  ;;  %v3253_v55 = vsel %vm3245_vm5, %v5184_v51, 0  ;;  %v6127_v50 = vld [vmem:[%s7895_s6 + $0x168] ss:$16 sps:$4 sm:$0xff]   ;;  %v6132_v51 = vld [vmem:[%s7895_s6 + $0x184] ss:$16 sps:$4 sm:$0xff]  }
 0x27c   : > { %3326 = vmatpush1.bf16.msra.mxu1 %v6006_v56  ;;  %3449 = vmatpush1.bf16.msra.mxu0 %v6009_v57  ;;  %v6060_v56 = vld [vmem:[%s7895_s6 + $0x4] ss:$16 sps:$4 sm:$0xff]   ;;  %v6063_v57 = vld [vmem:[%s7895_s6 + $0xc] ss:$16 sps:$4 sm:$0xff]  }
 0x27d   : > { %3327 = vmatprep.subr.bf16.mxu1 %v6014_v58  ;;  %3450 = vmatprep.subr.bf16.mxu0 %v6017_v60  ;;  %v2167_v58 = vcombine.high %v7166_v48, %v7166_v48  ;;  %v2340_v60 = vpack.c.bf16 %v2149_v52, %v2149_v52  ;;  %v6135_v52 = vld [vmem:[%s7895_s6 + $0x18c] ss:$16 sps:$4 sm:$0xff]  }
 0x280   : > { %3328 = vmatpush1.bf16.msra.mxu1 %v6012_v62  ;;  %3451 = vmatpush1.bf16.msra.mxu0 %v6015_v13  ;;  %v6061_v62 = vld [vmem:[%s7895_s6 + $0x8] ss:$16 sps:$4 sm:$0xff]   ;;  %v6066_v13 = vld [vmem:[%s7895_s6 + $0x24] ss:$16 sps:$4 sm:$0xff]  }
 0x281   : > { %3329 = vmatprep.subr.bf16.mxu1 %v6020_v63  ;;  %3452 = vmatprep.subr.bf16.mxu0 %v6023_v42  ;;  %v6069_v63 = vld [vmem:[%s7895_s6 + $0x2c] ss:$16 sps:$4 sm:$0xff]   ;;  %v2182_v42 = vpack.c.bf16 %v2167_v58, %v2167_v58  ;;  %v6136_v58 = vld [vmem:[%s7895_s6 + $0x1a0] ss:$16 sps:$4 sm:$0xff]  }
 0x284   : > { %3330 = vmatpush1.bf16.msra.mxu1 %v6018_v5  ;;  %3453 = vmatpush1.bf16.msra.mxu0 %v6021_v6  ;;  %v6073_v5 = vld [vmem:[%s7895_s6 + $0x48] ss:$16 sps:$4 sm:$0xff]   ;;  %v6078_v6 = vld [vmem:[%s7895_s6 + $0x64] ss:$16 sps:$4 sm:$0xff]  }
 0x285   : > { %3340 = vmatprep.subr.bf16.mxu1 %v6026_v7  ;;  %3463 = vmatprep.subr.bf16.mxu0 %v6029_v31  ;;  %v6081_v7 = vld [vmem:[%s7895_s6 + $0x6c] ss:$16 sps:$4 sm:$0xff]   ;;  %v6076_v31 = vld [vmem:[%s7895_s6 + $0x60] ss:$16 sps:$4 sm:$0xff]  }
 0x287   : > { %3332 = vmatmul.mubr.bf16.vlgmr.msra.gmra.mrb[4].mxu1 %v2338_v10  ;;  %3455 = vmatmul.mubr.bf16.vlgmr.msra.gmra.mrb[4].mxu0 %v2338_v10  ;;  %v6087_v10 = vld [vmem:[%s7895_s6 + $0x8c] ss:$16 sps:$4 sm:$0xff]  }
 0x288   : > { %3341 = vmatpush1.bf16.msra.mxu1 %v6024_v11  ;;  %3464 = vmatpush1.bf16.msra.mxu0 %v6027_v12  ;;  %v6082_v11 = vld [vmem:[%s7895_s6 + $0x80] ss:$16 sps:$4 sm:$0xff]   ;;  %v6085_v12 = vld [vmem:[%s7895_s6 + $0x88] ss:$16 sps:$4 sm:$0xff]  }
 0x289   : > { %3342 = vmatprep.subr.bf16.mxu1 %v6032_v14  ;;  %3465 = vmatprep.subr.bf16.mxu0 %v6035_v15  ;;  %v6090_v14 = vld [vmem:[%s7895_s6 + $0xa4] ss:$16 sps:$4 sm:$0xff]   ;;  %v6093_v15 = vld [vmem:[%s7895_s6 + $0xac] ss:$16 sps:$4 sm:$0xff]  }
 0x28a   : > { %3372 = vmatprep.mubr.bf16.mxu1 %v6329_v23  ;;  %3495 = vmatprep.mubr.bf16.mxu0 %v6329_v23 }
 0x28c   : > { %3343 = vmatpush1.bf16.msra.mxu1 %v6030_v19  ;;  %3466 = vmatpush1.bf16.msra.mxu0 %v6033_v20  ;;  %v6096_v19 = vld [vmem:[%s7895_s6 + $0xc4] ss:$16 sps:$4 sm:$0xff]   ;;  %v6099_v20 = vld [vmem:[%s7895_s6 + $0xcc] ss:$16 sps:$4 sm:$0xff]  }
 0x28d   : > { %3344 = vmatprep.subr.bf16.mxu1 %v6038_v21  ;;  %3467 = vmatprep.subr.bf16.mxu0 %v6041_v22  ;;  %v6094_v21 = vld [vmem:[%s7895_s6 + $0xc0] ss:$16 sps:$4 sm:$0xff]   ;;  %v6097_v22 = vld [vmem:[%s7895_s6 + $0xc8] ss:$16 sps:$4 sm:$0xff]  }
 0x290   : > { %3345 = vmatpush1.bf16.msra.mxu1 %v6036_v26  ;;  %3468 = vmatpush1.bf16.msra.mxu0 %v6039_v27  ;;  %v6100_v26 = vld [vmem:[%s7895_s6 + $0xe0] ss:$16 sps:$4 sm:$0xff]   ;;  %v6103_v27 = vld [vmem:[%s7895_s6 + $0xe8] ss:$16 sps:$4 sm:$0xff]  }
 0x291   : > { %3346 = vmatprep.subr.bf16.mxu1 %v6044_v28  ;;  %3469 = vmatprep.subr.bf16.mxu0 %v6047_v29  ;;  %v6108_v28 = vld [vmem:[%s7895_s6 + $0x104] ss:$16 sps:$4 sm:$0xff]   ;;  %v6111_v29 = vld [vmem:[%s7895_s6 + $0x10c] ss:$16 sps:$4 sm:$0xff]  }
 0x294   : > { %3347 = vmatpush1.bf16.msra.mxu1 %v6042_v37  ;;  %3470 = vmatpush1.bf16.msra.mxu0 %v6045_v38  ;;  %v6114_v37 = vld [vmem:[%s7895_s6 + $0x124] ss:$16 sps:$4 sm:$0xff]   ;;  %v6117_v38 = vld [vmem:[%s7895_s6 + $0x12c] ss:$16 sps:$4 sm:$0xff]  }
 0x295   : > { %3348 = vmatprep.subr.bf16.mxu1 %v6050_v39  ;;  %3471 = vmatprep.subr.bf16.mxu0 %v6053_v47  ;;  %v6112_v39 = vld [vmem:[%s7895_s6 + $0x120] ss:$16 sps:$4 sm:$0xff]   ;;  %v6115_v47 = vld [vmem:[%s7895_s6 + $0x128] ss:$16 sps:$4 sm:$0xff]  }
 0x298   : > { %3349 = vmatpush1.bf16.msra.mxu1 %v6048_v43  ;;  %3472 = vmatpush1.bf16.msra.mxu0 %v6051_v44  ;;  %v6121_v43 = vld [vmem:[%s7895_s6 + $0x148] ss:$16 sps:$4 sm:$0xff]   ;;  %v6126_v44 = vld [vmem:[%s7895_s6 + $0x164] ss:$16 sps:$4 sm:$0xff]  }
 0x299   : > { %5186 = vmatprep.subr.msk.bf16.mxu1 %vm3245_vm5, %v5183_v45  ;;  %5188 = vmatprep.subr.msk.bf16.mxu0 %vm3245_vm5, %v5185_v46  ;;  %v6129_v45 = vld [vmem:[%s7895_s6 + $0x16c] ss:$16 sps:$4 sm:$0xff]   ;;  %v6124_v46 = vld [vmem:[%s7895_s6 + $0x160] ss:$16 sps:$4 sm:$0xff]  }
 0x29c   : > { %3351 = vmatpush1.bf16.msra.mxu1 %v3247_v54  ;;  %3474 = vmatpush1.bf16.msra.mxu0 %v3253_v55  ;;  %v6130_v54 = vld [vmem:[%s7895_s6 + $0x180] ss:$16 sps:$4 sm:$0xff]   ;;  %v6133_v55 = vld [vmem:[%s7895_s6 + $0x188] ss:$16 sps:$4 sm:$0xff]  }
 0x29d   : > { %4269 = vmatprep.subr.bf16.mxu1 %v6060_v56  ;;  %4392 = vmatprep.subr.bf16.mxu0 %v6063_v57  ;;  %v6138_v56 = vld [vmem:[%s7895_s6 + $0x1a4] ss:$16 sps:$4 sm:$0xff]   ;;  %v6141_v57 = vld [vmem:[%s7895_s6 + $0x1ac] ss:$16 sps:$4 sm:$0xff]  }
 0x29f   : > { %5187 = vmatmul.mubr.msk.bf16.vlgmr.msra.gmra.mrb[4].mxu1 %vm3241_vm6, %v2340_v60  ;;  %5189 = vmatmul.mubr.msk.bf16.vlgmr.msra.gmra.mrb[4].mxu0 %vm3241_vm6, %v2340_v60  ;;  %v6139_v60 = vld [vmem:[%s7895_s6 + $0x1a8] ss:$16 sps:$4 sm:$0xff]  }
 0x2a0   : > { %4270 = vmatpush1.bf16.msra.mxu1 %v6058_v61  ;;  %4393 = vmatpush1.bf16.msra.mxu0 %v6061_v62  ;;  %v6144_v61 = vld [vmem:[%s7895_s6 + $0x1c4] ss:$16 sps:$4 sm:$0xff]   ;;  %v6147_v62 = vld [vmem:[%s7895_s6 + $0x1cc] ss:$16 sps:$4 sm:$0xff]  }
 0x2a1   : > { %4271 = vmatprep.subr.bf16.mxu1 %v6066_v13  ;;  %4394 = vmatprep.subr.bf16.mxu0 %v6069_v63  ;;  %v2152_v13 = vcombine.high %v7155_v40, %v7155_v40  ;;  %v6142_v63 = vld [vmem:[%s7895_s6 + $0x1c0] ss:$16 sps:$4 sm:$0xff]   ;;  %v6153_v40 = vld [vmem:[%s7895_s6 + $0x1ec] ss:$16 sps:$4 sm:$0xff]  }
 0x2a2   : > { %4301 = vmatprep.mubr.bf16.mxu1 %v2182_v42  ;;  %4424 = vmatprep.mubr.bf16.mxu0 %v2182_v42  ;;  %v6145_v42 = vld [vmem:[%s7895_s6 + $0x1c8] ss:$16 sps:$4 sm:$0xff]  }
 0x2a4   : > { %4272 = vmatpush1.bf16.msra.mxu1 %v6064_v0  ;;  %4395 = vmatpush1.bf16.msra.mxu0 %v6067_v1  ;;  %v6150_v0 = vld [vmem:[%s7895_s6 + $0x1e4] ss:$16 sps:$4 sm:$0xff]   ;;  %v7365_v1 = vrot.slane %v2152_v13, %v6623_v53  ;;  %v6220_v13 = vld [vmem:[%s7895_s6 + $0x360] ss:$16 sps:$4 sm:$0xff]  }
 0x2a5   : > { %4273 = vmatprep.subr.bf16.mxu1 %v6072_v2  ;;  %4396 = vmatprep.subr.bf16.mxu0 %v6075_v3  ;;  %v6148_v2 = vld [vmem:[%s7895_s6 + $0x1e0] ss:$16 sps:$4 sm:$0xff]   ;;  %v6151_v3 = vld [vmem:[%s7895_s6 + $0x1e8] ss:$16 sps:$4 sm:$0xff]  }
 0x2a8   : > { %4274 = vmatpush1.bf16.msra.mxu1 %v6070_v4  ;;  %4397 = vmatpush1.bf16.msra.mxu0 %v6073_v5  ;;  %v6156_v4 = vld [vmem:[%s7895_s6 + $0x204] ss:$16 sps:$4 sm:$0xff]   ;;  %v6159_v5 = vld [vmem:[%s7895_s6 + $0x20c] ss:$16 sps:$4 sm:$0xff]  }
 0x2a9   : > { %4275 = vmatprep.subr.bf16.mxu1 %v6078_v6  ;;  %4398 = vmatprep.subr.bf16.mxu0 %v6081_v7  ;;  %v2168_v6 = vcombine.high %v7365_v1, %v7365_v1  ;;  %v2181_v7 = vpack.c.bf16 %v7166_v48, %v7166_v48  ;;  %v6165_v48 = vld [vmem:[%s7895_s6 + $0x22c] ss:$16 sps:$4 sm:$0xff]  }
 0x2ac   : > { %4276 = vmatpush1.bf16.msra.mxu1 %v6076_v31  ;;  %4399 = vmatpush1.bf16.msra.mxu0 %v6079_v8  ;;  %v6154_v31 = vld [vmem:[%s7895_s6 + $0x200] ss:$16 sps:$4 sm:$0xff]   ;;  %v6157_v8 = vld [vmem:[%s7895_s6 + $0x208] ss:$16 sps:$4 sm:$0xff]  }
 0x2ad   : > { %4277 = vmatprep.subr.bf16.mxu1 %v6084_v9  ;;  %4400 = vmatprep.subr.bf16.mxu0 %v6087_v10  ;;  %v6162_v9 = vld [vmem:[%s7895_s6 + $0x224] ss:$16 sps:$4 sm:$0xff]   ;;  %v2184_v10 = vpack.c.bf16 %v2168_v6, %v2168_v6  ;;  %v6235_v6 = vld [vmem:[%s7895_s6 + $0x3a8] ss:$16 sps:$4 sm:$0xff]  }
 0x2b0   : > { %4278 = vmatpush1.bf16.msra.mxu1 %v6082_v11  ;;  %4401 = vmatpush1.bf16.msra.mxu0 %v6085_v12  ;;  %v6160_v11 = vld [vmem:[%s7895_s6 + $0x220] ss:$16 sps:$4 sm:$0xff]   ;;  %v6163_v12 = vld [vmem:[%s7895_s6 + $0x228] ss:$16 sps:$4 sm:$0xff]  }
 0x2b1   : > { %4279 = vmatprep.subr.bf16.mxu1 %v6090_v14  ;;  %4402 = vmatprep.subr.bf16.mxu0 %v6093_v15  ;;  %v6168_v14 = vld [vmem:[%s7895_s6 + $0x244] ss:$16 sps:$4 sm:$0xff]   ;;  %v6171_v15 = vld [vmem:[%s7895_s6 + $0x24c] ss:$16 sps:$4 sm:$0xff]  }
 0x2b4   : > { %4280 = vmatpush1.bf16.msra.mxu1 %v6088_v16  ;;  %4403 = vmatpush1.bf16.msra.mxu0 %v6091_v18  ;;  %v6166_v16 = vld [vmem:[%s7895_s6 + $0x240] ss:$16 sps:$4 sm:$0xff]   ;;  %v6169_v18 = vld [vmem:[%s7895_s6 + $0x248] ss:$16 sps:$4 sm:$0xff]  }
 0x2b5   : > { %4281 = vmatprep.subr.bf16.mxu1 %v6096_v19  ;;  %4404 = vmatprep.subr.bf16.mxu0 %v6099_v20  ;;  %v6174_v19 = vld [vmem:[%s7895_s6 + $0x264] ss:$16 sps:$4 sm:$0xff]   ;;  %v6177_v20 = vld [vmem:[%s7895_s6 + $0x26c] ss:$16 sps:$4 sm:$0xff]  }
 0x2b8   : > { %4282 = vmatpush1.bf16.msra.mxu1 %v6094_v21  ;;  %4405 = vmatpush1.bf16.msra.mxu0 %v6097_v22  ;;  %v6172_v21 = vld [vmem:[%s7895_s6 + $0x260] ss:$16 sps:$4 sm:$0xff]   ;;  %v6175_v22 = vld [vmem:[%s7895_s6 + $0x268] ss:$16 sps:$4 sm:$0xff]  }
 0x2b9   : > { %4283 = vmatprep.subr.bf16.mxu1 %v6102_v24  ;;  %4406 = vmatprep.subr.bf16.mxu0 %v6105_v25  ;;  %v6180_v24 = vld [vmem:[%s7895_s6 + $0x284] ss:$16 sps:$4 sm:$0xff]   ;;  %v6183_v25 = vld [vmem:[%s7895_s6 + $0x28c] ss:$16 sps:$4 sm:$0xff]  }
 0x2bc   : > { %4284 = vmatpush1.bf16.msra.mxu1 %v6100_v26  ;;  %4407 = vmatpush1.bf16.msra.mxu0 %v6103_v27  ;;  %v6178_v26 = vld [vmem:[%s7895_s6 + $0x280] ss:$16 sps:$4 sm:$0xff]   ;;  %v6181_v27 = vld [vmem:[%s7895_s6 + $0x288] ss:$16 sps:$4 sm:$0xff]  }
 0x2bd   : > { %4285 = vmatprep.subr.bf16.mxu1 %v6108_v28  ;;  %4408 = vmatprep.subr.bf16.mxu0 %v6111_v29  ;;  %v6186_v28 = vld [vmem:[%s7895_s6 + $0x2a4] ss:$16 sps:$4 sm:$0xff]   ;;  %v6189_v29 = vld [vmem:[%s7895_s6 + $0x2ac] ss:$16 sps:$4 sm:$0xff]  }
 0x2c0   : > { %4286 = vmatpush1.bf16.msra.mxu1 %v6106_v35  ;;  %4409 = vmatpush1.bf16.msra.mxu0 %v6109_v36  ;;  %v6184_v35 = vld [vmem:[%s7895_s6 + $0x2a0] ss:$16 sps:$4 sm:$0xff]   ;;  %v6187_v36 = vld [vmem:[%s7895_s6 + $0x2a8] ss:$16 sps:$4 sm:$0xff]  }
 0x2c1   : > { %4287 = vmatprep.subr.bf16.mxu1 %v6114_v37  ;;  %4410 = vmatprep.subr.bf16.mxu0 %v6117_v38  ;;  %v6192_v37 = vld [vmem:[%s7895_s6 + $0x2c4] ss:$16 sps:$4 sm:$0xff]   ;;  %v6195_v38 = vld [vmem:[%s7895_s6 + $0x2cc] ss:$16 sps:$4 sm:$0xff]  }
 0x2c4   : > { %4288 = vmatpush1.bf16.msra.mxu1 %v6112_v39  ;;  %4411 = vmatpush1.bf16.msra.mxu0 %v6115_v47  ;;  %v6190_v39 = vld [vmem:[%s7895_s6 + $0x2c0] ss:$16 sps:$4 sm:$0xff]   ;;  %v6193_v47 = vld [vmem:[%s7895_s6 + $0x2c8] ss:$16 sps:$4 sm:$0xff]  }
 0x2c5   : > { %4289 = vmatprep.subr.bf16.mxu1 %v6120_v30  ;;  %4412 = vmatprep.subr.bf16.mxu0 %v6123_v32  ;;  %v6198_v30 = vld [vmem:[%s7895_s6 + $0x2e4] ss:$16 sps:$4 sm:$0xff]   ;;  %v6201_v32 = vld [vmem:[%s7895_s6 + $0x2ec] ss:$16 sps:$4 sm:$0xff]  }
 0x2c8   : > { %4290 = vmatpush1.bf16.msra.mxu1 %v6118_v41  ;;  %4413 = vmatpush1.bf16.msra.mxu0 %v6121_v43  ;;  %v6196_v41 = vld [vmem:[%s7895_s6 + $0x2e0] ss:$16 sps:$4 sm:$0xff]   ;;  %v6199_v43 = vld [vmem:[%s7895_s6 + $0x2e8] ss:$16 sps:$4 sm:$0xff]  }
 0x2c9   : > { %4291 = vmatprep.subr.bf16.mxu1 %v6126_v44  ;;  %4414 = vmatprep.subr.bf16.mxu0 %v6129_v45  ;;  %v6204_v44 = vld [vmem:[%s7895_s6 + $0x304] ss:$16 sps:$4 sm:$0xff]   ;;  %v6207_v45 = vld [vmem:[%s7895_s6 + $0x30c] ss:$16 sps:$4 sm:$0xff]  }
 0x2cc   : > { %4292 = vmatpush1.bf16.msra.mxu1 %v6124_v46  ;;  %4415 = vmatpush1.bf16.msra.mxu0 %v6127_v50  ;;  %v6202_v46 = vld [vmem:[%s7895_s6 + $0x300] ss:$16 sps:$4 sm:$0xff]   ;;  %v6205_v50 = vld [vmem:[%s7895_s6 + $0x308] ss:$16 sps:$4 sm:$0xff]  }
 0x2cd   : > { %4293 = vmatprep.subr.bf16.mxu1 %v6132_v51  ;;  %4416 = vmatprep.subr.bf16.mxu0 %v6135_v52  ;;  %v6210_v51 = vld [vmem:[%s7895_s6 + $0x324] ss:$16 sps:$4 sm:$0xff]   ;;  %v6213_v52 = vld [vmem:[%s7895_s6 + $0x32c] ss:$16 sps:$4 sm:$0xff]  }
 0x2d0   : > { %4294 = vmatpush1.bf16.msra.mxu1 %v6130_v54  ;;  %4417 = vmatpush1.bf16.msra.mxu0 %v6133_v55  ;;  %v6208_v54 = vld [vmem:[%s7895_s6 + $0x320] ss:$16 sps:$4 sm:$0xff]   ;;  %v6211_v55 = vld [vmem:[%s7895_s6 + $0x328] ss:$16 sps:$4 sm:$0xff]  }
 0x2d1   : > { %4295 = vmatprep.subr.bf16.mxu1 %v6138_v56  ;;  %4418 = vmatprep.subr.bf16.mxu0 %v6141_v57  ;;  %v6216_v56 = vld [vmem:[%s7895_s6 + $0x344] ss:$16 sps:$4 sm:$0xff]   ;;  %v6219_v57 = vld [vmem:[%s7895_s6 + $0x34c] ss:$16 sps:$4 sm:$0xff]  }
 0x2d4   : > { %4296 = vmatpush1.bf16.msra.mxu1 %v6136_v58  ;;  %4419 = vmatpush1.bf16.msra.mxu0 %v6139_v60  ;;  %v6214_v58 = vld [vmem:[%s7895_s6 + $0x340] ss:$16 sps:$4 sm:$0xff]   ;;  %v6217_v60 = vld [vmem:[%s7895_s6 + $0x348] ss:$16 sps:$4 sm:$0xff]  }
 0x2d5   : > { %4297 = vmatprep.subr.bf16.mxu1 %v6144_v61  ;;  %4420 = vmatprep.subr.bf16.mxu0 %v6147_v62  ;;  %v6222_v61 = vld [vmem:[%s7895_s6 + $0x364] ss:$16 sps:$4 sm:$0xff]   ;;  %v6225_v62 = vld [vmem:[%s7895_s6 + $0x36c] ss:$16 sps:$4 sm:$0xff]  }
 0x2d8   : > { %4298 = vmatpush1.bf16.msra.mxu1 %v6142_v63  ;;  %4421 = vmatpush1.bf16.msra.mxu0 %v6145_v42  ;;  %v6223_v63 = vld [vmem:[%s7895_s6 + $0x368] ss:$16 sps:$4 sm:$0xff]   ;;  %v6228_v42 = vld [vmem:[%s7895_s6 + $0x384] ss:$16 sps:$4 sm:$0xff]  }
 0x2d9   : > { %4299 = vmatprep.subr.bf16.mxu1 %v6150_v0  ;;  %4422 = vmatprep.subr.bf16.mxu0 %v6153_v40  ;;  %v6231_v0 = vld [vmem:[%s7895_s6 + $0x38c] ss:$16 sps:$4 sm:$0xff]   ;;  %v6226_v40 = vld [vmem:[%s7895_s6 + $0x380] ss:$16 sps:$4 sm:$0xff]  }
 0x2dc   : > { %4300 = vmatpush1.bf16.msra.mxu1 %v6148_v2  ;;  %4423 = vmatpush1.bf16.msra.mxu0 %v6151_v3  ;;  %v6229_v2 = vld [vmem:[%s7895_s6 + $0x388] ss:$16 sps:$4 sm:$0xff]   ;;  %v6234_v3 = vld [vmem:[%s7895_s6 + $0x3a4] ss:$16 sps:$4 sm:$0xff]  }
 0x2dd   : > { %4310 = vmatprep.subr.bf16.mxu1 %v6156_v4  ;;  %4433 = vmatprep.subr.bf16.mxu0 %v6159_v5  ;;  %v6237_v4 = vld [vmem:[%s7895_s6 + $0x3ac] ss:$16 sps:$4 sm:$0xff]   ;;  %v6232_v5 = vld [vmem:[%s7895_s6 + $0x3a0] ss:$16 sps:$4 sm:$0xff]  }
 0x2df   : > { %4302 = vmatmul.mubr.bf16.vlgmr.msra.gmra.mrb[4].mxu1 %v2181_v7  ;;  %4425 = vmatmul.mubr.bf16.vlgmr.msra.gmra.mrb[4].mxu0 %v2181_v7  ;;  %v6240_v7 = vld [vmem:[%s7895_s6 + $0x3c4] ss:$16 sps:$4 sm:$0xff]  }
 0x2e0   : > { %4311 = vmatpush1.bf16.msra.mxu1 %v6154_v31  ;;  %4434 = vmatpush1.bf16.msra.mxu0 %v6157_v8  ;;  %v6243_v31 = vld [vmem:[%s7895_s6 + $0x3cc] ss:$16 sps:$4 sm:$0xff]   ;;  %v6238_v8 = vld [vmem:[%s7895_s6 + $0x3c0] ss:$16 sps:$4 sm:$0xff]  }
 0x2e1   : > { %4312 = vmatprep.subr.bf16.mxu1 %v6162_v9  ;;  %4435 = vmatprep.subr.bf16.mxu0 %v6165_v48  ;;  %v6241_v9 = vld [vmem:[%s7895_s6 + $0x3c8] ss:$16 sps:$4 sm:$0xff]   ;;  %v6246_v48 = vld [vmem:[%s7895_s6 + $0x3e4] ss:$16 sps:$4 sm:$0xff]  }
 0x2e2   : > { %4342 = vmatprep.mubr.bf16.mxu1 %v2184_v10  ;;  %4465 = vmatprep.mubr.bf16.mxu0 %v2184_v10  ;;  %v6249_v10 = vld [vmem:[%s7895_s6 + $0x3ec] ss:$16 sps:$4 sm:$0xff]  }
 0x2e4   : > { %4313 = vmatpush1.bf16.msra.mxu1 %v6160_v11  ;;  %4436 = vmatpush1.bf16.msra.mxu0 %v6163_v12  ;;  %v6244_v11 = vld [vmem:[%s7895_s6 + $0x3e0] ss:$16 sps:$4 sm:$0xff]   ;;  %v6247_v12 = vld [vmem:[%s7895_s6 + $0x3e8] ss:$16 sps:$4 sm:$0xff]  }
 0x2e5   : > { %4314 = vmatprep.subr.bf16.mxu1 %v6168_v14  ;;  %4437 = vmatprep.subr.bf16.mxu0 %v6171_v15  ;;  %v6252_v14 = vld [vmem:[%s7895_s6 + $0x404] ss:$16 sps:$4 sm:$0xff]   ;;  %v6255_v15 = vld [vmem:[%s7895_s6 + $0x40c] ss:$16 sps:$4 sm:$0xff]  }
 0x2e8   : > { %4315 = vmatpush1.bf16.msra.mxu1 %v6166_v16  ;;  %4438 = vmatpush1.bf16.msra.mxu0 %v6169_v18  ;;  %v2183_v16 = vpack.c.bf16 %v7365_v1, %v7365_v1  ;;  %v6250_v18 = vld [vmem:[%s7895_s6 + $0x400] ss:$16 sps:$4 sm:$0xff]   ;;  %v6261_v1 = vld [vmem:[%s7895_s6 + $0x42c] ss:$16 sps:$4 sm:$0xff]  }
 0x2e9   : > { %4316 = vmatprep.subr.bf16.mxu1 %v6174_v19  ;;  %4439 = vmatprep.subr.bf16.mxu0 %v6177_v20  ;;  %v6253_v19 = vld [vmem:[%s7895_s6 + $0x408] ss:$16 sps:$4 sm:$0xff]   ;;  %v6258_v20 = vld [vmem:[%s7895_s6 + $0x424] ss:$16 sps:$4 sm:$0xff]  }
 0x2ec   : > { %4317 = vmatpush1.bf16.msra.mxu1 %v6172_v21  ;;  %4440 = vmatpush1.bf16.msra.mxu0 %v6175_v22  ;;  %v6256_v21 = vld [vmem:[%s7895_s6 + $0x420] ss:$16 sps:$4 sm:$0xff]   ;;  %v6259_v22 = vld [vmem:[%s7895_s6 + $0x428] ss:$16 sps:$4 sm:$0xff]  }
 0x2ed   : > { %4318 = vmatprep.subr.bf16.mxu1 %v6180_v24  ;;  %4441 = vmatprep.subr.bf16.mxu0 %v6183_v25  ;;  %v6264_v24 = vld [vmem:[%s7895_s6 + $0x444] ss:$16 sps:$4 sm:$0xff]   ;;  %v6267_v25 = vld [vmem:[%s7895_s6 + $0x44c] ss:$16 sps:$4 sm:$0xff]  }
 0x2f0   : > { %4319 = vmatpush1.bf16.msra.mxu1 %v6178_v26  ;;  %4442 = vmatpush1.bf16.msra.mxu0 %v6181_v27  ;;  %v1873_v26 = vrot.slane %v6862_v59, %v6623_v53  ;;  %v1827_v27 = vld [vmem:[#allocation2 + $0x8] sm:$0x3]  ;;  %v6273_v59 = vld [vmem:[%s7895_s6 + $0x46c] ss:$16 sps:$4 sm:$0xff]  }
 0x2f1   : > { %4320 = vmatprep.subr.bf16.mxu1 %v6186_v28  ;;  %4443 = vmatprep.subr.bf16.mxu0 %v6189_v29  ;;  %v6262_v28 = vld [vmem:[%s7895_s6 + $0x440] ss:$16 sps:$4 sm:$0xff]   ;;  %v6265_v29 = vld [vmem:[%s7895_s6 + $0x448] ss:$16 sps:$4 sm:$0xff]  }
 0x2f4   : > { %4321 = vmatpush1.bf16.msra.mxu1 %v6184_v35  ;;  %4444 = vmatpush1.bf16.msra.mxu0 %v6187_v36  ;;  %v1877_v35 = vadd.f32 %v1873_v26, %v1827_v27  ;;  %v6268_v36 = vld [vmem:[%s7895_s6 + $0x460] ss:$16 sps:$4 sm:$0xff]   ;;  %v4626_v27 = vld [vmem:[%s7899_s10 + $0x1b8] sm:$0xff] }
 0x2f5   : > { %4322 = vmatprep.subr.bf16.mxu1 %v6192_v37  ;;  %4445 = vmatprep.subr.bf16.mxu0 %v6195_v38  ;;  %v6271_v37 = vld [vmem:[%s7895_s6 + $0x468] ss:$16 sps:$4 sm:$0xff]   ;;  %v6276_v38 = vld [vmem:[%s7895_s6 + $0x484] ss:$16 sps:$4 sm:$0xff]  }
 0x2f6   : > { %v4625_v26 = vld [vmem:[%s7899_s10 + $0x1b0] sm:$0xff] }
 0x2f8   : > { %4323 = vmatpush1.bf16.msra.mxu1 %v6190_v39  ;;  %4446 = vmatpush1.bf16.msra.mxu0 %v6193_v47  ;;  %v6279_v39 = vld [vmem:[%s7895_s6 + $0x48c] ss:$16 sps:$4 sm:$0xff]   ;;  %v2334_v47 = vld [vmem:[%s7895_s6 + $0x4a0] sm:$0xff] }
 0x2f9   : > { %4324 = vmatprep.subr.bf16.mxu1 %v6198_v30  ;;  %4447 = vmatprep.subr.bf16.mxu0 %v6201_v32  ;;  %v2335_v30 = vld [vmem:[%s7895_s6 + $0x4a8] sm:$0xff]  ;;  %v1879_v32 = vmax.f32 %v1877_v35, 0.0 }
 0x2fc   : > { %4325 = vmatpush1.bf16.msra.mxu1 %v6196_v41  ;;  %4448 = vmatpush1.bf16.msra.mxu0 %v6199_v43  ;;  %v6274_v41 = vld [vmem:[%s7895_s6 + $0x480] ss:$16 sps:$4 sm:$0xff]   ;;  %v6277_v43 = vld [vmem:[%s7895_s6 + $0x488] ss:$16 sps:$4 sm:$0xff]  }
 0x2fd   : > { %4326 = vmatprep.subr.bf16.mxu1 %v6204_v44  ;;  %4449 = vmatprep.subr.bf16.mxu0 %v6207_v45  ;;  %v5339_v44 = vcombine.high %v2334_v47, %v2334_v47  ;;  %v5341_v45 = vcombine.high %v2335_v30, %v2335_v30 }
 0x300   : > { %4327 = vmatpush1.bf16.msra.mxu1 %v6202_v46  ;;  %4450 = vmatpush1.bf16.msra.mxu0 %v6205_v50  ;;  %v5338_v46 = vcombine.low %v2334_v47, %v2334_v47  ;;  %v5340_v50 = vcombine.low %v2335_v30, %v2335_v30  ;;  %v4596_v47 = vld [vmem:[%s7899_s10 + $0xc8] sm:$0xff]  ;;  %v4627_v30 = vld [vmem:[%s7899_s10 + $0x1c0] sm:$0xff] }
 0x301   : > { %4328 = vmatprep.subr.bf16.mxu1 %v6210_v51  ;;  %4451 = vmatprep.subr.bf16.mxu0 %v6213_v52  ;;  %v4587_v51 = vld [vmem:[%s7899_s10 + $0x80] sm:$0xff]  ;;  %v4588_v52 = vld [vmem:[%s7899_s10 + $0x88] sm:$0xff] }
 0x304   : > { %4329 = vmatpush1.bf16.msra.mxu1 %v6208_v54  ;;  %4452 = vmatpush1.bf16.msra.mxu0 %v6211_v55  ;;  %v4619_v54 = vld [vmem:[%s7899_s10 + $0x180] sm:$0xff]  ;;  %v4620_v55 = vld [vmem:[%s7899_s10 + $0x188] sm:$0xff] }
 0x305   : > { %4330 = vmatprep.subr.bf16.mxu1 %v6216_v56  ;;  %4453 = vmatprep.subr.bf16.mxu0 %v6219_v57  ;;  %v2175_v56 = vrot.slane %v1879_v32, %v6623_v53  ;;  %v4571_v57 = vld [vmem:[%s7899_s10] sm:$0xff]  ;;  %v5506_v53 = vpack.c.bf16 %v4620_v55, %v4619_v54  ;;  %v4628_v32 = vld [vmem:[%s7899_s10 + $0x1c8] sm:$0xff]  ;;  %v4597_v54 = vld [vmem:[%s7899_s10 + $0xd0] sm:$0xff] }
 0x306   : > { %v4598_v55 = vld [vmem:[%s7899_s10 + $0xd8] sm:$0xff] }
 0x308   : > { %4331 = vmatpush1.bf16.msra.mxu1 %v6214_v58  ;;  %4454 = vmatpush1.bf16.msra.mxu0 %v6217_v60  ;;  %v4572_v58 = vld [vmem:[%s7899_s10 + $0x8] sm:$0xff]  ;;  %v4258_v60 = vsel %vm3245_vm5, %v5338_v46, 0 }
 0x309   : > { %4332 = vmatprep.subr.bf16.mxu1 %v6222_v61  ;;  %4455 = vmatprep.subr.bf16.mxu0 %v6225_v62  ;;  %v4264_v61 = vsel %vm3245_vm5, %v5340_v50, 0  ;;  %v5474_v62 = vpack.c.bf16 %v4588_v52, %v4587_v51  ;;  %v5522_v50 = vpack.c.bf16 %v4628_v32, %v4627_v30  ;;  %v4611_v51 = vld [vmem:[%s7899_s10 + $0x140] sm:$0xff]  ;;  %v4612_v52 = vld [vmem:[%s7899_s10 + $0x148] sm:$0xff] }
 0x30c   : > { %4333 = vmatpush1.bf16.msra.mxu1 %v6220_v13  ;;  %4456 = vmatpush1.bf16.msra.mxu0 %v6223_v63  ;;  %v4603_v13 = vld [vmem:[%s7899_s10 + $0x100] sm:$0xff]  ;;  %v4604_v63 = vld [vmem:[%s7899_s10 + $0x108] sm:$0xff] }
 0x30d   : > { %4334 = vmatprep.subr.bf16.mxu1 %v6228_v42  ;;  %4457 = vmatprep.subr.bf16.mxu0 %v6231_v0  ;;  %v4589_v42 = vld [vmem:[%s7899_s10 + $0x90] sm:$0xff]  ;;  %v4590_v0 = vld [vmem:[%s7899_s10 + $0x98] sm:$0xff] }
 0x310   : > { %4335 = vmatpush1.bf16.msra.mxu1 %v6226_v40  ;;  %4458 = vmatpush1.bf16.msra.mxu0 %v6229_v2  ;;  %v4621_v40 = vld [vmem:[%s7899_s10 + $0x190] sm:$0xff]  ;;  %v4622_v2 = vld [vmem:[%s7899_s10 + $0x198] sm:$0xff] }
 0x311   : > { %4336 = vmatprep.subr.bf16.mxu1 %v6234_v3  ;;  %4459 = vmatprep.subr.bf16.mxu0 %v6237_v4  ;;  %v2185_v3 = vpack.c.bf16 %v2175_v56, %v2175_v56  ;;  %v5476_v4 = vpack.c.bf16 %v4572_v58, %v4571_v57  ;;  %v4629_v56 = vld [vmem:[%s7899_s10 + $0x1d0] sm:$0xff]  ;;  %v4630_v57 = vld [vmem:[%s7899_s10 + $0x1d8] sm:$0xff] }
 0x314   : > { %4337 = vmatpush1.bf16.msra.mxu1 %v6232_v5  ;;  %4460 = vmatpush1.bf16.msra.mxu0 %v6235_v6  ;;  %v5508_v5 = vpack.c.bf16 %v4604_v63, %v4603_v13  ;;  %v4573_v6 = vld [vmem:[%s7899_s10 + $0x10] sm:$0xff]  ;;  %v4582_v13 = vld [vmem:[%s7899_s10 + $0x58] sm:$0xff] }
 0x315   : > { %4338 = vmatprep.subr.bf16.mxu1 %v6240_v7  ;;  %4461 = vmatprep.subr.bf16.mxu0 %v6243_v31  ;;  %v4574_v7 = vld [vmem:[%s7899_s10 + $0x18] sm:$0xff]  ;;  %v5478_v31 = vpack.c.bf16 %v4590_v0, %v4589_v42  ;;  %v4613_v63 = vld [vmem:[%s7899_s10 + $0x150] sm:$0xff] }
 0x316   : > { %v4614_v42 = vld [vmem:[%s7899_s10 + $0x158] sm:$0xff] }
 0x318   : > { %4339 = vmatpush1.bf16.msra.mxu1 %v6238_v8  ;;  %4462 = vmatpush1.bf16.msra.mxu0 %v6241_v9  ;;  %v5510_v8 = vpack.c.bf16 %v4622_v2, %v4621_v40  ;;  %v4605_v9 = vld [vmem:[%s7899_s10 + $0x110] sm:$0xff]  ;;  %v5528_v40 = vpack.c.bf16 %v4614_v42, %v4613_v63  ;;  %v4599_v2 = vld [vmem:[%s7899_s10 + $0xe0] sm:$0xff] }
 0x319   : > { %4340 = vmatprep.subr.bf16.mxu1 %v6246_v48  ;;  %4463 = vmatprep.subr.bf16.mxu0 %v6249_v10  ;;  %v4606_v48 = vld [vmem:[%s7899_s10 + $0x118] sm:$0xff]  ;;  %v4591_v10 = vld [vmem:[%s7899_s10 + $0xa0] sm:$0xff] }
 0x31c   : > { %4341 = vmatpush1.bf16.msra.mxu1 %v6244_v11  ;;  %4464 = vmatpush1.bf16.msra.mxu0 %v6247_v12  ;;  %v4592_v11 = vld [vmem:[%s7899_s10 + $0xa8] sm:$0xff]  ;;  %v4623_v12 = vld [vmem:[%s7899_s10 + $0x1a0] sm:$0xff] }
 0x31d   : > { %4351 = vmatprep.subr.bf16.mxu1 %v6252_v14  ;;  %4474 = vmatprep.subr.bf16.mxu0 %v6255_v15  ;;  %v4624_v14 = vld [vmem:[%s7899_s10 + $0x1a8] sm:$0xff]  ;;  %v5480_v15 = vpack.c.bf16 %v4574_v7, %v4573_v6  ;;  %v4583_v7 = vld [vmem:[%s7899_s10 + $0x60] sm:$0xff] }
 0x31e   : > { %v4632_v6 = vld [vmem:[%s7899_s10 + $0x1e8] sm:$0xff] }
 0x31f   : > { %4343 = vmatmul.mubr.bf16.vlgmr.msra.gmra.mrb[4].mxu1 %v2183_v16  ;;  %4466 = vmatmul.mubr.bf16.vlgmr.msra.gmra.mrb[4].mxu0 %v2183_v16  ;;  %v5512_v16 = vpack.c.bf16 %v4606_v48, %v4605_v9  ;;  %v4615_v9 = vld [vmem:[%s7899_s10 + $0x160] sm:$0xff] }
 0x320   : > { %4352 = vmatpush1.bf16.msra.mxu1 %v6250_v18  ;;  %4475 = vmatpush1.bf16.msra.mxu0 %v6253_v19  ;;  %v4575_v18 = vld [vmem:[%s7899_s10 + $0x20] sm:$0xff]  ;;  %v4576_v19 = vld [vmem:[%s7899_s10 + $0x28] sm:$0xff] }
 0x321   : > { %4353 = vmatprep.subr.bf16.mxu1 %v6258_v20  ;;  %4476 = vmatprep.subr.bf16.mxu0 %v6261_v1  ;;  %v5482_v20 = vpack.c.bf16 %v4592_v11, %v4591_v10  ;;  %v5514_v1 = vpack.c.bf16 %v4624_v14, %v4623_v12  ;;  %v4616_v10 = vld [vmem:[%s7899_s10 + $0x168] sm:$0xff]  ;;  %v4601_v12 = vld [vmem:[%s7899_s10 + $0xf0] sm:$0xff]  ;;  %v4602_v14 = vld [vmem:[%s7899_s10 + $0xf8] sm:$0xff] }
 0x322   : > { %4383 = vmatprep.mubr.bf16.mxu1 %v6329_v23  ;;  %4506 = vmatprep.mubr.bf16.mxu0 %v6329_v23  ;;  %v6270_v23 = vld [vmem:[%s7895_s6 + $0x464] ss:$16 sps:$4 sm:$0xff]   ;;  %v5532_v11 = vpack.c.bf16 %v4616_v10, %v4615_v9 }
 0x324   : > { %4354 = vmatpush1.bf16.msra.mxu1 %v6256_v21  ;;  %4477 = vmatpush1.bf16.msra.mxu0 %v6259_v22  ;;  %v4607_v21 = vld [vmem:[%s7899_s10 + $0x120] sm:$0xff]  ;;  %v4608_v22 = vld [vmem:[%s7899_s10 + $0x128] sm:$0xff] }
 0x325   : > { %4355 = vmatprep.subr.bf16.mxu1 %v6264_v24  ;;  %4478 = vmatprep.subr.bf16.mxu0 %v6267_v25  ;;  %v4593_v24 = vld [vmem:[%s7899_s10 + $0xb0] sm:$0xff]  ;;  %v4594_v25 = vld [vmem:[%s7899_s10 + $0xb8] sm:$0xff] }
 0x326   : > { %v5486_v35 = vpack.c.bf16 %v4594_v25, %v4593_v24  ;;  %v4618_v24 = vld [vmem:[%s7899_s10 + $0x178] sm:$0xff] }
 0x328   : > { %4356 = vmatpush1.bf16.msra.mxu1 %v6262_v28  ;;  %4479 = vmatpush1.bf16.msra.mxu0 %v6265_v29  ;;  %v5484_v28 = vpack.c.bf16 %v4576_v19, %v4575_v18  ;;  %v5516_v29 = vpack.c.bf16 %v4608_v22, %v4607_v21  ;;  %v4634_v18 = vld [vmem:[%s7899_s10 + $0x1f8] sm:$0xff]  ;;  %v4585_v19 = vld [vmem:[%s7899_s10 + $0x70] sm:$0xff] }
 0x329   : > { %4357 = vmatprep.subr.bf16.mxu1 %v6270_v23  ;;  %4480 = vmatprep.subr.bf16.mxu0 %v6273_v59  ;;  %v4577_v23 = vld [vmem:[%s7899_s10 + $0x30] sm:$0xff]  ;;  %v4578_v59 = vld [vmem:[%s7899_s10 + $0x38] sm:$0xff] }
 0x32a   : > { %v4617_v22 = vld [vmem:[%s7899_s10 + $0x170] sm:$0xff] }
 0x32b   : > { %v5536_v25 = vpack.c.bf16 %v4618_v24, %v4617_v22 }
 0x32c   : > { %4358 = vmatpush1.bf16.msra.mxu1 %v6268_v36  ;;  %4481 = vmatpush1.bf16.msra.mxu0 %v6271_v37  ;;  %v5518_v36 = vpack.c.bf16 %v4626_v27, %v4625_v26  ;;  %v4609_v37 = vld [vmem:[%s7899_s10 + $0x130] sm:$0xff]  ;;  %v4515_v26 = vld [vmem:[%s7897_s8] sm:$0xf] }
 0x32d   : > { %4359 = vmatprep.subr.bf16.mxu1 %v6276_v38  ;;  %4482 = vmatprep.subr.bf16.mxu0 %v6279_v39  ;;  %v4610_v38 = vld [vmem:[%s7899_s10 + $0x138] sm:$0xff]  ;;  %v4595_v39 = vld [vmem:[%s7899_s10 + $0xc0] sm:$0xff] }
 0x32e   : > { %v5490_v46 = vpack.c.bf16 %v4596_v47, %v4595_v39  ;;  %v4541_v27 = vld [vmem:[%s7898_s9] sm:$0xf] }
 0x32f   : > { %v4550_v39 = vrot.slane %v4541_v27, %v6873_v33  ;;  %v4558_v47 = vrot.slane %v4541_v27, %v6876_v34 }
 0x330   : > { %4360 = vmatpush1.bf16.msra.mxu1 %v6274_v41  ;;  %4483 = vmatpush1.bf16.msra.mxu0 %v6277_v43  ;;  %v5488_v41 = vpack.c.bf16 %v4578_v59, %v4577_v23  ;;  %v5520_v43 = vpack.c.bf16 %v4610_v38, %v4609_v37  ;;  %v4524_v23 = vrot.slane %v4515_v26, %v6873_v33 }
 0x331   : > { %5342 = vmatprep.subr.msk.bf16.mxu1 %vm3245_vm5, %v5339_v44  ;;  %5344 = vmatprep.subr.msk.bf16.mxu0 %vm3245_vm5, %v5341_v45  ;;  %v4579_v44 = vld [vmem:[%s7899_s10 + $0x40] sm:$0xff]  ;;  %v4580_v45 = vld [vmem:[%s7899_s10 + $0x48] sm:$0xff]  ;;  %v4532_v59 = vrot.slane %v4515_v26, %v6876_v34 }
 0x332   : > { %v5492_v58 = vpack.c.bf16 %v4580_v45, %v4579_v44 }
 0x334   : > { %4362 = vmatpush1.bf16.msra.mxu1 %v4258_v60  ;;  %4485 = vmatpush1.bf16.msra.mxu0 %v4264_v61  ;;  %v5524_v60 = vpack.c.bf16 %v4612_v52, %v4611_v51  ;;  %v4581_v61 = vld [vmem:[%s7899_s10 + $0x50] sm:$0xff] }
 0x335   : > { %5475 = vmatprep.subr.bf16.mxu1 %v5474_v62  ;;  %5507 = vmatprep.subr.bf16.mxu0 %v5506_v53  ;;  %v5494_v62 = vpack.c.bf16 %v4598_v55, %v4597_v54  ;;  %v5526_v53 = vpack.c.bf16 %v4630_v57, %v4629_v56  ;;  %v5496_v0 = vpack.c.bf16 %v4582_v13, %v4581_v61  ;;  %v5346_v61 = vld [vmem:[%s7900_s11] ss:$0 sm:$0xff] }
 0x337   : > { %5343 = vmatmul.mubr.msk.bf16.vlgmr.msra.gmra.mrb[4].mxu1 %vm3241_vm6, %v2185_v3  ;;  %5345 = vmatmul.mubr.msk.bf16.vlgmr.msra.gmra.mrb[4].mxu0 %vm3241_vm6, %v2185_v3  ;;  %v4600_v3 = vld [vmem:[%s7899_s10 + $0xe8] sm:$0xff] }
 0x338   : > { %5477 = vmatpush3.bf16.msra.mxu1 %v5476_v4  ;;  %5509 = vmatpush3.bf16.msra.mxu0 %v5508_v5  ;;  %v5498_v4 = vpack.c.bf16 %v4600_v3, %v4599_v2  ;;  %v4631_v5 = vld [vmem:[%s7899_s10 + $0x1e0] sm:$0xff] }
 0x339   : > { %5479 = vmatprep.subr.bf16.mxu1 %v5478_v31  ;;  %5511 = vmatprep.subr.bf16.mxu0 %v5510_v8  ;;  %v5530_v31 = vpack.c.bf16 %v4632_v6, %v4631_v5  ;;  %v4584_v8 = vld [vmem:[%s7899_s10 + $0x68] sm:$0xff]  ;;  %v5348_v3 = vld [vmem:[%s7902_s13] ss:$0 sm:$0xff] }
 0x33a   : > { %v5500_v48 = vpack.c.bf16 %v4584_v8, %v4583_v7 }
 0x33c   : > { %5481 = vmatpush3.bf16.msra.mxu1 %v5480_v15  ;;  %5513 = vmatpush3.bf16.msra.mxu0 %v5512_v16  ;;  %v4633_v15 = vld [vmem:[%s7899_s10 + $0x1f0] sm:$0xff]  ;;  %v5502_v16 = vpack.c.bf16 %v4602_v14, %v4601_v12 }
 0x33d   : > { %5483 = vmatprep.subr.bf16.mxu1 %v5482_v20  ;;  %5515 = vmatprep.subr.bf16.mxu0 %v5514_v1  ;;  %v4586_v20 = vld [vmem:[%s7899_s10 + $0x78] sm:$0xff]  ;;  %v5534_v1 = vpack.c.bf16 %v4634_v18, %v4633_v15 }
 0x33e   : > { %v5504_v21 = vpack.c.bf16 %v4586_v20, %v4585_v19 }
 0x340   : > { %5485 = vmatpush3.bf16.msra.mxu1 %v5484_v28  ;;  %5517 = vmatpush3.bf16.msra.mxu0 %v5516_v29  ;;  %v4520_v28 = vrot.slane %v4515_v26, %v6865_v17  ;;  %v4528_v29 = vrot.slane %v4515_v26, %v7033_v49 }
 0x341   : > { %5487 = vmatprep.subr.bf16.mxu1 %v5486_v35  ;;  %5519 = vmatprep.subr.bf16.mxu0 %v5518_v36  ;;  %v4546_v35 = vrot.slane %v4541_v27, %v6865_v17  ;;  %v4554_v36 = vrot.slane %v4541_v27, %v7033_v49 }
 0x344   : > { %5489 = vmatpush3.bf16.msra.mxu1 %v5488_v41  ;;  %5521 = vmatpush3.bf16.msra.mxu0 %v5520_v43 }
 0x345   : > { %5491 = vmatprep.subr.bf16.mxu1 %v5490_v46  ;;  %5523 = vmatprep.subr.bf16.mxu0 %v5522_v50 }
 0x348   : > { %5493 = vmatpush3.bf16.msra.mxu1 %v5492_v58  ;;  %5525 = vmatpush3.bf16.msra.mxu0 %v5524_v60 }
 0x349   : > { %5495 = vmatprep.subr.bf16.mxu1 %v5494_v62  ;;  %5527 = vmatprep.subr.bf16.mxu0 %v5526_v53 }
 0x34c   : > { %5497 = vmatpush3.bf16.msra.mxu1 %v5496_v0  ;;  %5529 = vmatpush3.bf16.msra.mxu0 %v5528_v40  ;;  %v5347_v40 = vld [vmem:[%s7901_s12] ss:$0 sm:$0xff] }
 0x34d   : > { %5499 = vmatprep.subr.bf16.mxu1 %v5498_v4  ;;  %5531 = vmatprep.subr.bf16.mxu0 %v5530_v31 }
 0x350   : > { %5501 = vmatpush3.bf16.msra.mxu1 %v5500_v48  ;;  %5533 = vmatpush3.bf16.msra.mxu0 %v5532_v11 }
 0x351   : > { %5503 = vmatprep.subr.bf16.mxu1 %v5502_v16  ;;  %5535 = vmatprep.subr.bf16.mxu0 %v5534_v1 }
 0x354   : > { %5505 = vmatpush3.bf16.msra.mxu1 %v5504_v21  ;;  %5537 = vmatpush3.bf16.msra.mxu0 %v5536_v25 }
 0x40a   : > { %v4385_v37 = vpop.f32.mrb[4].mxu1  ;;  %v4508_v38 = vpop.f32.mrb[4].mxu0 }
 0x40b   : > { %v4537_v30 = vmul.f32 %v4520_v28, %v4385_v37  ;;  %v4539_v32 = vmul.f32 %v4528_v29, %v4508_v38  ;;  %v4387_v41 = vpop.f32.mrb[5].mxu1  ;;  %v4510_v43 = vpop.f32.mrb[5].mxu0 }
 0x40c   : > { %v4538_v44 = vmul.f32 %v4524_v23, %v4387_v41  ;;  %v4540_v45 = vmul.f32 %v4532_v59, %v4510_v43  ;;  %v4389_v46 = vpop.f32.mrb[6].mxu1  ;;  %v4512_v50 = vpop.f32.mrb[6].mxu0 }
 0x40d   : > { %v4563_v51 = vadd.f32 %v4546_v35, %v4537_v30  ;;  %v4565_v52 = vadd.f32 %v4554_v36, %v4539_v32  ;;  %v4390_v54 = vpop.f32.mrb[7].mxu1  ;;  %v4513_v17 = vpop.f32.mrb[7].mxu0 }
 0x40e   : > { %v4564_v55 = vadd.f32 %v4550_v39, %v4538_v44  ;;  %v4566_v49 = vadd.f32 %v4558_v47, %v4540_v45 }
 0x40f   : > { %v4567_v58 = vmax.f32 %v4563_v51, 0.0  ;;  %v4569_v33 = vmax.f32 %v4565_v52, 0.0 }
 0x410   : > { %v4568_v56 = vmax.f32 %v4564_v55, 0.0  ;;  %v4570_v57 = vmax.f32 %v4566_v49, 0.0 }
 0x412   : > { %4706 = vmatprep.mubr.f32.mxu1 %v4568_v56  ;;  %4776 = vmatprep.mubr.f32.mxu0 %v4570_v57 }
 0x413   : > { %4707 = vmatmul.mubr.f32.vlgmr.msra.gmra.mrb[2].mxu1 %v4567_v58  ;;  %4777 = vmatmul.mubr.f32.vlgmr.msra.gmra.mrb[8].mxu0 %v4569_v33 }
 0x4e6   : > { %v5431_v34 = vpop.f32.mrb[2].mxu1  ;;  %v5466_v60 = vpop.f32.mrb[8].mxu0 }
 0x4e7   : > { %v5432_v62 = vpop.f32.mrb[3].mxu1  ;;  %v5467_v53 = vpop.f32.mrb[9].mxu0 }
 0x4e8   : > { %v5433_v13 = vadd.f32 %v5432_v62, %v5431_v34  ;;  %v5468_v63 = vadd.f32 %v5467_v53, %v5466_v60 }
 0x4ea   : > { %v4709_v42 = vadd.f32 %v5433_v13, %v5346_v61 }
 0x4ec   : > { %v4779_v0 = vadd.f32 %v5468_v63, %v4709_v42 }
 0x4ee   : > { %6284 = vtanh.f32 %v4779_v0 }
 0x4f8   : > { %v6285_v2 = vpop.eup %6284 }
 0x4f9   : > { %v4790_v4 = vmul.f32 %v6285_v2, %v5347_v40 }
 0x4fb   : > { %v4798_v5 = vadd.f32 %v5348_v3, %v4790_v4 }
 0x4fd   : > { %4800 = vst.msk [vmem:[#allocation3] sm:$0x3] %vm4799_vm7, %v4798_v5 }
 0x4fe PF: > { %p5591_p7 = scmp.eq.s32.totalorder %s6412_s30, 8  ;;  %s6330_s24 = smov [#allocation3]  }
 0x4ff   : > { %s4808_s25 = sshll.u32 %s6330_s24, 4  ;;  %s4809_s25 = int_to_ptr.vmem [resolvable:$true] %s4808_s25 }
 0x500   : > { %s6286_s26 = scalar_lea.vmem %s4809_s25, 32  ;;  %p6293_p11 = scmp.lt.s32.totalorder %s4809_s25, %s4809_s25 }
 0x501   : > { %p6287_p8 = scmp.ne.s32.totalorder %s4809_s25, %s6286_s26  ;;  %p6294_p12 = scmp.lt.s32.totalorder %s6286_s26, %s6286_s26 }
 0x503   : > { %p6288_p9 = pnand %p6287_p8, %p5591_p7  ;;  %p6295_p13 = por %p6294_p12, %p6293_p11 }
 0x505   : > { %p6289_p10 = pneg %p6288_p9 }
 0x507   : > { %p6296_p0 = pnand %p6295_p13, %p6289_p10 }
 0x509   : > { %6299 = shalt.err (!%p6296_p0)
}
 0x50a   : > { %s6300_s15 = scalar_lea.hbm %s7903_s14, 32 }
 0x50b   : > { %p6301_p1 = scmp.ne.s32.totalorder %s7903_s14, %s6300_s15  ;;  %p6306_p4 = scmp.lt.u32.totalorder %s6300_s15, %s7903_s14 }
 0x50d   : > { %p6302_p2 = pnand %p6301_p1, %p5591_p7 }
 0x50f   : > { %p6303_p3 = pneg %p6302_p2 }
 0x511   : > { %p6308_p5 = pnand %p6306_p4, %p6303_p3 }
 0x513   : > { %6311 = shalt.err (!%p6308_p5)
}
 0x514   : > { %5588 = dma.vmem_to_hbm [thread:$0]  (%p5591_p7), %s4809_s25, 32, %s7903_s14, [#allocation4]  }
 0x515   : > { %6317 = dma.done.wait (%p5591_p7), [#allocation4], 32  }
 0x516   : > { %6319 = vsyncadd (%p5591_p7), [#allocation4], 4294967264 }
 0x517 PF: > { %s25_s29 = sadd.s32 1, %s6322_s29  }
 0x518   : > { %p22_p6 = scmp.ge.s32.totalorder %s25_s29, 11  }
 0x51a   :  { %24 = sbr.rel (!%p22_p6) target bundleno = 1 (0x1), region = 114 }
 0x521   :  { %4821 = vsyncpa [#allocation4], 1 }
 0x522   :  { %4823 = vsyncpa [#allocation4 + $0x1], 1 }

</bundles_post_ra>
